<compile_context>
chip_gen: v5e
topology: v5e:2x2
jax: 0.10.0
libtpu: 0.0.40
codegen_flags: <defaults>
</compile_context>

<pallas_src>
import numpy as np
import jax
import jax.numpy as jnp
from jax.experimental import pallas as pl
from jax.experimental.pallas import tpu as pltpu


# ---------------------------------------------------------------------------
# Host-side structural constants (numpy, trace-time only)
# ---------------------------------------------------------------------------

def _interp_matrix_np(out_size, in_size):
    """1-D bilinear interpolation matrix, PyTorch align_corners=False."""
    if out_size == in_size:
        return np.eye(out_size, dtype=np.float32)
    scale = in_size / out_size
    dst = np.arange(out_size, dtype=np.float64)
    src = np.maximum((dst + 0.5) * scale - 0.5, 0.0)      # PyTorch clamps < 0
    i0 = np.clip(np.floor(src).astype(np.int64), 0, in_size - 1)
    i1 = np.minimum(i0 + 1, in_size - 1)
    w1 = (src - i0).astype(np.float32)
    w0 = (1.0 - w1).astype(np.float32)
    A = np.zeros((out_size, in_size), np.float32)
    rows = np.arange(out_size)
    np.add.at(A, (rows, i0), w0)
    np.add.at(A, (rows, i1), w1)
    return A


def _resize_matrix_t(in_hw, out_hw):
    """(in_h*in_w, out_h*out_w): transposed separable bilinear resize (kron)."""
    ih, iw = in_hw
    oh, ow = out_hw
    A = np.kron(_interp_matrix_np(oh, ih), _interp_matrix_np(ow, iw))
    return jnp.asarray(A.T)


def _subsample_matrix_t(h, w):
    """(h*w, (h//2)*(w//2)) selector implementing x[::2, ::2] on flat spatial."""
    ho, wo = h // 2, w // 2
    D = np.zeros((h * w, ho * wo), np.float32)
    for i in range(ho):
        for j in range(wo):
            D[(2 * i) * w + 2 * j, i * wo + j] = 1.0
    return jnp.asarray(D)


def _shift_matrices_t(h, w):
    """(9, h*w, h*w): S[t] so that (x_flat @ S[t]) == zero-padded 3x3 tap t."""
    hw = h * w
    S = np.zeros((9, hw, hw), np.float32)
    for t in range(9):
        dy, dx = t // 3 - 1, t % 3 - 1
        for y in range(h):
            yy = y + dy
            if not (0 <= yy < h):
                continue
            for x in range(w):
                xx = x + dx
                if 0 <= xx < w:
                    S[t, yy * w + xx, y * w + x] = 1.0
    return jnp.asarray(S)


def _bcast_spec(a):
    idx = (0,) * a.ndim
    return pl.BlockSpec(a.shape, lambda n, _idx=idx: _idx)


# ---------------------------------------------------------------------------
# Fused FPN kernel (one grid step == one image)
# ---------------------------------------------------------------------------

def _fpn_fused_kernel(x_ref,
                      w1, b1, d3, w2, b2, d4, w3, b3, d5, w4, b4,
                      wt, bt, wl1, bl1, wl2, bl2, wl3, bl3,
                      u54, u43, u32, uc4, uc5,
                      s4, s8, s16,
                      k1, kb1, q1, qb1, k2, kb2, q2, qb2, k3, kb3, q3, qb3,
                      o_ref):
    f32 = jnp.float32

    def mm(a, b):
        return jnp.dot(a, b, preferred_element_type=f32)

    def conv1x1(v, w_ref, b_ref):
        # 1x1 Conv + folded BN + ReLU: (Cout,Cin) @ (Cin,HW) + bias
        return jnp.maximum(mm(w_ref[...], v) + b_ref[...], 0.0)

    def dwconv3x3(v, s_ref, k_ref, kb_ref):
        # depthwise 3x3 (zero pad) + folded BN + ReLU via 9 shift-matrix matmuls;
        # input value v is used directly (no repeated ref window loads).
        acc = kb_ref[...]                                   # (C,1) -> broadcast
        for t in range(9):
            acc = acc + k_ref[:, t:t + 1] * mm(v, s_ref[t])
        return jnp.maximum(acc, 0.0)

    # ---- synthetic backbone: 4 x {stride-2 subsample, 1x1 Conv+BN+ReLU} ----
    # TODO(synk): FpnBackBone.init_backbone is abstract in the reference; this
    # synthetic backbone stands in for it (same as the previous version).
    # Stage 1 has Cin=3: run it as 3 broadcast FMAs on the VPU (skip the MXU).
    a = (w1[:, 0:1] * x_ref[0, 0:1, :]
         + w1[:, 1:2] * x_ref[0, 1:2, :]
         + w1[:, 2:3] * x_ref[0, 2:3, :])
    c2 = jnp.maximum(a + b1[...], 0.0)                      # (16, HW/4)
    c3 = conv1x1(mm(c2, d3[...]), w2, b2)                   # (24, HW/16)
    c4 = conv1x1(mm(c3, d4[...]), w3, b3)                   # (32, HW/64)
    c5 = conv1x1(mm(c4, d5[...]), w4, b4)                   # (48, HW/256)

    # ---- FPN top-down path: laterals + fused bilinear resize-and-add -------
    p5 = conv1x1(c5, wt, bt)                                # toplayer
    l4 = conv1x1(c4, wl1, bl1)
    p4 = mm(p5, u54[...]) + l4                              # _upsample_add
    p4 = conv1x1(dwconv3x3(p4, s4, k1, kb1), q1, qb1)       # smooth1 (dw + pw)
    l3 = conv1x1(c3, wl2, bl2)
    p3 = mm(p4, u43[...]) + l3
    p3 = conv1x1(dwconv3x3(p3, s8, k2, kb2), q2, qb2)       # smooth2
    l2 = conv1x1(c2, wl3, bl3)
    p2 = mm(p3, u32[...]) + l2
    p2 = conv1x1(dwconv3x3(p2, s16, k3, kb3), q3, qb3)      # smooth3

    # ---- _upsample_cat: resize p3/p4/p5 to p2 size, concat on channels -----
    p3u = mm(p3, u32[...])
    p4u = mm(p4, uc4[...])
    p5u = mm(p5, uc5[...])
    # (4*conv_out, H*W) lane-dense store, already channel-major (NCHW order).
    o_ref[0] = jnp.concatenate([p2, p3u, p4u, p5u], axis=0)


# ---------------------------------------------------------------------------
# Parameters (deterministic, synthetic; BN folded into weight/bias).
# Weights are stored pre-transposed: 1x1 conv -> (Cout, Cin); bias -> (C, 1);
# depthwise 3x3 -> (C, 9) with tap order t = 3*dy + dx.
# ---------------------------------------------------------------------------

def _conv_bn_relu_params(key, cin, cout):
    kw, kb = jax.random.split(key)
    w = jax.random.normal(kw, (cout, cin), jnp.float32) / jnp.sqrt(cin)
    b = jax.random.normal(kb, (cout, 1), jnp.float32) * 0.05
    return {"w": w, "b": b}


def _dw_bn_relu_params(key, c):
    kw, kb = jax.random.split(key)
    w = jax.random.normal(kw, (c, 9), jnp.float32) * 0.2
    b = jax.random.normal(kb, (c, 1), jnp.float32) * 0.05
    return {"w": w, "b": b}


def init_fpn_params(key, in_ch=3, out=(16, 24, 32, 48), conv_out=16):
    keys = jax.random.split(key, 16)
    p = {"conv_out": conv_out}
    chans = (in_ch,) + tuple(out)
    p["backbone"] = [_conv_bn_relu_params(keys[i], chans[i], chans[i + 1])
                     for i in range(4)]
    p["toplayer"] = _conv_bn_relu_params(keys[4], out[3], conv_out)
    p["latlayer1"] = _conv_bn_relu_params(keys[5], out[2], conv_out)
    p["latlayer2"] = _conv_bn_relu_params(keys[6], out[1], conv_out)
    p["latlayer3"] = _conv_bn_relu_params(keys[7], out[0], conv_out)
    for i, name in enumerate(("smooth1", "smooth2", "smooth3")):
        p[name] = {"dw": _dw_bn_relu_params(keys[8 + 2 * i], conv_out),
                   "pw": _conv_bn_relu_params(keys[9 + 2 * i], conv_out, conv_out)}
    return p


# ---------------------------------------------------------------------------
# Forward wrapper: NCHW in -> NCHW out, one pallas_call over the batch.
# ---------------------------------------------------------------------------

def fpn_backbone_forward(x_nchw, params):
    N, cin, H, W = x_nchw.shape
    assert cin == 3 and H % 16 == 0 and W % 16 == 0, (N, cin, H, W)
    co = params["toplayer"]["w"].shape[0]                   # conv_out (static)
    h2, w2 = H // 2, W // 2
    h3, w3 = h2 // 2, w2 // 2
    h4, w4 = h3 // 2, w3 // 2
    h5, w5 = h4 // 2, w4 // 2
    hw2 = h2 * w2

    # TODO(synk): at real FPN resolutions the whole-image-in-VMEM fusion would
    # need spatial row-tiling (esp. v7x 64 MiB VMEM); fine at demo sizes.
    bk = params["backbone"]
    consts = [
        bk[0]["w"], bk[0]["b"], _subsample_matrix_t(h2, w2),
        bk[1]["w"], bk[1]["b"], _subsample_matrix_t(h3, w3),
        bk[2]["w"], bk[2]["b"], _subsample_matrix_t(h4, w4),
        bk[3]["w"], bk[3]["b"],
        params["toplayer"]["w"], params["toplayer"]["b"],
        params["latlayer1"]["w"], params["latlayer1"]["b"],
        params["latlayer2"]["w"], params["latlayer2"]["b"],
        params["latlayer3"]["w"], params["latlayer3"]["b"],
        _resize_matrix_t((h5, w5), (h4, w4)),               # p5 -> p4 size
        _resize_matrix_t((h4, w4), (h3, w3)),               # p4 -> p3 size
        _resize_matrix_t((h3, w3), (h2, w2)),               # p3 -> p2 size (+cat)
        _resize_matrix_t((h4, w4), (h2, w2)),               # cat: p4 -> p2 size
        _resize_matrix_t((h5, w5), (h2, w2)),               # cat: p5 -> p2 size
        _shift_matrices_t(h4, w4),                          # smooth1 taps
        _shift_matrices_t(h3, w3),                          # smooth2 taps
        _shift_matrices_t(h2, w2),                          # smooth3 taps
        params["smooth1"]["dw"]["w"], params["smooth1"]["dw"]["b"],
        params["smooth1"]["pw"]["w"], params["smooth1"]["pw"]["b"],
        params["smooth2"]["dw"]["w"], params["smooth2"]["dw"]["b"],
        params["smooth2"]["pw"]["w"], params["smooth2"]["pw"]["b"],
        params["smooth3"]["dw"]["w"], params["smooth3"]["dw"]["b"],
        params["smooth3"]["pw"]["w"], params["smooth3"]["pw"]["b"],
    ]

    # Stage-1 stride-2 subsample done once by XLA; kernel gets (N, 3, H/2*W/2).
    x2 = x_nchw[:, :, ::2, ::2].astype(jnp.float32).reshape(N, cin, hw2)

    in_specs = [pl.BlockSpec((1, cin, hw2), lambda n: (n, 0, 0))]
    in_specs += [_bcast_spec(c) for c in consts]

    out = pl.pallas_call(
        _fpn_fused_kernel,
        out_shape=jax.ShapeDtypeStruct((N, 4 * co, hw2), jnp.float32),
        grid=(N,),
        in_specs=in_specs,
        out_specs=pl.BlockSpec((1, 4 * co, hw2), lambda n: (n, 0, 0)),
        compiler_params=pltpu.CompilerParams(
            dimension_semantics=("parallel",)),     # batch -> both TCs on v7x
    )(x2, *consts)

    return out.reshape(N, 4 * co, h2, w2)                   # already NCHW


if __name__ == "__main__":
    key = jax.random.PRNGKey(0)
    kx, kp = jax.random.split(key)
    x = jax.random.normal(kx, (2, 3, 32, 32), jnp.float32)  # NCHW input
    params = init_fpn_params(kp)
    out = jax.jit(fpn_backbone_forward)(x, params)
    jax.block_until_ready(out)
    assert out.shape == (2, 4 * params["conv_out"], 16, 16), out.shape
    assert bool(jnp.all(jnp.isfinite(out)))
    print("KERNEL_OK")
</pallas_src>

<mosaic_0001>
module attributes {stable_mosaic.version = 11 : i64} {
  func.func @_fpn_fused_kernel(%arg0: i32, %arg1: memref<1x3x256xf32, #tpu.memory_space<vmem>>, %arg2: memref<16x3xf32, #tpu.memory_space<vmem>>, %arg3: memref<16x1xf32, #tpu.memory_space<vmem>>, %arg4: memref<256x64xf32, #tpu.memory_space<vmem>>, %arg5: memref<24x16xf32, #tpu.memory_space<vmem>>, %arg6: memref<24x1xf32, #tpu.memory_space<vmem>>, %arg7: memref<64x16xf32, #tpu.memory_space<vmem>>, %arg8: memref<32x24xf32, #tpu.memory_space<vmem>>, %arg9: memref<32x1xf32, #tpu.memory_space<vmem>>, %arg10: memref<16x4xf32, #tpu.memory_space<vmem>>, %arg11: memref<48x32xf32, #tpu.memory_space<vmem>>, %arg12: memref<48x1xf32, #tpu.memory_space<vmem>>, %arg13: memref<16x48xf32, #tpu.memory_space<vmem>>, %arg14: memref<16x1xf32, #tpu.memory_space<vmem>>, %arg15: memref<16x32xf32, #tpu.memory_space<vmem>>, %arg16: memref<16x1xf32, #tpu.memory_space<vmem>>, %arg17: memref<16x24xf32, #tpu.memory_space<vmem>>, %arg18: memref<16x1xf32, #tpu.memory_space<vmem>>, %arg19: memref<16x16xf32, #tpu.memory_space<vmem>>, %arg20: memref<16x1xf32, #tpu.memory_space<vmem>>, %arg21: memref<4x16xf32, #tpu.memory_space<vmem>>, %arg22: memref<16x64xf32, #tpu.memory_space<vmem>>, %arg23: memref<64x256xf32, #tpu.memory_space<vmem>>, %arg24: memref<16x256xf32, #tpu.memory_space<vmem>>, %arg25: memref<4x256xf32, #tpu.memory_space<vmem>>, %arg26: memref<9x16x16xf32, #tpu.memory_space<vmem>>, %arg27: memref<9x64x64xf32, #tpu.memory_space<vmem>>, %arg28: memref<9x256x256xf32, #tpu.memory_space<vmem>>, %arg29: memref<16x9xf32, #tpu.memory_space<vmem>>, %arg30: memref<16x1xf32, #tpu.memory_space<vmem>>, %arg31: memref<16x16xf32, #tpu.memory_space<vmem>>, %arg32: memref<16x1xf32, #tpu.memory_space<vmem>>, %arg33: memref<16x9xf32, #tpu.memory_space<vmem>>, %arg34: memref<16x1xf32, #tpu.memory_space<vmem>>, %arg35: memref<16x16xf32, #tpu.memory_space<vmem>>, %arg36: memref<16x1xf32, #tpu.memory_space<vmem>>, %arg37: memref<16x9xf32, #tpu.memory_space<vmem>>, %arg38: memref<16x1xf32, #tpu.memory_space<vmem>>, %arg39: memref<16x16xf32, #tpu.memory_space<vmem>>, %arg40: memref<16x1xf32, #tpu.memory_space<vmem>>, %arg41: memref<1x64x256xf32, #tpu.memory_space<vmem>>) attributes {dimension_semantics = [#tpu.dimension_semantics<parallel>], iteration_bounds = array<i64: 2>, scalar_prefetch = 0 : i64, scratch_operands = 0 : i64, tpu.core_type = #tpu.core_type<tc>, window_params = [{transform_indices = @transform_0, window_bounds = array<i64: 1, 3, 256>}, {pipeline_mode = #tpu.pipeline_mode<synchronous>, transform_indices = @transform_1, window_bounds = array<i64: 16, 3>}, {pipeline_mode = #tpu.pipeline_mode<synchronous>, transform_indices = @transform_2, window_bounds = array<i64: 16, 1>}, {pipeline_mode = #tpu.pipeline_mode<synchronous>, transform_indices = @transform_3, window_bounds = array<i64: 256, 64>}, {pipeline_mode = #tpu.pipeline_mode<synchronous>, transform_indices = @transform_4, window_bounds = array<i64: 24, 16>}, {pipeline_mode = #tpu.pipeline_mode<synchronous>, transform_indices = @transform_5, window_bounds = array<i64: 24, 1>}, {pipeline_mode = #tpu.pipeline_mode<synchronous>, transform_indices = @transform_6, window_bounds = array<i64: 64, 16>}, {pipeline_mode = #tpu.pipeline_mode<synchronous>, transform_indices = @transform_7, window_bounds = array<i64: 32, 24>}, {pipeline_mode = #tpu.pipeline_mode<synchronous>, transform_indices = @transform_8, window_bounds = array<i64: 32, 1>}, {pipeline_mode = #tpu.pipeline_mode<synchronous>, transform_indices = @transform_9, window_bounds = array<i64: 16, 4>}, {pipeline_mode = #tpu.pipeline_mode<synchronous>, transform_indices = @transform_10, window_bounds = array<i64: 48, 32>}, {pipeline_mode = #tpu.pipeline_mode<synchronous>, transform_indices = @transform_11, window_bounds = array<i64: 48, 1>}, {pipeline_mode = #tpu.pipeline_mode<synchronous>, transform_indices = @transform_12, window_bounds = array<i64: 16, 48>}, {pipeline_mode = #tpu.pipeline_mode<synchronous>, transform_indices = @transform_13, window_bounds = array<i64: 16, 1>}, {pipeline_mode = #tpu.pipeline_mode<synchronous>, transform_indices = @transform_14, window_bounds = array<i64: 16, 32>}, {pipeline_mode = #tpu.pipeline_mode<synchronous>, transform_indices = @transform_15, window_bounds = array<i64: 16, 1>}, {pipeline_mode = #tpu.pipeline_mode<synchronous>, transform_indices = @transform_16, window_bounds = array<i64: 16, 24>}, {pipeline_mode = #tpu.pipeline_mode<synchronous>, transform_indices = @transform_17, window_bounds = array<i64: 16, 1>}, {pipeline_mode = #tpu.pipeline_mode<synchronous>, transform_indices = @transform_18, window_bounds = array<i64: 16, 16>}, {pipeline_mode = #tpu.pipeline_mode<synchronous>, transform_indices = @transform_19, window_bounds = array<i64: 16, 1>}, {pipeline_mode = #tpu.pipeline_mode<synchronous>, transform_indices = @transform_20, window_bounds = array<i64: 4, 16>}, {pipeline_mode = #tpu.pipeline_mode<synchronous>, transform_indices = @transform_21, window_bounds = array<i64: 16, 64>}, {pipeline_mode = #tpu.pipeline_mode<synchronous>, transform_indices = @transform_22, window_bounds = array<i64: 64, 256>}, {pipeline_mode = #tpu.pipeline_mode<synchronous>, transform_indices = @transform_23, window_bounds = array<i64: 16, 256>}, {pipeline_mode = #tpu.pipeline_mode<synchronous>, transform_indices = @transform_24, window_bounds = array<i64: 4, 256>}, {pipeline_mode = #tpu.pipeline_mode<synchronous>, transform_indices = @transform_25, window_bounds = array<i64: 9, 16, 16>}, {pipeline_mode = #tpu.pipeline_mode<synchronous>, transform_indices = @transform_26, window_bounds = array<i64: 9, 64, 64>}, {pipeline_mode = #tpu.pipeline_mode<synchronous>, transform_indices = @transform_27, window_bounds = array<i64: 9, 256, 256>}, {pipeline_mode = #tpu.pipeline_mode<synchronous>, transform_indices = @transform_28, window_bounds = array<i64: 16, 9>}, {pipeline_mode = #tpu.pipeline_mode<synchronous>, transform_indices = @transform_29, window_bounds = array<i64: 16, 1>}, {pipeline_mode = #tpu.pipeline_mode<synchronous>, transform_indices = @transform_30, window_bounds = array<i64: 16, 16>}, {pipeline_mode = #tpu.pipeline_mode<synchronous>, transform_indices = @transform_31, window_bounds = array<i64: 16, 1>}, {pipeline_mode = #tpu.pipeline_mode<synchronous>, transform_indices = @transform_32, window_bounds = array<i64: 16, 9>}, {pipeline_mode = #tpu.pipeline_mode<synchronous>, transform_indices = @transform_33, window_bounds = array<i64: 16, 1>}, {pipeline_mode = #tpu.pipeline_mode<synchronous>, transform_indices = @transform_34, window_bounds = array<i64: 16, 16>}, {pipeline_mode = #tpu.pipeline_mode<synchronous>, transform_indices = @transform_35, window_bounds = array<i64: 16, 1>}, {pipeline_mode = #tpu.pipeline_mode<synchronous>, transform_indices = @transform_36, window_bounds = array<i64: 16, 9>}, {pipeline_mode = #tpu.pipeline_mode<synchronous>, transform_indices = @transform_37, window_bounds = array<i64: 16, 1>}, {pipeline_mode = #tpu.pipeline_mode<synchronous>, transform_indices = @transform_38, window_bounds = array<i64: 16, 16>}, {pipeline_mode = #tpu.pipeline_mode<synchronous>, transform_indices = @transform_39, window_bounds = array<i64: 16, 1>}, {transform_indices = @transform_40, window_bounds = array<i64: 1, 64, 256>}]} {
    %c0 = arith.constant 0 : index
    %c0_0 = arith.constant 0 : index
    %0 = vector.load %arg2[%c0, %c0_0] : memref<16x3xf32, #tpu.memory_space<vmem>>, vector<16x1xf32>
    %c0_1 = arith.constant 0 : index
    %c0_2 = arith.constant 0 : index
    %c0_3 = arith.constant 0 : index
    %1 = vector.load %arg1[%c0_1, %c0_2, %c0_3] : memref<1x3x256xf32, #tpu.memory_space<vmem>>, vector<1x1x256xf32>
    %2 = vector.shape_cast %1 : vector<1x1x256xf32> to vector<1x256xf32>
    %3 = vector.broadcast %0 : vector<16x1xf32> to vector<16x256xf32>
    %4 = vector.broadcast %2 : vector<1x256xf32> to vector<16x256xf32>
    %5 = arith.mulf %3, %4 : vector<16x256xf32>
    %c0_4 = arith.constant 0 : index
    %c1 = arith.constant 1 : index
    %6 = vector.load %arg2[%c0_4, %c1] : memref<16x3xf32, #tpu.memory_space<vmem>>, vector<16x1xf32>
    %c0_5 = arith.constant 0 : index
    %c1_6 = arith.constant 1 : index
    %c0_7 = arith.constant 0 : index
    %7 = vector.load %arg1[%c0_5, %c1_6, %c0_7] : memref<1x3x256xf32, #tpu.memory_space<vmem>>, vector<1x1x256xf32>
    %8 = vector.shape_cast %7 : vector<1x1x256xf32> to vector<1x256xf32>
    %9 = vector.broadcast %6 : vector<16x1xf32> to vector<16x256xf32>
    %10 = vector.broadcast %8 : vector<1x256xf32> to vector<16x256xf32>
    %11 = arith.mulf %9, %10 : vector<16x256xf32>
    %12 = arith.addf %5, %11 : vector<16x256xf32>
    %c0_8 = arith.constant 0 : index
    %c2 = arith.constant 2 : index
    %13 = vector.load %arg2[%c0_8, %c2] : memref<16x3xf32, #tpu.memory_space<vmem>>, vector<16x1xf32>
    %c0_9 = arith.constant 0 : index
    %c2_10 = arith.constant 2 : index
    %c0_11 = arith.constant 0 : index
    %14 = vector.load %arg1[%c0_9, %c2_10, %c0_11] : memref<1x3x256xf32, #tpu.memory_space<vmem>>, vector<1x1x256xf32>
    %15 = vector.shape_cast %14 : vector<1x1x256xf32> to vector<1x256xf32>
    %16 = vector.broadcast %13 : vector<16x1xf32> to vector<16x256xf32>
    %17 = vector.broadcast %15 : vector<1x256xf32> to vector<16x256xf32>
    %18 = arith.mulf %16, %17 : vector<16x256xf32>
    %19 = arith.addf %12, %18 : vector<16x256xf32>
    %c0_12 = arith.constant 0 : index
    %c0_13 = arith.constant 0 : index
    %20 = vector.load %arg3[%c0_12, %c0_13] : memref<16x1xf32, #tpu.memory_space<vmem>>, vector<16x1xf32>
    %21 = vector.broadcast %20 : vector<16x1xf32> to vector<16x256xf32>
    %22 = arith.addf %19, %21 : vector<16x256xf32>
    %cst = arith.constant 0.000000e+00 : f32
    %23 = vector.broadcast %cst : f32 to vector<16x256xf32>
    %24 = arith.maximumf %22, %23 : vector<16x256xf32>
    %c0_14 = arith.constant 0 : index
    %c0_15 = arith.constant 0 : index
    %25 = vector.load %arg4[%c0_14, %c0_15] : memref<256x64xf32, #tpu.memory_space<vmem>>, vector<256x64xf32>
    %cst_16 = arith.constant dense<0.000000e+00> : vector<16x64xf32>
    %26 = tpu.matmul %24, %25, %cst_16 {dimension_numbers = #tpu.dot_dimension_numbers<[1], [0], [0], [1], [0, 0, 1, 1], [], []>} : vector<16x256xf32>, vector<256x64xf32>, vector<16x64xf32> -> vector<16x64xf32>
    %c0_17 = arith.constant 0 : index
    %c0_18 = arith.constant 0 : index
    %27 = vector.load %arg5[%c0_17, %c0_18] : memref<24x16xf32, #tpu.memory_space<vmem>>, vector<24x16xf32>
    %cst_19 = arith.constant dense<0.000000e+00> : vector<24x64xf32>
    %28 = tpu.matmul %27, %26, %cst_19 {dimension_numbers = #tpu.dot_dimension_numbers<[1], [0], [0], [1], [0, 0, 1, 1], [], []>} : vector<24x16xf32>, vector<16x64xf32>, vector<24x64xf32> -> vector<24x64xf32>
    %c0_20 = arith.constant 0 : index
    %c0_21 = arith.constant 0 : index
    %29 = vector.load %arg6[%c0_20, %c0_21] : memref<24x1xf32, #tpu.memory_space<vmem>>, vector<24x1xf32>
    %30 = vector.broadcast %29 : vector<24x1xf32> to vector<24x64xf32>
    %31 = arith.addf %28, %30 : vector<24x64xf32>
    %cst_22 = arith.constant 0.000000e+00 : f32
    %32 = vector.broadcast %cst_22 : f32 to vector<24x64xf32>
    %33 = arith.maximumf %31, %32 : vector<24x64xf32>
    %c0_23 = arith.constant 0 : index
    %c0_24 = arith.constant 0 : index
    %34 = vector.load %arg7[%c0_23, %c0_24] : memref<64x16xf32, #tpu.memory_space<vmem>>, vector<64x16xf32>
    %cst_25 = arith.constant dense<0.000000e+00> : vector<24x16xf32>
    %35 = tpu.matmul %33, %34, %cst_25 {dimension_numbers = #tpu.dot_dimension_numbers<[1], [0], [0], [1], [0, 0, 1, 1], [], []>} : vector<24x64xf32>, vector<64x16xf32>, vector<24x16xf32> -> vector<24x16xf32>
    %c0_26 = arith.constant 0 : index
    %c0_27 = arith.constant 0 : index
    %36 = vector.load %arg8[%c0_26, %c0_27] : memref<32x24xf32, #tpu.memory_space<vmem>>, vector<32x24xf32>
    %cst_28 = arith.constant dense<0.000000e+00> : vector<32x16xf32>
    %37 = tpu.matmul %36, %35, %cst_28 {dimension_numbers = #tpu.dot_dimension_numbers<[1], [0], [0], [1], [0, 0, 1, 1], [], []>} : vector<32x24xf32>, vector<24x16xf32>, vector<32x16xf32> -> vector<32x16xf32>
    %c0_29 = arith.constant 0 : index
    %c0_30 = arith.constant 0 : index
    %38 = vector.load %arg9[%c0_29, %c0_30] : memref<32x1xf32, #tpu.memory_space<vmem>>, vector<32x1xf32>
    %39 = vector.broadcast %38 : vector<32x1xf32> to vector<32x16xf32>
    %40 = arith.addf %37, %39 : vector<32x16xf32>
    %cst_31 = arith.constant 0.000000e+00 : f32
    %41 = vector.broadcast %cst_31 : f32 to vector<32x16xf32>
    %42 = arith.maximumf %40, %41 : vector<32x16xf32>
    %c0_32 = arith.constant 0 : index
    %c0_33 = arith.constant 0 : index
    %43 = vector.load %arg10[%c0_32, %c0_33] : memref<16x4xf32, #tpu.memory_space<vmem>>, vector<16x4xf32>
    %cst_34 = arith.constant dense<0.000000e+00> : vector<32x4xf32>
    %44 = tpu.matmul %42, %43, %cst_34 {dimension_numbers = #tpu.dot_dimension_numbers<[1], [0], [0], [1], [0, 0, 1, 1], [], []>} : vector<32x16xf32>, vector<16x4xf32>, vector<32x4xf32> -> vector<32x4xf32>
    %c0_35 = arith.constant 0 : index
    %c0_36 = arith.constant 0 : index
    %45 = vector.load %arg11[%c0_35, %c0_36] : memref<48x32xf32, #tpu.memory_space<vmem>>, vector<48x32xf32>
    %cst_37 = arith.constant dense<0.000000e+00> : vector<48x4xf32>
    %46 = tpu.matmul %45, %44, %cst_37 {dimension_numbers = #tpu.dot_dimension_numbers<[1], [0], [0], [1], [0, 0, 1, 1], [], []>} : vector<48x32xf32>, vector<32x4xf32>, vector<48x4xf32> -> vector<48x4xf32>
    %c0_38 = arith.constant 0 : index
    %c0_39 = arith.constant 0 : index
    %47 = vector.load %arg12[%c0_38, %c0_39] : memref<48x1xf32, #tpu.memory_space<vmem>>, vector<48x1xf32>
    %48 = vector.broadcast %47 : vector<48x1xf32> to vector<48x4xf32>
    %49 = arith.addf %46, %48 : vector<48x4xf32>
    %cst_40 = arith.constant 0.000000e+00 : f32
    %50 = vector.broadcast %cst_40 : f32 to vector<48x4xf32>
    %51 = arith.maximumf %49, %50 : vector<48x4xf32>
    %c0_41 = arith.constant 0 : index
    %c0_42 = arith.constant 0 : index
    %52 = vector.load %arg13[%c0_41, %c0_42] : memref<16x48xf32, #tpu.memory_space<vmem>>, vector<16x48xf32>
    %cst_43 = arith.constant dense<0.000000e+00> : vector<16x4xf32>
    %53 = tpu.matmul %52, %51, %cst_43 {dimension_numbers = #tpu.dot_dimension_numbers<[1], [0], [0], [1], [0, 0, 1, 1], [], []>} : vector<16x48xf32>, vector<48x4xf32>, vector<16x4xf32> -> vector<16x4xf32>
    %c0_44 = arith.constant 0 : index
    %c0_45 = arith.constant 0 : index
    %54 = vector.load %arg14[%c0_44, %c0_45] : memref<16x1xf32, #tpu.memory_space<vmem>>, vector<16x1xf32>
    %55 = vector.broadcast %54 : vector<16x1xf32> to vector<16x4xf32>
    %56 = arith.addf %53, %55 : vector<16x4xf32>
    %cst_46 = arith.constant 0.000000e+00 : f32
    %57 = vector.broadcast %cst_46 : f32 to vector<16x4xf32>
    %58 = arith.maximumf %56, %57 : vector<16x4xf32>
    %c0_47 = arith.constant 0 : index
    %c0_48 = arith.constant 0 : index
    %59 = vector.load %arg15[%c0_47, %c0_48] : memref<16x32xf32, #tpu.memory_space<vmem>>, vector<16x32xf32>
    %cst_49 = arith.constant dense<0.000000e+00> : vector<16x16xf32>
    %60 = tpu.matmul %59, %42, %cst_49 {dimension_numbers = #tpu.dot_dimension_numbers<[1], [0], [0], [1], [0, 0, 1, 1], [], []>} : vector<16x32xf32>, vector<32x16xf32>, vector<16x16xf32> -> vector<16x16xf32>
    %c0_50 = arith.constant 0 : index
    %c0_51 = arith.constant 0 : index
    %61 = vector.load %arg16[%c0_50, %c0_51] : memref<16x1xf32, #tpu.memory_space<vmem>>, vector<16x1xf32>
    %62 = vector.broadcast %61 : vector<16x1xf32> to vector<16x16xf32>
    %63 = arith.addf %60, %62 : vector<16x16xf32>
    %cst_52 = arith.constant 0.000000e+00 : f32
    %64 = vector.broadcast %cst_52 : f32 to vector<16x16xf32>
    %65 = arith.maximumf %63, %64 : vector<16x16xf32>
    %c0_53 = arith.constant 0 : index
    %c0_54 = arith.constant 0 : index
    %66 = vector.load %arg21[%c0_53, %c0_54] : memref<4x16xf32, #tpu.memory_space<vmem>>, vector<4x16xf32>
    %cst_55 = arith.constant dense<0.000000e+00> : vector<16x16xf32>
    %67 = tpu.matmul %58, %66, %cst_55 {dimension_numbers = #tpu.dot_dimension_numbers<[1], [0], [0], [1], [0, 0, 1, 1], [], []>} : vector<16x4xf32>, vector<4x16xf32>, vector<16x16xf32> -> vector<16x16xf32>
    %68 = arith.addf %67, %65 : vector<16x16xf32>
    %c0_56 = arith.constant 0 : index
    %c0_57 = arith.constant 0 : index
    %69 = vector.load %arg30[%c0_56, %c0_57] : memref<16x1xf32, #tpu.memory_space<vmem>>, vector<16x1xf32>
    %c0_58 = arith.constant 0 : index
    %c0_59 = arith.constant 0 : index
    %70 = vector.load %arg29[%c0_58, %c0_59] : memref<16x9xf32, #tpu.memory_space<vmem>>, vector<16x1xf32>
    %c0_60 = arith.constant 0 : index
    %c0_61 = arith.constant 0 : index
    %c0_62 = arith.constant 0 : index
    %71 = vector.load %arg26[%c0_60, %c0_61, %c0_62] : memref<9x16x16xf32, #tpu.memory_space<vmem>>, vector<1x16x16xf32>
    %72 = vector.shape_cast %71 : vector<1x16x16xf32> to vector<16x16xf32>
    %cst_63 = arith.constant dense<0.000000e+00> : vector<16x16xf32>
    %73 = tpu.matmul %68, %72, %cst_63 {dimension_numbers = #tpu.dot_dimension_numbers<[1], [0], [0], [1], [0, 0, 1, 1], [], []>} : vector<16x16xf32>, vector<16x16xf32>, vector<16x16xf32> -> vector<16x16xf32>
    %74 = vector.broadcast %70 : vector<16x1xf32> to vector<16x16xf32>
    %75 = arith.mulf %74, %73 : vector<16x16xf32>
    %76 = vector.broadcast %69 : vector<16x1xf32> to vector<16x16xf32>
    %77 = arith.addf %76, %75 : vector<16x16xf32>
    %c0_64 = arith.constant 0 : index
    %c1_65 = arith.constant 1 : index
    %78 = vector.load %arg29[%c0_64, %c1_65] : memref<16x9xf32, #tpu.memory_space<vmem>>, vector<16x1xf32>
    %c1_66 = arith.constant 1 : index
    %c0_67 = arith.constant 0 : index
    %c0_68 = arith.constant 0 : index
    %79 = vector.load %arg26[%c1_66, %c0_67, %c0_68] : memref<9x16x16xf32, #tpu.memory_space<vmem>>, vector<1x16x16xf32>
    %80 = vector.shape_cast %79 : vector<1x16x16xf32> to vector<16x16xf32>
    %cst_69 = arith.constant dense<0.000000e+00> : vector<16x16xf32>
    %81 = tpu.matmul %68, %80, %cst_69 {dimension_numbers = #tpu.dot_dimension_numbers<[1], [0], [0], [1], [0, 0, 1, 1], [], []>} : vector<16x16xf32>, vector<16x16xf32>, vector<16x16xf32> -> vector<16x16xf32>
    %82 = vector.broadcast %78 : vector<16x1xf32> to vector<16x16xf32>
    %83 = arith.mulf %82, %81 : vector<16x16xf32>
    %84 = arith.addf %77, %83 : vector<16x16xf32>
    %c0_70 = arith.constant 0 : index
    %c2_71 = arith.constant 2 : index
    %85 = vector.load %arg29[%c0_70, %c2_71] : memref<16x9xf32, #tpu.memory_space<vmem>>, vector<16x1xf32>
    %c2_72 = arith.constant 2 : index
    %c0_73 = arith.constant 0 : index
    %c0_74 = arith.constant 0 : index
    %86 = vector.load %arg26[%c2_72, %c0_73, %c0_74] : memref<9x16x16xf32, #tpu.memory_space<vmem>>, vector<1x16x16xf32>
    %87 = vector.shape_cast %86 : vector<1x16x16xf32> to vector<16x16xf32>
    %cst_75 = arith.constant dense<0.000000e+00> : vector<16x16xf32>
    %88 = tpu.matmul %68, %87, %cst_75 {dimension_numbers = #tpu.dot_dimension_numbers<[1], [0], [0], [1], [0, 0, 1, 1], [], []>} : vector<16x16xf32>, vector<16x16xf32>, vector<16x16xf32> -> vector<16x16xf32>
    %89 = vector.broadcast %85 : vector<16x1xf32> to vector<16x16xf32>
    %90 = arith.mulf %89, %88 : vector<16x16xf32>
    %91 = arith.addf %84, %90 : vector<16x16xf32>
    %c0_76 = arith.constant 0 : index
    %c3 = arith.constant 3 : index
    %92 = vector.load %arg29[%c0_76, %c3] : memref<16x9xf32, #tpu.memory_space<vmem>>, vector<16x1xf32>
    %c3_77 = arith.constant 3 : index
    %c0_78 = arith.constant 0 : index
    %c0_79 = arith.constant 0 : index
    %93 = vector.load %arg26[%c3_77, %c0_78, %c0_79] : memref<9x16x16xf32, #tpu.memory_space<vmem>>, vector<1x16x16xf32>
    %94 = vector.shape_cast %93 : vector<1x16x16xf32> to vector<16x16xf32>
    %cst_80 = arith.constant dense<0.000000e+00> : vector<16x16xf32>
    %95 = tpu.matmul %68, %94, %cst_80 {dimension_numbers = #tpu.dot_dimension_numbers<[1], [0], [0], [1], [0, 0, 1, 1], [], []>} : vector<16x16xf32>, vector<16x16xf32>, vector<16x16xf32> -> vector<16x16xf32>
    %96 = vector.broadcast %92 : vector<16x1xf32> to vector<16x16xf32>
    %97 = arith.mulf %96, %95 : vector<16x16xf32>
    %98 = arith.addf %91, %97 : vector<16x16xf32>
    %c0_81 = arith.constant 0 : index
    %c4 = arith.constant 4 : index
    %99 = vector.load %arg29[%c0_81, %c4] : memref<16x9xf32, #tpu.memory_space<vmem>>, vector<16x1xf32>
    %c4_82 = arith.constant 4 : index
    %c0_83 = arith.constant 0 : index
    %c0_84 = arith.constant 0 : index
    %100 = vector.load %arg26[%c4_82, %c0_83, %c0_84] : memref<9x16x16xf32, #tpu.memory_space<vmem>>, vector<1x16x16xf32>
    %101 = vector.shape_cast %100 : vector<1x16x16xf32> to vector<16x16xf32>
    %cst_85 = arith.constant dense<0.000000e+00> : vector<16x16xf32>
    %102 = tpu.matmul %68, %101, %cst_85 {dimension_numbers = #tpu.dot_dimension_numbers<[1], [0], [0], [1], [0, 0, 1, 1], [], []>} : vector<16x16xf32>, vector<16x16xf32>, vector<16x16xf32> -> vector<16x16xf32>
    %103 = vector.broadcast %99 : vector<16x1xf32> to vector<16x16xf32>
    %104 = arith.mulf %103, %102 : vector<16x16xf32>
    %105 = arith.addf %98, %104 : vector<16x16xf32>
    %c0_86 = arith.constant 0 : index
    %c5 = arith.constant 5 : index
    %106 = vector.load %arg29[%c0_86, %c5] : memref<16x9xf32, #tpu.memory_space<vmem>>, vector<16x1xf32>
    %c5_87 = arith.constant 5 : index
    %c0_88 = arith.constant 0 : index
    %c0_89 = arith.constant 0 : index
    %107 = vector.load %arg26[%c5_87, %c0_88, %c0_89] : memref<9x16x16xf32, #tpu.memory_space<vmem>>, vector<1x16x16xf32>
    %108 = vector.shape_cast %107 : vector<1x16x16xf32> to vector<16x16xf32>
    %cst_90 = arith.constant dense<0.000000e+00> : vector<16x16xf32>
    %109 = tpu.matmul %68, %108, %cst_90 {dimension_numbers = #tpu.dot_dimension_numbers<[1], [0], [0], [1], [0, 0, 1, 1], [], []>} : vector<16x16xf32>, vector<16x16xf32>, vector<16x16xf32> -> vector<16x16xf32>
    %110 = vector.broadcast %106 : vector<16x1xf32> to vector<16x16xf32>
    %111 = arith.mulf %110, %109 : vector<16x16xf32>
    %112 = arith.addf %105, %111 : vector<16x16xf32>
    %c0_91 = arith.constant 0 : index
    %c6 = arith.constant 6 : index
    %113 = vector.load %arg29[%c0_91, %c6] : memref<16x9xf32, #tpu.memory_space<vmem>>, vector<16x1xf32>
    %c6_92 = arith.constant 6 : index
    %c0_93 = arith.constant 0 : index
    %c0_94 = arith.constant 0 : index
    %114 = vector.load %arg26[%c6_92, %c0_93, %c0_94] : memref<9x16x16xf32, #tpu.memory_space<vmem>>, vector<1x16x16xf32>
    %115 = vector.shape_cast %114 : vector<1x16x16xf32> to vector<16x16xf32>
    %cst_95 = arith.constant dense<0.000000e+00> : vector<16x16xf32>
    %116 = tpu.matmul %68, %115, %cst_95 {dimension_numbers = #tpu.dot_dimension_numbers<[1], [0], [0], [1], [0, 0, 1, 1], [], []>} : vector<16x16xf32>, vector<16x16xf32>, vector<16x16xf32> -> vector<16x16xf32>
    %117 = vector.broadcast %113 : vector<16x1xf32> to vector<16x16xf32>
    %118 = arith.mulf %117, %116 : vector<16x16xf32>
    %119 = arith.addf %112, %118 : vector<16x16xf32>
    %c0_96 = arith.constant 0 : index
    %c7 = arith.constant 7 : index
    %120 = vector.load %arg29[%c0_96, %c7] : memref<16x9xf32, #tpu.memory_space<vmem>>, vector<16x1xf32>
    %c7_97 = arith.constant 7 : index
    %c0_98 = arith.constant 0 : index
    %c0_99 = arith.constant 0 : index
    %121 = vector.load %arg26[%c7_97, %c0_98, %c0_99] : memref<9x16x16xf32, #tpu.memory_space<vmem>>, vector<1x16x16xf32>
    %122 = vector.shape_cast %121 : vector<1x16x16xf32> to vector<16x16xf32>
    %cst_100 = arith.constant dense<0.000000e+00> : vector<16x16xf32>
    %123 = tpu.matmul %68, %122, %cst_100 {dimension_numbers = #tpu.dot_dimension_numbers<[1], [0], [0], [1], [0, 0, 1, 1], [], []>} : vector<16x16xf32>, vector<16x16xf32>, vector<16x16xf32> -> vector<16x16xf32>
    %124 = vector.broadcast %120 : vector<16x1xf32> to vector<16x16xf32>
    %125 = arith.mulf %124, %123 : vector<16x16xf32>
    %126 = arith.addf %119, %125 : vector<16x16xf32>
    %c0_101 = arith.constant 0 : index
    %c8 = arith.constant 8 : index
    %127 = vector.load %arg29[%c0_101, %c8] : memref<16x9xf32, #tpu.memory_space<vmem>>, vector<16x1xf32>
    %c8_102 = arith.constant 8 : index
    %c0_103 = arith.constant 0 : index
    %c0_104 = arith.constant 0 : index
    %128 = vector.load %arg26[%c8_102, %c0_103, %c0_104] : memref<9x16x16xf32, #tpu.memory_space<vmem>>, vector<1x16x16xf32>
    %129 = vector.shape_cast %128 : vector<1x16x16xf32> to vector<16x16xf32>
    %cst_105 = arith.constant dense<0.000000e+00> : vector<16x16xf32>
    %130 = tpu.matmul %68, %129, %cst_105 {dimension_numbers = #tpu.dot_dimension_numbers<[1], [0], [0], [1], [0, 0, 1, 1], [], []>} : vector<16x16xf32>, vector<16x16xf32>, vector<16x16xf32> -> vector<16x16xf32>
    %131 = vector.broadcast %127 : vector<16x1xf32> to vector<16x16xf32>
    %132 = arith.mulf %131, %130 : vector<16x16xf32>
    %133 = arith.addf %126, %132 : vector<16x16xf32>
    %cst_106 = arith.constant 0.000000e+00 : f32
    %134 = vector.broadcast %cst_106 : f32 to vector<16x16xf32>
    %135 = arith.maximumf %133, %134 : vector<16x16xf32>
    %c0_107 = arith.constant 0 : index
    %c0_108 = arith.constant 0 : index
    %136 = vector.load %arg31[%c0_107, %c0_108] : memref<16x16xf32, #tpu.memory_space<vmem>>, vector<16x16xf32>
    %cst_109 = arith.constant dense<0.000000e+00> : vector<16x16xf32>
    %137 = tpu.matmul %136, %135, %cst_109 {dimension_numbers = #tpu.dot_dimension_numbers<[1], [0], [0], [1], [0, 0, 1, 1], [], []>} : vector<16x16xf32>, vector<16x16xf32>, vector<16x16xf32> -> vector<16x16xf32>
    %c0_110 = arith.constant 0 : index
    %c0_111 = arith.constant 0 : index
    %138 = vector.load %arg32[%c0_110, %c0_111] : memref<16x1xf32, #tpu.memory_space<vmem>>, vector<16x1xf32>
    %139 = vector.broadcast %138 : vector<16x1xf32> to vector<16x16xf32>
    %140 = arith.addf %137, %139 : vector<16x16xf32>
    %cst_112 = arith.constant 0.000000e+00 : f32
    %141 = vector.broadcast %cst_112 : f32 to vector<16x16xf32>
    %142 = arith.maximumf %140, %141 : vector<16x16xf32>
    %c0_113 = arith.constant 0 : index
    %c0_114 = arith.constant 0 : index
    %143 = vector.load %arg17[%c0_113, %c0_114] : memref<16x24xf32, #tpu.memory_space<vmem>>, vector<16x24xf32>
    %cst_115 = arith.constant dense<0.000000e+00> : vector<16x64xf32>
    %144 = tpu.matmul %143, %33, %cst_115 {dimension_numbers = #tpu.dot_dimension_numbers<[1], [0], [0], [1], [0, 0, 1, 1], [], []>} : vector<16x24xf32>, vector<24x64xf32>, vector<16x64xf32> -> vector<16x64xf32>
    %c0_116 = arith.constant 0 : index
    %c0_117 = arith.constant 0 : index
    %145 = vector.load %arg18[%c0_116, %c0_117] : memref<16x1xf32, #tpu.memory_space<vmem>>, vector<16x1xf32>
    %146 = vector.broadcast %145 : vector<16x1xf32> to vector<16x64xf32>
    %147 = arith.addf %144, %146 : vector<16x64xf32>
    %cst_118 = arith.constant 0.000000e+00 : f32
    %148 = vector.broadcast %cst_118 : f32 to vector<16x64xf32>
    %149 = arith.maximumf %147, %148 : vector<16x64xf32>
    %c0_119 = arith.constant 0 : index
    %c0_120 = arith.constant 0 : index
    %150 = vector.load %arg22[%c0_119, %c0_120] : memref<16x64xf32, #tpu.memory_space<vmem>>, vector<16x64xf32>
    %cst_121 = arith.constant dense<0.000000e+00> : vector<16x64xf32>
    %151 = tpu.matmul %142, %150, %cst_121 {dimension_numbers = #tpu.dot_dimension_numbers<[1], [0], [0], [1], [0, 0, 1, 1], [], []>} : vector<16x16xf32>, vector<16x64xf32>, vector<16x64xf32> -> vector<16x64xf32>
    %152 = arith.addf %151, %149 : vector<16x64xf32>
    %c0_122 = arith.constant 0 : index
    %c0_123 = arith.constant 0 : index
    %153 = vector.load %arg34[%c0_122, %c0_123] : memref<16x1xf32, #tpu.memory_space<vmem>>, vector<16x1xf32>
    %c0_124 = arith.constant 0 : index
    %c0_125 = arith.constant 0 : index
    %154 = vector.load %arg33[%c0_124, %c0_125] : memref<16x9xf32, #tpu.memory_space<vmem>>, vector<16x1xf32>
    %c0_126 = arith.constant 0 : index
    %c0_127 = arith.constant 0 : index
    %c0_128 = arith.constant 0 : index
    %155 = vector.load %arg27[%c0_126, %c0_127, %c0_128] : memref<9x64x64xf32, #tpu.memory_space<vmem>>, vector<1x64x64xf32>
    %156 = vector.shape_cast %155 : vector<1x64x64xf32> to vector<64x64xf32>
    %cst_129 = arith.constant dense<0.000000e+00> : vector<16x64xf32>
    %157 = tpu.matmul %152, %156, %cst_129 {dimension_numbers = #tpu.dot_dimension_numbers<[1], [0], [0], [1], [0, 0, 1, 1], [], []>} : vector<16x64xf32>, vector<64x64xf32>, vector<16x64xf32> -> vector<16x64xf32>
    %158 = vector.broadcast %154 : vector<16x1xf32> to vector<16x64xf32>
    %159 = arith.mulf %158, %157 : vector<16x64xf32>
    %160 = vector.broadcast %153 : vector<16x1xf32> to vector<16x64xf32>
    %161 = arith.addf %160, %159 : vector<16x64xf32>
    %c0_130 = arith.constant 0 : index
    %c1_131 = arith.constant 1 : index
    %162 = vector.load %arg33[%c0_130, %c1_131] : memref<16x9xf32, #tpu.memory_space<vmem>>, vector<16x1xf32>
    %c1_132 = arith.constant 1 : index
    %c0_133 = arith.constant 0 : index
    %c0_134 = arith.constant 0 : index
    %163 = vector.load %arg27[%c1_132, %c0_133, %c0_134] : memref<9x64x64xf32, #tpu.memory_space<vmem>>, vector<1x64x64xf32>
    %164 = vector.shape_cast %163 : vector<1x64x64xf32> to vector<64x64xf32>
    %cst_135 = arith.constant dense<0.000000e+00> : vector<16x64xf32>
    %165 = tpu.matmul %152, %164, %cst_135 {dimension_numbers = #tpu.dot_dimension_numbers<[1], [0], [0], [1], [0, 0, 1, 1], [], []>} : vector<16x64xf32>, vector<64x64xf32>, vector<16x64xf32> -> vector<16x64xf32>
    %166 = vector.broadcast %162 : vector<16x1xf32> to vector<16x64xf32>
    %167 = arith.mulf %166, %165 : vector<16x64xf32>
    %168 = arith.addf %161, %167 : vector<16x64xf32>
    %c0_136 = arith.constant 0 : index
    %c2_137 = arith.constant 2 : index
    %169 = vector.load %arg33[%c0_136, %c2_137] : memref<16x9xf32, #tpu.memory_space<vmem>>, vector<16x1xf32>
    %c2_138 = arith.constant 2 : index
    %c0_139 = arith.constant 0 : index
    %c0_140 = arith.constant 0 : index
    %170 = vector.load %arg27[%c2_138, %c0_139, %c0_140] : memref<9x64x64xf32, #tpu.memory_space<vmem>>, vector<1x64x64xf32>
    %171 = vector.shape_cast %170 : vector<1x64x64xf32> to vector<64x64xf32>
    %cst_141 = arith.constant dense<0.000000e+00> : vector<16x64xf32>
    %172 = tpu.matmul %152, %171, %cst_141 {dimension_numbers = #tpu.dot_dimension_numbers<[1], [0], [0], [1], [0, 0, 1, 1], [], []>} : vector<16x64xf32>, vector<64x64xf32>, vector<16x64xf32> -> vector<16x64xf32>
    %173 = vector.broadcast %169 : vector<16x1xf32> to vector<16x64xf32>
    %174 = arith.mulf %173, %172 : vector<16x64xf32>
    %175 = arith.addf %168, %174 : vector<16x64xf32>
    %c0_142 = arith.constant 0 : index
    %c3_143 = arith.constant 3 : index
    %176 = vector.load %arg33[%c0_142, %c3_143] : memref<16x9xf32, #tpu.memory_space<vmem>>, vector<16x1xf32>
    %c3_144 = arith.constant 3 : index
    %c0_145 = arith.constant 0 : index
    %c0_146 = arith.constant 0 : index
    %177 = vector.load %arg27[%c3_144, %c0_145, %c0_146] : memref<9x64x64xf32, #tpu.memory_space<vmem>>, vector<1x64x64xf32>
    %178 = vector.shape_cast %177 : vector<1x64x64xf32> to vector<64x64xf32>
    %cst_147 = arith.constant dense<0.000000e+00> : vector<16x64xf32>
    %179 = tpu.matmul %152, %178, %cst_147 {dimension_numbers = #tpu.dot_dimension_numbers<[1], [0], [0], [1], [0, 0, 1, 1], [], []>} : vector<16x64xf32>, vector<64x64xf32>, vector<16x64xf32> -> vector<16x64xf32>
    %180 = vector.broadcast %176 : vector<16x1xf32> to vector<16x64xf32>
    %181 = arith.mulf %180, %179 : vector<16x64xf32>
    %182 = arith.addf %175, %181 : vector<16x64xf32>
    %c0_148 = arith.constant 0 : index
    %c4_149 = arith.constant 4 : index
    %183 = vector.load %arg33[%c0_148, %c4_149] : memref<16x9xf32, #tpu.memory_space<vmem>>, vector<16x1xf32>
    %c4_150 = arith.constant 4 : index
    %c0_151 = arith.constant 0 : index
    %c0_152 = arith.constant 0 : index
    %184 = vector.load %arg27[%c4_150, %c0_151, %c0_152] : memref<9x64x64xf32, #tpu.memory_space<vmem>>, vector<1x64x64xf32>
    %185 = vector.shape_cast %184 : vector<1x64x64xf32> to vector<64x64xf32>
    %cst_153 = arith.constant dense<0.000000e+00> : vector<16x64xf32>
    %186 = tpu.matmul %152, %185, %cst_153 {dimension_numbers = #tpu.dot_dimension_numbers<[1], [0], [0], [1], [0, 0, 1, 1], [], []>} : vector<16x64xf32>, vector<64x64xf32>, vector<16x64xf32> -> vector<16x64xf32>
    %187 = vector.broadcast %183 : vector<16x1xf32> to vector<16x64xf32>
    %188 = arith.mulf %187, %186 : vector<16x64xf32>
    %189 = arith.addf %182, %188 : vector<16x64xf32>
    %c0_154 = arith.constant 0 : index
    %c5_155 = arith.constant 5 : index
    %190 = vector.load %arg33[%c0_154, %c5_155] : memref<16x9xf32, #tpu.memory_space<vmem>>, vector<16x1xf32>
    %c5_156 = arith.constant 5 : index
    %c0_157 = arith.constant 0 : index
    %c0_158 = arith.constant 0 : index
    %191 = vector.load %arg27[%c5_156, %c0_157, %c0_158] : memref<9x64x64xf32, #tpu.memory_space<vmem>>, vector<1x64x64xf32>
    %192 = vector.shape_cast %191 : vector<1x64x64xf32> to vector<64x64xf32>
    %cst_159 = arith.constant dense<0.000000e+00> : vector<16x64xf32>
    %193 = tpu.matmul %152, %192, %cst_159 {dimension_numbers = #tpu.dot_dimension_numbers<[1], [0], [0], [1], [0, 0, 1, 1], [], []>} : vector<16x64xf32>, vector<64x64xf32>, vector<16x64xf32> -> vector<16x64xf32>
    %194 = vector.broadcast %190 : vector<16x1xf32> to vector<16x64xf32>
    %195 = arith.mulf %194, %193 : vector<16x64xf32>
    %196 = arith.addf %189, %195 : vector<16x64xf32>
    %c0_160 = arith.constant 0 : index
    %c6_161 = arith.constant 6 : index
    %197 = vector.load %arg33[%c0_160, %c6_161] : memref<16x9xf32, #tpu.memory_space<vmem>>, vector<16x1xf32>
    %c6_162 = arith.constant 6 : index
    %c0_163 = arith.constant 0 : index
    %c0_164 = arith.constant 0 : index
    %198 = vector.load %arg27[%c6_162, %c0_163, %c0_164] : memref<9x64x64xf32, #tpu.memory_space<vmem>>, vector<1x64x64xf32>
    %199 = vector.shape_cast %198 : vector<1x64x64xf32> to vector<64x64xf32>
    %cst_165 = arith.constant dense<0.000000e+00> : vector<16x64xf32>
    %200 = tpu.matmul %152, %199, %cst_165 {dimension_numbers = #tpu.dot_dimension_numbers<[1], [0], [0], [1], [0, 0, 1, 1], [], []>} : vector<16x64xf32>, vector<64x64xf32>, vector<16x64xf32> -> vector<16x64xf32>
    %201 = vector.broadcast %197 : vector<16x1xf32> to vector<16x64xf32>
    %202 = arith.mulf %201, %200 : vector<16x64xf32>
    %203 = arith.addf %196, %202 : vector<16x64xf32>
    %c0_166 = arith.constant 0 : index
    %c7_167 = arith.constant 7 : index
    %204 = vector.load %arg33[%c0_166, %c7_167] : memref<16x9xf32, #tpu.memory_space<vmem>>, vector<16x1xf32>
    %c7_168 = arith.constant 7 : index
    %c0_169 = arith.constant 0 : index
    %c0_170 = arith.constant 0 : index
    %205 = vector.load %arg27[%c7_168, %c0_169, %c0_170] : memref<9x64x64xf32, #tpu.memory_space<vmem>>, vector<1x64x64xf32>
    %206 = vector.shape_cast %205 : vector<1x64x64xf32> to vector<64x64xf32>
    %cst_171 = arith.constant dense<0.000000e+00> : vector<16x64xf32>
    %207 = tpu.matmul %152, %206, %cst_171 {dimension_numbers = #tpu.dot_dimension_numbers<[1], [0], [0], [1], [0, 0, 1, 1], [], []>} : vector<16x64xf32>, vector<64x64xf32>, vector<16x64xf32> -> vector<16x64xf32>
    %208 = vector.broadcast %204 : vector<16x1xf32> to vector<16x64xf32>
    %209 = arith.mulf %208, %207 : vector<16x64xf32>
    %210 = arith.addf %203, %209 : vector<16x64xf32>
    %c0_172 = arith.constant 0 : index
    %c8_173 = arith.constant 8 : index
    %211 = vector.load %arg33[%c0_172, %c8_173] : memref<16x9xf32, #tpu.memory_space<vmem>>, vector<16x1xf32>
    %c8_174 = arith.constant 8 : index
    %c0_175 = arith.constant 0 : index
    %c0_176 = arith.constant 0 : index
    %212 = vector.load %arg27[%c8_174, %c0_175, %c0_176] : memref<9x64x64xf32, #tpu.memory_space<vmem>>, vector<1x64x64xf32>
    %213 = vector.shape_cast %212 : vector<1x64x64xf32> to vector<64x64xf32>
    %cst_177 = arith.constant dense<0.000000e+00> : vector<16x64xf32>
    %214 = tpu.matmul %152, %213, %cst_177 {dimension_numbers = #tpu.dot_dimension_numbers<[1], [0], [0], [1], [0, 0, 1, 1], [], []>} : vector<16x64xf32>, vector<64x64xf32>, vector<16x64xf32> -> vector<16x64xf32>
    %215 = vector.broadcast %211 : vector<16x1xf32> to vector<16x64xf32>
    %216 = arith.mulf %215, %214 : vector<16x64xf32>
    %217 = arith.addf %210, %216 : vector<16x64xf32>
    %cst_178 = arith.constant 0.000000e+00 : f32
    %218 = vector.broadcast %cst_178 : f32 to vector<16x64xf32>
    %219 = arith.maximumf %217, %218 : vector<16x64xf32>
    %c0_179 = arith.constant 0 : index
    %c0_180 = arith.constant 0 : index
    %220 = vector.load %arg35[%c0_179, %c0_180] : memref<16x16xf32, #tpu.memory_space<vmem>>, vector<16x16xf32>
    %cst_181 = arith.constant dense<0.000000e+00> : vector<16x64xf32>
    %221 = tpu.matmul %220, %219, %cst_181 {dimension_numbers = #tpu.dot_dimension_numbers<[1], [0], [0], [1], [0, 0, 1, 1], [], []>} : vector<16x16xf32>, vector<16x64xf32>, vector<16x64xf32> -> vector<16x64xf32>
    %c0_182 = arith.constant 0 : index
    %c0_183 = arith.constant 0 : index
    %222 = vector.load %arg36[%c0_182, %c0_183] : memref<16x1xf32, #tpu.memory_space<vmem>>, vector<16x1xf32>
    %223 = vector.broadcast %222 : vector<16x1xf32> to vector<16x64xf32>
    %224 = arith.addf %221, %223 : vector<16x64xf32>
    %cst_184 = arith.constant 0.000000e+00 : f32
    %225 = vector.broadcast %cst_184 : f32 to vector<16x64xf32>
    %226 = arith.maximumf %224, %225 : vector<16x64xf32>
    %c0_185 = arith.constant 0 : index
    %c0_186 = arith.constant 0 : index
    %227 = vector.load %arg19[%c0_185, %c0_186] : memref<16x16xf32, #tpu.memory_space<vmem>>, vector<16x16xf32>
    %cst_187 = arith.constant dense<0.000000e+00> : vector<16x256xf32>
    %228 = tpu.matmul %227, %24, %cst_187 {dimension_numbers = #tpu.dot_dimension_numbers<[1], [0], [0], [1], [0, 0, 1, 1], [], []>} : vector<16x16xf32>, vector<16x256xf32>, vector<16x256xf32> -> vector<16x256xf32>
    %c0_188 = arith.constant 0 : index
    %c0_189 = arith.constant 0 : index
    %229 = vector.load %arg20[%c0_188, %c0_189] : memref<16x1xf32, #tpu.memory_space<vmem>>, vector<16x1xf32>
    %230 = vector.broadcast %229 : vector<16x1xf32> to vector<16x256xf32>
    %231 = arith.addf %228, %230 : vector<16x256xf32>
    %cst_190 = arith.constant 0.000000e+00 : f32
    %232 = vector.broadcast %cst_190 : f32 to vector<16x256xf32>
    %233 = arith.maximumf %231, %232 : vector<16x256xf32>
    %c0_191 = arith.constant 0 : index
    %c0_192 = arith.constant 0 : index
    %234 = vector.load %arg23[%c0_191, %c0_192] : memref<64x256xf32, #tpu.memory_space<vmem>>, vector<64x256xf32>
    %cst_193 = arith.constant dense<0.000000e+00> : vector<16x256xf32>
    %235 = tpu.matmul %226, %234, %cst_193 {dimension_numbers = #tpu.dot_dimension_numbers<[1], [0], [0], [1], [0, 0, 1, 1], [], []>} : vector<16x64xf32>, vector<64x256xf32>, vector<16x256xf32> -> vector<16x256xf32>
    %236 = arith.addf %235, %233 : vector<16x256xf32>
    %c0_194 = arith.constant 0 : index
    %c0_195 = arith.constant 0 : index
    %237 = vector.load %arg38[%c0_194, %c0_195] : memref<16x1xf32, #tpu.memory_space<vmem>>, vector<16x1xf32>
    %c0_196 = arith.constant 0 : index
    %c0_197 = arith.constant 0 : index
    %238 = vector.load %arg37[%c0_196, %c0_197] : memref<16x9xf32, #tpu.memory_space<vmem>>, vector<16x1xf32>
    %c0_198 = arith.constant 0 : index
    %c0_199 = arith.constant 0 : index
    %c0_200 = arith.constant 0 : index
    %239 = vector.load %arg28[%c0_198, %c0_199, %c0_200] : memref<9x256x256xf32, #tpu.memory_space<vmem>>, vector<1x256x256xf32>
    %240 = vector.shape_cast %239 : vector<1x256x256xf32> to vector<256x256xf32>
    %cst_201 = arith.constant dense<0.000000e+00> : vector<16x256xf32>
    %241 = tpu.matmul %236, %240, %cst_201 {dimension_numbers = #tpu.dot_dimension_numbers<[1], [0], [0], [1], [0, 0, 1, 1], [], []>} : vector<16x256xf32>, vector<256x256xf32>, vector<16x256xf32> -> vector<16x256xf32>
    %242 = vector.broadcast %238 : vector<16x1xf32> to vector<16x256xf32>
    %243 = arith.mulf %242, %241 : vector<16x256xf32>
    %244 = vector.broadcast %237 : vector<16x1xf32> to vector<16x256xf32>
    %245 = arith.addf %244, %243 : vector<16x256xf32>
    %c0_202 = arith.constant 0 : index
    %c1_203 = arith.constant 1 : index
    %246 = vector.load %arg37[%c0_202, %c1_203] : memref<16x9xf32, #tpu.memory_space<vmem>>, vector<16x1xf32>
    %c1_204 = arith.constant 1 : index
    %c0_205 = arith.constant 0 : index
    %c0_206 = arith.constant 0 : index
    %247 = vector.load %arg28[%c1_204, %c0_205, %c0_206] : memref<9x256x256xf32, #tpu.memory_space<vmem>>, vector<1x256x256xf32>
    %248 = vector.shape_cast %247 : vector<1x256x256xf32> to vector<256x256xf32>
    %cst_207 = arith.constant dense<0.000000e+00> : vector<16x256xf32>
    %249 = tpu.matmul %236, %248, %cst_207 {dimension_numbers = #tpu.dot_dimension_numbers<[1], [0], [0], [1], [0, 0, 1, 1], [], []>} : vector<16x256xf32>, vector<256x256xf32>, vector<16x256xf32> -> vector<16x256xf32>
    %250 = vector.broadcast %246 : vector<16x1xf32> to vector<16x256xf32>
    %251 = arith.mulf %250, %249 : vector<16x256xf32>
    %252 = arith.addf %245, %251 : vector<16x256xf32>
    %c0_208 = arith.constant 0 : index
    %c2_209 = arith.constant 2 : index
    %253 = vector.load %arg37[%c0_208, %c2_209] : memref<16x9xf32, #tpu.memory_space<vmem>>, vector<16x1xf32>
    %c2_210 = arith.constant 2 : index
    %c0_211 = arith.constant 0 : index
    %c0_212 = arith.constant 0 : index
    %254 = vector.load %arg28[%c2_210, %c0_211, %c0_212] : memref<9x256x256xf32, #tpu.memory_space<vmem>>, vector<1x256x256xf32>
    %255 = vector.shape_cast %254 : vector<1x256x256xf32> to vector<256x256xf32>
    %cst_213 = arith.constant dense<0.000000e+00> : vector<16x256xf32>
    %256 = tpu.matmul %236, %255, %cst_213 {dimension_numbers = #tpu.dot_dimension_numbers<[1], [0], [0], [1], [0, 0, 1, 1], [], []>} : vector<16x256xf32>, vector<256x256xf32>, vector<16x256xf32> -> vector<16x256xf32>
    %257 = vector.broadcast %253 : vector<16x1xf32> to vector<16x256xf32>
    %258 = arith.mulf %257, %256 : vector<16x256xf32>
    %259 = arith.addf %252, %258 : vector<16x256xf32>
    %c0_214 = arith.constant 0 : index
    %c3_215 = arith.constant 3 : index
    %260 = vector.load %arg37[%c0_214, %c3_215] : memref<16x9xf32, #tpu.memory_space<vmem>>, vector<16x1xf32>
    %c3_216 = arith.constant 3 : index
    %c0_217 = arith.constant 0 : index
    %c0_218 = arith.constant 0 : index
    %261 = vector.load %arg28[%c3_216, %c0_217, %c0_218] : memref<9x256x256xf32, #tpu.memory_space<vmem>>, vector<1x256x256xf32>
    %262 = vector.shape_cast %261 : vector<1x256x256xf32> to vector<256x256xf32>
    %cst_219 = arith.constant dense<0.000000e+00> : vector<16x256xf32>
    %263 = tpu.matmul %236, %262, %cst_219 {dimension_numbers = #tpu.dot_dimension_numbers<[1], [0], [0], [1], [0, 0, 1, 1], [], []>} : vector<16x256xf32>, vector<256x256xf32>, vector<16x256xf32> -> vector<16x256xf32>
    %264 = vector.broadcast %260 : vector<16x1xf32> to vector<16x256xf32>
    %265 = arith.mulf %264, %263 : vector<16x256xf32>
    %266 = arith.addf %259, %265 : vector<16x256xf32>
    %c0_220 = arith.constant 0 : index
    %c4_221 = arith.constant 4 : index
    %267 = vector.load %arg37[%c0_220, %c4_221] : memref<16x9xf32, #tpu.memory_space<vmem>>, vector<16x1xf32>
    %c4_222 = arith.constant 4 : index
    %c0_223 = arith.constant 0 : index
    %c0_224 = arith.constant 0 : index
    %268 = vector.load %arg28[%c4_222, %c0_223, %c0_224] : memref<9x256x256xf32, #tpu.memory_space<vmem>>, vector<1x256x256xf32>
    %269 = vector.shape_cast %268 : vector<1x256x256xf32> to vector<256x256xf32>
    %cst_225 = arith.constant dense<0.000000e+00> : vector<16x256xf32>
    %270 = tpu.matmul %236, %269, %cst_225 {dimension_numbers = #tpu.dot_dimension_numbers<[1], [0], [0], [1], [0, 0, 1, 1], [], []>} : vector<16x256xf32>, vector<256x256xf32>, vector<16x256xf32> -> vector<16x256xf32>
    %271 = vector.broadcast %267 : vector<16x1xf32> to vector<16x256xf32>
    %272 = arith.mulf %271, %270 : vector<16x256xf32>
    %273 = arith.addf %266, %272 : vector<16x256xf32>
    %c0_226 = arith.constant 0 : index
    %c5_227 = arith.constant 5 : index
    %274 = vector.load %arg37[%c0_226, %c5_227] : memref<16x9xf32, #tpu.memory_space<vmem>>, vector<16x1xf32>
    %c5_228 = arith.constant 5 : index
    %c0_229 = arith.constant 0 : index
    %c0_230 = arith.constant 0 : index
    %275 = vector.load %arg28[%c5_228, %c0_229, %c0_230] : memref<9x256x256xf32, #tpu.memory_space<vmem>>, vector<1x256x256xf32>
    %276 = vector.shape_cast %275 : vector<1x256x256xf32> to vector<256x256xf32>
    %cst_231 = arith.constant dense<0.000000e+00> : vector<16x256xf32>
    %277 = tpu.matmul %236, %276, %cst_231 {dimension_numbers = #tpu.dot_dimension_numbers<[1], [0], [0], [1], [0, 0, 1, 1], [], []>} : vector<16x256xf32>, vector<256x256xf32>, vector<16x256xf32> -> vector<16x256xf32>
    %278 = vector.broadcast %274 : vector<16x1xf32> to vector<16x256xf32>
    %279 = arith.mulf %278, %277 : vector<16x256xf32>
    %280 = arith.addf %273, %279 : vector<16x256xf32>
    %c0_232 = arith.constant 0 : index
    %c6_233 = arith.constant 6 : index
    %281 = vector.load %arg37[%c0_232, %c6_233] : memref<16x9xf32, #tpu.memory_space<vmem>>, vector<16x1xf32>
    %c6_234 = arith.constant 6 : index
    %c0_235 = arith.constant 0 : index
    %c0_236 = arith.constant 0 : index
    %282 = vector.load %arg28[%c6_234, %c0_235, %c0_236] : memref<9x256x256xf32, #tpu.memory_space<vmem>>, vector<1x256x256xf32>
    %283 = vector.shape_cast %282 : vector<1x256x256xf32> to vector<256x256xf32>
    %cst_237 = arith.constant dense<0.000000e+00> : vector<16x256xf32>
    %284 = tpu.matmul %236, %283, %cst_237 {dimension_numbers = #tpu.dot_dimension_numbers<[1], [0], [0], [1], [0, 0, 1, 1], [], []>} : vector<16x256xf32>, vector<256x256xf32>, vector<16x256xf32> -> vector<16x256xf32>
    %285 = vector.broadcast %281 : vector<16x1xf32> to vector<16x256xf32>
    %286 = arith.mulf %285, %284 : vector<16x256xf32>
    %287 = arith.addf %280, %286 : vector<16x256xf32>
    %c0_238 = arith.constant 0 : index
    %c7_239 = arith.constant 7 : index
    %288 = vector.load %arg37[%c0_238, %c7_239] : memref<16x9xf32, #tpu.memory_space<vmem>>, vector<16x1xf32>
    %c7_240 = arith.constant 7 : index
    %c0_241 = arith.constant 0 : index
    %c0_242 = arith.constant 0 : index
    %289 = vector.load %arg28[%c7_240, %c0_241, %c0_242] : memref<9x256x256xf32, #tpu.memory_space<vmem>>, vector<1x256x256xf32>
    %290 = vector.shape_cast %289 : vector<1x256x256xf32> to vector<256x256xf32>
    %cst_243 = arith.constant dense<0.000000e+00> : vector<16x256xf32>
    %291 = tpu.matmul %236, %290, %cst_243 {dimension_numbers = #tpu.dot_dimension_numbers<[1], [0], [0], [1], [0, 0, 1, 1], [], []>} : vector<16x256xf32>, vector<256x256xf32>, vector<16x256xf32> -> vector<16x256xf32>
    %292 = vector.broadcast %288 : vector<16x1xf32> to vector<16x256xf32>
    %293 = arith.mulf %292, %291 : vector<16x256xf32>
    %294 = arith.addf %287, %293 : vector<16x256xf32>
    %c0_244 = arith.constant 0 : index
    %c8_245 = arith.constant 8 : index
    %295 = vector.load %arg37[%c0_244, %c8_245] : memref<16x9xf32, #tpu.memory_space<vmem>>, vector<16x1xf32>
    %c8_246 = arith.constant 8 : index
    %c0_247 = arith.constant 0 : index
    %c0_248 = arith.constant 0 : index
    %296 = vector.load %arg28[%c8_246, %c0_247, %c0_248] : memref<9x256x256xf32, #tpu.memory_space<vmem>>, vector<1x256x256xf32>
    %297 = vector.shape_cast %296 : vector<1x256x256xf32> to vector<256x256xf32>
    %cst_249 = arith.constant dense<0.000000e+00> : vector<16x256xf32>
    %298 = tpu.matmul %236, %297, %cst_249 {dimension_numbers = #tpu.dot_dimension_numbers<[1], [0], [0], [1], [0, 0, 1, 1], [], []>} : vector<16x256xf32>, vector<256x256xf32>, vector<16x256xf32> -> vector<16x256xf32>
    %299 = vector.broadcast %295 : vector<16x1xf32> to vector<16x256xf32>
    %300 = arith.mulf %299, %298 : vector<16x256xf32>
    %301 = arith.addf %294, %300 : vector<16x256xf32>
    %cst_250 = arith.constant 0.000000e+00 : f32
    %302 = vector.broadcast %cst_250 : f32 to vector<16x256xf32>
    %303 = arith.maximumf %301, %302 : vector<16x256xf32>
    %c0_251 = arith.constant 0 : index
    %c0_252 = arith.constant 0 : index
    %304 = vector.load %arg39[%c0_251, %c0_252] : memref<16x16xf32, #tpu.memory_space<vmem>>, vector<16x16xf32>
    %cst_253 = arith.constant dense<0.000000e+00> : vector<16x256xf32>
    %305 = tpu.matmul %304, %303, %cst_253 {dimension_numbers = #tpu.dot_dimension_numbers<[1], [0], [0], [1], [0, 0, 1, 1], [], []>} : vector<16x16xf32>, vector<16x256xf32>, vector<16x256xf32> -> vector<16x256xf32>
    %c0_254 = arith.constant 0 : index
    %c0_255 = arith.constant 0 : index
    %306 = vector.load %arg40[%c0_254, %c0_255] : memref<16x1xf32, #tpu.memory_space<vmem>>, vector<16x1xf32>
    %307 = vector.broadcast %306 : vector<16x1xf32> to vector<16x256xf32>
    %308 = arith.addf %305, %307 : vector<16x256xf32>
    %cst_256 = arith.constant 0.000000e+00 : f32
    %309 = vector.broadcast %cst_256 : f32 to vector<16x256xf32>
    %310 = arith.maximumf %308, %309 : vector<16x256xf32>
    %c0_257 = arith.constant 0 : index
    %c0_258 = arith.constant 0 : index
    %311 = vector.load %arg23[%c0_257, %c0_258] : memref<64x256xf32, #tpu.memory_space<vmem>>, vector<64x256xf32>
    %cst_259 = arith.constant dense<0.000000e+00> : vector<16x256xf32>
    %312 = tpu.matmul %226, %311, %cst_259 {dimension_numbers = #tpu.dot_dimension_numbers<[1], [0], [0], [1], [0, 0, 1, 1], [], []>} : vector<16x64xf32>, vector<64x256xf32>, vector<16x256xf32> -> vector<16x256xf32>
    %c0_260 = arith.constant 0 : index
    %c0_261 = arith.constant 0 : index
    %313 = vector.load %arg24[%c0_260, %c0_261] : memref<16x256xf32, #tpu.memory_space<vmem>>, vector<16x256xf32>
    %cst_262 = arith.constant dense<0.000000e+00> : vector<16x256xf32>
    %314 = tpu.matmul %142, %313, %cst_262 {dimension_numbers = #tpu.dot_dimension_numbers<[1], [0], [0], [1], [0, 0, 1, 1], [], []>} : vector<16x16xf32>, vector<16x256xf32>, vector<16x256xf32> -> vector<16x256xf32>
    %c0_263 = arith.constant 0 : index
    %c0_264 = arith.constant 0 : index
    %315 = vector.load %arg25[%c0_263, %c0_264] : memref<4x256xf32, #tpu.memory_space<vmem>>, vector<4x256xf32>
    %cst_265 = arith.constant dense<0.000000e+00> : vector<16x256xf32>
    %316 = tpu.matmul %58, %315, %cst_265 {dimension_numbers = #tpu.dot_dimension_numbers<[1], [0], [0], [1], [0, 0, 1, 1], [], []>} : vector<16x4xf32>, vector<4x256xf32>, vector<16x256xf32> -> vector<16x256xf32>
    %317 = tpu.concatenate %310, %312, %314, %316 in 0 : vector<16x256xf32>, vector<16x256xf32>, vector<16x256xf32>, vector<16x256xf32> -> vector<64x256xf32>
    %c0_266 = arith.constant 0 : index
    %c0_267 = arith.constant 0 : index
    %c0_268 = arith.constant 0 : index
    %318 = vector.load %arg41[%c0_266, %c0_267, %c0_268] : memref<1x64x256xf32, #tpu.memory_space<vmem>>, vector<1x64x256xf32>
    %319 = vector.shape_cast %318 : vector<1x64x256xf32> to vector<64x256xf32>
    %320 = vector.shape_cast %317 : vector<64x256xf32> to vector<1x64x256xf32>
    tpu.vector_store %arg41[%c0_266, %c0_267, %c0_268], %320 {strides = array<i32>} : memref<1x64x256xf32, #tpu.memory_space<vmem>>, vector<1x64x256xf32>,
    return
  }
  func.func @transform_0(%arg0: i32) -> (i32, i32, i32) {
    %c0_i32 = arith.constant 0 : i32
    %c0_i32_0 = arith.constant 0 : i32
    %c0_i32_1 = arith.constant 0 : i32
    return %arg0, %c0_i32, %c0_i32_0 : i32, i32, i32
  }
  func.func @transform_1(%arg0: i32) -> (i32, i32) {
    %c0_i32 = arith.constant 0 : i32
    %c0_i32_0 = arith.constant 0 : i32
    %c0_i32_1 = arith.constant 0 : i32
    return %c0_i32, %c0_i32_0 : i32, i32
  }
  func.func @transform_2(%arg0: i32) -> (i32, i32) {
    %c0_i32 = arith.constant 0 : i32
    %c0_i32_0 = arith.constant 0 : i32
    %c0_i32_1 = arith.constant 0 : i32
    return %c0_i32, %c0_i32_0 : i32, i32
  }
  func.func @transform_3(%arg0: i32) -> (i32, i32) {
    %c0_i32 = arith.constant 0 : i32
    %c0_i32_0 = arith.constant 0 : i32
    %c0_i32_1 = arith.constant 0 : i32
    return %c0_i32, %c0_i32_0 : i32, i32
  }
  func.func @transform_4(%arg0: i32) -> (i32, i32) {
    %c0_i32 = arith.constant 0 : i32
    %c0_i32_0 = arith.constant 0 : i32
    %c0_i32_1 = arith.constant 0 : i32
    return %c0_i32, %c0_i32_0 : i32, i32
  }
  func.func @transform_5(%arg0: i32) -> (i32, i32) {
    %c0_i32 = arith.constant 0 : i32
    %c0_i32_0 = arith.constant 0 : i32
    %c0_i32_1 = arith.constant 0 : i32
    return %c0_i32, %c0_i32_0 : i32, i32
  }
  func.func @transform_6(%arg0: i32) -> (i32, i32) {
    %c0_i32 = arith.constant 0 : i32
    %c0_i32_0 = arith.constant 0 : i32
    %c0_i32_1 = arith.constant 0 : i32
    return %c0_i32, %c0_i32_0 : i32, i32
  }
  func.func @transform_7(%arg0: i32) -> (i32, i32) {
    %c0_i32 = arith.constant 0 : i32
    %c0_i32_0 = arith.constant 0 : i32
    %c0_i32_1 = arith.constant 0 : i32
    return %c0_i32, %c0_i32_0 : i32, i32
  }
  func.func @transform_8(%arg0: i32) -> (i32, i32) {
    %c0_i32 = arith.constant 0 : i32
    %c0_i32_0 = arith.constant 0 : i32
    %c0_i32_1 = arith.constant 0 : i32
    return %c0_i32, %c0_i32_0 : i32, i32
  }
  func.func @transform_9(%arg0: i32) -> (i32, i32) {
    %c0_i32 = arith.constant 0 : i32
    %c0_i32_0 = arith.constant 0 : i32
    %c0_i32_1 = arith.constant 0 : i32
    return %c0_i32, %c0_i32_0 : i32, i32
  }
  func.func @transform_10(%arg0: i32) -> (i32, i32) {
    %c0_i32 = arith.constant 0 : i32
    %c0_i32_0 = arith.constant 0 : i32
    %c0_i32_1 = arith.constant 0 : i32
    return %c0_i32, %c0_i32_0 : i32, i32
  }
  func.func @transform_11(%arg0: i32) -> (i32, i32) {
    %c0_i32 = arith.constant 0 : i32
    %c0_i32_0 = arith.constant 0 : i32
    %c0_i32_1 = arith.constant 0 : i32
    return %c0_i32, %c0_i32_0 : i32, i32
  }
  func.func @transform_12(%arg0: i32) -> (i32, i32) {
    %c0_i32 = arith.constant 0 : i32
    %c0_i32_0 = arith.constant 0 : i32
    %c0_i32_1 = arith.constant 0 : i32
    return %c0_i32, %c0_i32_0 : i32, i32
  }
  func.func @transform_13(%arg0: i32) -> (i32, i32) {
    %c0_i32 = arith.constant 0 : i32
    %c0_i32_0 = arith.constant 0 : i32
    %c0_i32_1 = arith.constant 0 : i32
    return %c0_i32, %c0_i32_0 : i32, i32
  }
  func.func @transform_14(%arg0: i32) -> (i32, i32) {
    %c0_i32 = arith.constant 0 : i32
    %c0_i32_0 = arith.constant 0 : i32
    %c0_i32_1 = arith.constant 0 : i32
    return %c0_i32, %c0_i32_0 : i32, i32
  }
  func.func @transform_15(%arg0: i32) -> (i32, i32) {
    %c0_i32 = arith.constant 0 : i32
    %c0_i32_0 = arith.constant 0 : i32
    %c0_i32_1 = arith.constant 0 : i32
    return %c0_i32, %c0_i32_0 : i32, i32
  }
  func.func @transform_16(%arg0: i32) -> (i32, i32) {
    %c0_i32 = arith.constant 0 : i32
    %c0_i32_0 = arith.constant 0 : i32
    %c0_i32_1 = arith.constant 0 : i32
    return %c0_i32, %c0_i32_0 : i32, i32
  }
  func.func @transform_17(%arg0: i32) -> (i32, i32) {
    %c0_i32 = arith.constant 0 : i32
    %c0_i32_0 = arith.constant 0 : i32
    %c0_i32_1 = arith.constant 0 : i32
    return %c0_i32, %c0_i32_0 : i32, i32
  }
  func.func @transform_18(%arg0: i32) -> (i32, i32) {
    %c0_i32 = arith.constant 0 : i32
    %c0_i32_0 = arith.constant 0 : i32
    %c0_i32_1 = arith.constant 0 : i32
    return %c0_i32, %c0_i32_0 : i32, i32
  }
  func.func @transform_19(%arg0: i32) -> (i32, i32) {
    %c0_i32 = arith.constant 0 : i32
    %c0_i32_0 = arith.constant 0 : i32
    %c0_i32_1 = arith.constant 0 : i32
    return %c0_i32, %c0_i32_0 : i32, i32
  }
  func.func @transform_20(%arg0: i32) -> (i32, i32) {
    %c0_i32 = arith.constant 0 : i32
    %c0_i32_0 = arith.constant 0 : i32
    %c0_i32_1 = arith.constant 0 : i32
    return %c0_i32, %c0_i32_0 : i32, i32
  }
  func.func @transform_21(%arg0: i32) -> (i32, i32) {
    %c0_i32 = arith.constant 0 : i32
    %c0_i32_0 = arith.constant 0 : i32
    %c0_i32_1 = arith.constant 0 : i32
    return %c0_i32, %c0_i32_0 : i32, i32
  }
  func.func @transform_22(%arg0: i32) -> (i32, i32) {
    %c0_i32 = arith.constant 0 : i32
    %c0_i32_0 = arith.constant 0 : i32
    %c0_i32_1 = arith.constant 0 : i32
    return %c0_i32, %c0_i32_0 : i32, i32
  }
  func.func @transform_23(%arg0: i32) -> (i32, i32) {
    %c0_i32 = arith.constant 0 : i32
    %c0_i32_0 = arith.constant 0 : i32
    %c0_i32_1 = arith.constant 0 : i32
    return %c0_i32, %c0_i32_0 : i32, i32
  }
  func.func @transform_24(%arg0: i32) -> (i32, i32) {
    %c0_i32 = arith.constant 0 : i32
    %c0_i32_0 = arith.constant 0 : i32
    %c0_i32_1 = arith.constant 0 : i32
    return %c0_i32, %c0_i32_0 : i32, i32
  }
  func.func @transform_25(%arg0: i32) -> (i32, i32, i32) {
    %c0_i32 = arith.constant 0 : i32
    %c0_i32_0 = arith.constant 0 : i32
    %c0_i32_1 = arith.constant 0 : i32
    %c0_i32_2 = arith.constant 0 : i32
    return %c0_i32, %c0_i32_0, %c0_i32_1 : i32, i32, i32
  }
  func.func @transform_26(%arg0: i32) -> (i32, i32, i32) {
    %c0_i32 = arith.constant 0 : i32
    %c0_i32_0 = arith.constant 0 : i32
    %c0_i32_1 = arith.constant 0 : i32
    %c0_i32_2 = arith.constant 0 : i32
    return %c0_i32, %c0_i32_0, %c0_i32_1 : i32, i32, i32
  }
  func.func @transform_27(%arg0: i32) -> (i32, i32, i32) {
    %c0_i32 = arith.constant 0 : i32
    %c0_i32_0 = arith.constant 0 : i32
    %c0_i32_1 = arith.constant 0 : i32
    %c0_i32_2 = arith.constant 0 : i32
    return %c0_i32, %c0_i32_0, %c0_i32_1 : i32, i32, i32
  }
  func.func @transform_28(%arg0: i32) -> (i32, i32) {
    %c0_i32 = arith.constant 0 : i32
    %c0_i32_0 = arith.constant 0 : i32
    %c0_i32_1 = arith.constant 0 : i32
    return %c0_i32, %c0_i32_0 : i32, i32
  }
  func.func @transform_29(%arg0: i32) -> (i32, i32) {
    %c0_i32 = arith.constant 0 : i32
    %c0_i32_0 = arith.constant 0 : i32
    %c0_i32_1 = arith.constant 0 : i32
    return %c0_i32, %c0_i32_0 : i32, i32
  }
  func.func @transform_30(%arg0: i32) -> (i32, i32) {
    %c0_i32 = arith.constant 0 : i32
    %c0_i32_0 = arith.constant 0 : i32
    %c0_i32_1 = arith.constant 0 : i32
    return %c0_i32, %c0_i32_0 : i32, i32
  }
  func.func @transform_31(%arg0: i32) -> (i32, i32) {
    %c0_i32 = arith.constant 0 : i32
    %c0_i32_0 = arith.constant 0 : i32
    %c0_i32_1 = arith.constant 0 : i32
    return %c0_i32, %c0_i32_0 : i32, i32
  }
  func.func @transform_32(%arg0: i32) -> (i32, i32) {
    %c0_i32 = arith.constant 0 : i32
    %c0_i32_0 = arith.constant 0 : i32
    %c0_i32_1 = arith.constant 0 : i32
    return %c0_i32, %c0_i32_0 : i32, i32
  }
  func.func @transform_33(%arg0: i32) -> (i32, i32) {
    %c0_i32 = arith.constant 0 : i32
    %c0_i32_0 = arith.constant 0 : i32
    %c0_i32_1 = arith.constant 0 : i32
    return %c0_i32, %c0_i32_0 : i32, i32
  }
  func.func @transform_34(%arg0: i32) -> (i32, i32) {
    %c0_i32 = arith.constant 0 : i32
    %c0_i32_0 = arith.constant 0 : i32
    %c0_i32_1 = arith.constant 0 : i32
    return %c0_i32, %c0_i32_0 : i32, i32
  }
  func.func @transform_35(%arg0: i32) -> (i32, i32) {
    %c0_i32 = arith.constant 0 : i32
    %c0_i32_0 = arith.constant 0 : i32
    %c0_i32_1 = arith.constant 0 : i32
    return %c0_i32, %c0_i32_0 : i32, i32
  }
  func.func @transform_36(%arg0: i32) -> (i32, i32) {
    %c0_i32 = arith.constant 0 : i32
    %c0_i32_0 = arith.constant 0 : i32
    %c0_i32_1 = arith.constant 0 : i32
    return %c0_i32, %c0_i32_0 : i32, i32
  }
  func.func @transform_37(%arg0: i32) -> (i32, i32) {
    %c0_i32 = arith.constant 0 : i32
    %c0_i32_0 = arith.constant 0 : i32
    %c0_i32_1 = arith.constant 0 : i32
    return %c0_i32, %c0_i32_0 : i32, i32
  }
  func.func @transform_38(%arg0: i32) -> (i32, i32) {
    %c0_i32 = arith.constant 0 : i32
    %c0_i32_0 = arith.constant 0 : i32
    %c0_i32_1 = arith.constant 0 : i32
    return %c0_i32, %c0_i32_0 : i32, i32
  }
  func.func @transform_39(%arg0: i32) -> (i32, i32) {
    %c0_i32 = arith.constant 0 : i32
    %c0_i32_0 = arith.constant 0 : i32
    %c0_i32_1 = arith.constant 0 : i32
    return %c0_i32, %c0_i32_0 : i32, i32
  }
  func.func @transform_40(%arg0: i32) -> (i32, i32, i32) {
    %c0_i32 = arith.constant 0 : i32
    %c0_i32_0 = arith.constant 0 : i32
    %c0_i32_1 = arith.constant 0 : i32
    return %arg0, %c0_i32, %c0_i32_0 : i32, i32, i32
  }
}

</mosaic_0001>

<bundles_post_ra>
// kernel: fpn_backbone_forward.1
= control target key start
LH: loop header
LB: loop body
LE: loop exit
PB: predicated region body
PF: predicated region fallthrough
CT: control target
= control target key end

     0   :  { %s6560_s6 = smov 1   ;;  %s6561_s10 = smov 2   ;;  %s7746_s0 = inlined_call_operand.smem [shape: u32[41], index: -1, kind: input, shape index: {}] }
   0x1   :  { %s6642_s5 = sld [smem:[%s7746_s0]]   ;;  %s6562_s14 = smov 3  }
   0x2   :  { %s6647_s9 = sld [smem:[%s7746_s0 + %s6560_s6]]   ;;  %s6563_s18 = smov 4  }
   0x3   :  { %s6652_s13 = sld [smem:[%s7746_s0 + %s6561_s10]]   ;;  %s6564_s22 = smov 5  }
   0x4   :  { %s6657_s17 = sld [smem:[%s7746_s0 + %s6562_s14]]   ;;  %s6565_s26 = smov 6  }
   0x5   :  { %s6662_s21 = sld [smem:[%s7746_s0 + %s6563_s18]]   ;;  %s6566_s30 = smov 7  }
   0x6   :  { %s6667_s25 = sld [smem:[%s7746_s0 + %s6564_s22]]   ;;  %s6567_s4 = smov 8  }
   0x7   :  { %7791 = sst [smem:[#allocation45_spill]] %s6642_s5  ;;  %s6568_s10 = smov 9  }
   0x8   :  { %7792 = sst [smem:[#allocation46_spill]] %s6647_s9  ;;  %s6569_s15 = smov 10  }
   0x9   :  { %7793 = sst [smem:[#allocation47_spill]] %s6652_s13  ;;  %s6570_s20 = smov 11  }
   0xa   :  { %s6672_s29 = sld [smem:[%s7746_s0 + %s6565_s26]]   ;;  %s6571_s26 = smov 12  }
   0xb   :  { %7794 = sst [smem:[#allocation48_spill]] %s6662_s21  ;;  %s6572_s1 = smov 13  }
   0xc   :  { %7795 = sst [smem:[#allocation49_spill]] %s6667_s25  ;;  %s6573_s7 = smov 14  }
   0xd   :  { %s6677_s3 = sld [smem:[%s7746_s0 + %s6566_s30]]   ;;  %s6575_s22 = smov 16  }
   0xe   :  { %s6682_s8 = sld [smem:[%s7746_s0 + %s6567_s4]]   ;;  %s6576_s28 = smov 17  }
   0xf   :  { %s6687_s14 = sld [smem:[%s7746_s0 + %s6568_s10]]  }
  0x10   :  { %7796 = sst [smem:[#allocation50_spill]] %s6672_s29 }
  0x11   :  { %s6692_s19 = sld [smem:[%s7746_s0 + %s6569_s15]]   ;;  %s6574_s15 = smov 15  }
  0x12   :  { %s6697_s24 = sld [smem:[%s7746_s0 + %s6570_s20]]  }
  0x13   :  { %7797 = sst [smem:[#allocation51_spill]] %s6677_s3 }
  0x14   :  { %7798 = sst [smem:[#allocation52_spill]] %s6682_s8 }
  0x15   :  { %7799 = sst [smem:[#allocation53_spill]] %s6687_s14 }
  0x16   :  { %s6702_s30 = sld [smem:[%s7746_s0 + %s6571_s26]]  }
  0x17   :  { %7800 = sst [smem:[#allocation54_spill]] %s6692_s19 }
  0x18   :  { %7801 = sst [smem:[#allocation55_spill]] %s6697_s24 }
  0x19   :  { %s6707_s6 = sld [smem:[%s7746_s0 + %s6572_s1]]  }
  0x1a   :  { %s6712_s12 = sld [smem:[%s7746_s0 + %s6573_s7]]   ;;  %s6577_s7 = smov 18  }
  0x1b   :  { %s6717_s20 = sld [smem:[%s7746_s0 + %s6574_s15]]   ;;  %s6578_s15 = smov 19  }
  0x1c   :  { %7802 = sst [smem:[#allocation56_spill]] %s6702_s30 }
  0x1d   :  { %s6722_s27 = sld [smem:[%s7746_s0 + %s6575_s22]]   ;;  %s6579_s22 = smov 20  }
  0x1e   :  { %s6727_s4 = sld [smem:[%s7746_s0 + %s6576_s28]]   ;;  %s6580_s28 = smov 21  }
  0x1f   :  { %7803 = sst [smem:[#allocation57_spill]] %s6707_s6 }
  0x20   :  { %7804 = sst [smem:[#allocation58_spill]] %s6712_s12 }
  0x21   :  { %7805 = sst [smem:[#allocation59_spill]] %s6717_s20 }
  0x22   :  { %s6732_s19 = sld [smem:[%s7746_s0 + %s6577_s7]]   ;;  %s6581_s7 = smov 22  }
  0x23   :  { %s6737_s3 = sld [smem:[%s7746_s0 + %s6578_s15]]   ;;  %s6582_s15 = smov 23  }
  0x24   :  { %7806 = sst [smem:[#allocation60_spill]] %s6727_s4 }
  0x25   :  { %s6742_s21 = sld [smem:[%s7746_s0 + %s6579_s22]]   ;;  %s6583_s22 = smov 24  }
  0x26   :  { %s6747_s4 = sld [smem:[%s7746_s0 + %s6580_s28]]   ;;  %s6584_s28 = smov 25  }
  0x27   :  { %s6752_s5 = sld [smem:[%s7746_s0 + %s6581_s7]]   ;;  %s6585_s7 = smov 26  }
  0x28   :  { %s6762_s20 = sld [smem:[%s7746_s0 + %s6583_s22]]   ;;  %s6587_s22 = smov 28  }
  0x29   :  { %7807 = sst [smem:[#allocation61_spill]] %s6737_s3 }
  0x2a   :  { %s6757_s3 = sld [smem:[%s7746_s0 + %s6582_s15]]   ;;  %s6586_s15 = smov 27  }
  0x2b   :  { %s6767_s6 = sld [smem:[%s7746_s0 + %s6584_s28]]   ;;  %s6588_s28 = smov 29  }
  0x2c   :  { %7808 = sst [smem:[#allocation62_spill]] %s6747_s4 }
  0x2d   :  { %7809 = sst [smem:[#allocation63_spill]] %s6752_s5 }
  0x2e   :  { %s6772_s24 = sld [smem:[%s7746_s0 + %s6585_s7]]   ;;  %s6589_s7 = smov 30  }
  0x2f   :  { %s6777_s8 = sld [smem:[%s7746_s0 + %s6586_s15]]   ;;  %s6590_s15 = smov 31  }
  0x30   :  { %7810 = sst [smem:[#allocation64_spill]] %s6757_s3 }
  0x31   :  { %7811 = sst [smem:[#allocation65_spill]] %s6767_s6 }
  0x32   :  { %s6782_s25 = sld [smem:[%s7746_s0 + %s6587_s22]]   ;;  %s6591_s22 = smov 32  }
  0x33   :  { %s6787_s13 = sld [smem:[%s7746_s0 + %s6588_s28]]   ;;  %s6592_s28 = smov 33  }
  0x34   :  { %s6792_s9 = sld [smem:[%s7746_s0 + %s6589_s7]]   ;;  %s6593_s7 = smov 34  }
  0x35   :  { %7812 = sst [smem:[#allocation66_spill]] %s6777_s8 }
  0x36   :  { %s6797_s8 = sld [smem:[%s7746_s0 + %s6590_s15]]   ;;  %s6594_s15 = smov 35  }
  0x37   :  { %s6802_s6 = sld [smem:[%s7746_s0 + %s6591_s22]]   ;;  %s6595_s22 = smov 36  }
  0x38   :  { %s6822_s3 = sld [smem:[%s7746_s0 + %s6595_s22]]   ;;  %s6599_s22 = smov 40  }
  0x39   :  { %7813 = sst [smem:[#allocation67_spill]] %s6787_s13 }
  0x3a   :  { %7814 = sst [smem:[#allocation68_spill]] %s6792_s9 }
  0x3b   :  { %s6807_s13 = sld [smem:[%s7746_s0 + %s6592_s28]]   ;;  %s6596_s28 = smov 37  }
  0x3c   :  { %7815 = sst [smem:[#allocation69_spill]] %s6797_s8 }
  0x3d   :  { %7816 = sst [smem:[#allocation70_spill]] %s6802_s6 }
  0x3e   :  { %s6812_s9 = sld [smem:[%s7746_s0 + %s6593_s7]]   ;;  %s6597_s7 = smov 38  }
  0x3f   :  { %s6817_s8 = sld [smem:[%s7746_s0 + %s6594_s15]]   ;;  %s6598_s15 = smov 39  }
  0x40   :  { %7820 = sst [smem:[#allocation74_spill]] %s6822_s3 }
  0x41   :  { %7817 = sst [smem:[#allocation71_spill]] %s6807_s13 }
  0x42   :  { %s6827_s13 = sld [smem:[%s7746_s0 + %s6596_s28]]  }
  0x43   :  { %s6842_s4 = sld [smem:[%s7746_s0 + %s6599_s22]]  }
  0x44   :  { %7818 = sst [smem:[#allocation72_spill]] %s6812_s9 }
  0x45   :  { %7819 = sst [smem:[#allocation73_spill]] %s6817_s8 }
  0x46   :  { %s6832_s9 = sld [smem:[%s7746_s0 + %s6597_s7]]  }
  0x47   :  { %s6837_s8 = sld [smem:[%s7746_s0 + %s6598_s15]]  }
  0x48   :  { %86 = vsyncpa [#allocation3], 0 }
  0x49   :  { %87 = vsyncpa [#allocation5], 0 }
  0x4a   :  { %88 = vsyncpa [#allocation8], 0 }
  0x4b   :  { %89 = vsyncpa [#allocation11], 0 }
  0x4c   :  { %90 = vsyncpa [#allocation14], 0 }
  0x4d   :  { %91 = vsyncpa [#allocation17], 0 }
  0x4e   :  { %92 = vsyncpa [#allocation20], 0 }
  0x4f   :  { %93 = vsyncpa [#allocation23], 0 }
  0x50   :  { %94 = vsyncpa [#allocation26], 0 }
  0x51   :  { %95 = vsyncpa [#allocation29], 0 }
  0x52   :  { %96 = vsyncpa [#allocation32], 0  ;;  %s6844_s28 = smov 0  }
  0x53 LB: > { %s7821_s14 = sld [smem:[#allocation53_spill]]  ;;  %s6850_s0 = sadd.s32 4294967295, %s6558_s28   ;;  %s6558_s28 = sphi %s6844_s28, %s102_s28  }
  0x54   : > { %s7822_s12 = sld [smem:[#allocation58_spill]]  ;;  %p5369_p0 = scmp.ge.s32.totalorder %s6558_s28, 1 }
  0x55   : > { %s7823_s6 = sld [smem:[#allocation70_spill]]  ;;  %p978_p1 = scmp.lt.s32.totalorder %s6558_s28, 3 }
  0x56   : > { %s7824_s5 = sld [smem:[#allocation63_spill]]  ;;  %p5671_p2 = scmp.eq.s32.totalorder %s6850_s0, 0 }
  0x57   : > { %s7825_s3 = sld [smem:[#allocation74_spill]]  ;;  %p6856_p3 = pnand %p5369_p0, %p978_p1 }
  0x58   : > { %s7826_s30 = sld [smem:[#allocation56_spill]]  ;;  %s6600_s10 = smov [#allocation4]  }
  0x59   : > { %s7827_s29 = sld [smem:[#allocation50_spill]]  ;;  %p5607_p4 = pneg %p6856_p3 }
  0x5a   : > { %7828 = sst [smem:[#allocation75_spill]] %s6558_s28  ;;  %s1017_s11 = sshll.u32 %s6600_s10, 4  ;;  %s1018_s11 = int_to_ptr.vmem [resolvable:$true] %s1017_s11 }
  0x5b   : > { %p6869_p5 = pnand %p5671_p2, %p5607_p4  ;;  %s6601_s16 = smov [#allocation7]  }
  0x5c   : > { %s6873_s18 = sshll.u32 %s6601_s16, 4 }
  0x5d   : > { %7831 = sst [smem:[#allocation76_spill]] %s6873_s18  ;;  %p6880_p7 = pneg %p6869_p5 }
  0x5e   : > { %s1055_s7 = sshll.u32 %s7826_s30, 4  ;;  %s6865_s7 = int_to_ptr.hbm [resolvable:$true] %s1055_s7 }
  0x5f   : > { %s1015_s1 = sshll.u32 %s7827_s29, 4  ;;  %s5885_s28 = scalar_lea.hbm %s7827_s29, 64  ;;  %s6860_s1 = int_to_ptr.hbm [resolvable:$true] %s1015_s1 }
  0x60   : > { %s5878_s23 = sshra.s32 %s6860_s1, 4  ;;  %s5879_s23 = int_to_ptr.hbm [resolvable:$true] %s5878_s23 }
  0x61   : > { %s5880_s26 = scalar_lea.hbm %s5879_s23, 64  ;;  %p5886_p10 = scmp.lt.s32.totalorder %s5879_s23, %s7827_s29 }
  0x62   : > { %p5881_p6 = scmp.ne.s32.totalorder %s5879_s23, %s5880_s26  ;;  %p5887_p11 = scmp.lt.s32.totalorder %s5885_s28, %s5880_s26 }
  0x64   : > { %p5883_p8 = pnand %p6880_p7, %p5881_p6  ;;  %p5888_p12 = por %p5887_p11, %p5886_p10 }
  0x66   : > { %p5884_p9 = pneg %p5883_p8 }
  0x68   : > { %p5889_p13 = pnand %p5888_p12, %p5884_p9 }
  0x6a   : > { %5892 = shalt.err (!%p5889_p13)
}
  0x6b   : > { %s7773_s16 = smov 128   ;;  %s7775_s22 = smov 8  }
  0x6c   : > { %5613 = dma.hbm_to_vmem [thread:$0]  (!%p6869_p5), %s6860_s1, 1024, %s1018_s11, [#allocation5], %s7773_s16, %s7773_s16, %s7775_s22  }
  0x6d   : > { %s5908_s18 = sshra.s32 %s6865_s7, 4  ;;  %s5915_s28 = scalar_lea.hbm %s7826_s30, 16  ;;  %s5909_s18 = int_to_ptr.hbm [resolvable:$true] %s5908_s18 }
  0x6e   : > { %s5910_s23 = scalar_lea.hbm %s5909_s18, 16  ;;  %p5916_p6 = scmp.lt.s32.totalorder %s5909_s18, %s7826_s30 }
  0x6f   : > { %p5911_p0 = scmp.ne.s32.totalorder %s5909_s18, %s5910_s23  ;;  %p5917_p8 = scmp.lt.s32.totalorder %s5915_s28, %s5910_s23 }
  0x71   : > { %p5913_p1 = pnand %p5911_p0, %p6880_p7  ;;  %p5918_p9 = por %p5917_p8, %p5916_p6 }
  0x73   : > { %p5914_p4 = pneg %p5913_p1 }
  0x75   : > { %p5919_p10 = pnand %p5918_p9, %p5914_p4 }
  0x77   : > { %5922 = shalt.err (!%p5919_p10)
}
  0x78   : > { %s7833_s26 = sld [smem:[#allocation76_spill]]  ;;  %s7835_s11 = sshll.u32 %s6722_s27, 4  ;;  %s1090_s11 = int_to_ptr.hbm [resolvable:$true] %s7835_s11 }
  0x79   : > { %s6604_s18 = smov [#allocation10]   ;;  %s1124_s28 = sshll.u32 %s6742_s21, 4  ;;  %s6910_s28 = int_to_ptr.hbm [resolvable:$true] %s1124_s28 }
  0x7a   : > { %s1091_s23 = sshll.u32 %s6604_s18, 4  ;;  %s5938_s29 = sshra.s32 %s1090_s11, 4  ;;  %s1092_s23 = int_to_ptr.vmem [resolvable:$true] %s1091_s23  ;;  %s5939_s29 = int_to_ptr.hbm [resolvable:$true] %s5938_s29 }
  0x7b   : > { %s5940_s30 = scalar_lea.hbm %s5939_s29, 16  ;;  %p5946_p0 = scmp.lt.s32.totalorder %s5939_s29, %s6722_s27 }
  0x7c   : > { %p5941_p11 = scmp.ne.s32.totalorder %s5939_s29, %s5940_s30 }
  0x7e   : > { %s7834_s1 = int_to_ptr.vmem [resolvable:$true] %s7833_s26  ;;  %p5943_p12 = pnand %p5941_p11, %p6880_p7 }
  0x7f   : > { %5619 = dma.hbm_to_vmem [thread:$0]  (!%p6869_p5), %s6865_s7, 256, %s7834_s1, [#allocation8], %s7773_s16, %s7773_s16, %s7775_s22  }
  0x80   : > { %p5944_p13 = pneg %p5943_p12  ;;  %s5945_s26 = scalar_lea.hbm %s6722_s27, 16 }
  0x81   : > { %p5947_p1 = scmp.lt.s32.totalorder %s5945_s26, %s5940_s30 }
  0x83   : > { %p5948_p4 = por %p5947_p1, %p5946_p0 }
  0x85   : > { %p5949_p6 = pnand %p5948_p4, %p5944_p13 }
  0x87   : > { %5952 = shalt.err (!%p5949_p6)
}
  0x88   : > { %5625 = dma.hbm_to_vmem [thread:$0]  (!%p6869_p5), %s1090_s11, 256, %s1092_s23, [#allocation11], %s7773_s16, %s7773_s16, %s7775_s22  }
  0x89   : > { %s1149_s7 = sshll.u32 %s7824_s5, 4  ;;  %s6605_s1 = smov [#allocation13]   ;;  %s6922_s7 = int_to_ptr.hbm [resolvable:$true] %s1149_s7 }
  0x8a   : > { %s1126_s18 = sshll.u32 %s6605_s1, 4  ;;  %s5968_s29 = sshra.s32 %s6910_s28, 4  ;;  %s1127_s18 = int_to_ptr.vmem [resolvable:$true] %s1126_s18  ;;  %s5969_s29 = int_to_ptr.hbm [resolvable:$true] %s5968_s29 }
  0x8b   : > { %s5970_s30 = scalar_lea.hbm %s5969_s29, 4  ;;  %s5975_s26 = scalar_lea.hbm %s6742_s21, 4 }
  0x8c   : > { %p5971_p8 = scmp.ne.s32.totalorder %s5969_s29, %s5970_s30  ;;  %p5976_p11 = scmp.lt.s32.totalorder %s5969_s29, %s6742_s21 }
  0x8d   : > { %p5977_p12 = scmp.lt.s32.totalorder %s5975_s26, %s5970_s30 }
  0x8e   : > { %p5973_p9 = pnand %p5971_p8, %p6880_p7 }
  0x8f   : > { %p5978_p13 = por %p5977_p12, %p5976_p11 }
  0x90   : > { %p5974_p10 = pneg %p5973_p9 }
  0x92   : > { %p5979_p0 = pnand %p5978_p13, %p5974_p10 }
  0x94   : > { %5982 = shalt.err (!%p5979_p0)
}
  0x95   : > { %5631 = dma.hbm_to_vmem [thread:$0]  (!%p6869_p5), %s6910_s28, 64, %s1127_s18, [#allocation14]  }
  0x96   : > { %s6606_s11 = smov [#allocation16]   ;;  %s5998_s1 = sshra.s32 %s6922_s7, 4  ;;  %s5999_s1 = int_to_ptr.hbm [resolvable:$true] %s5998_s1 }
  0x97   : > { %s1151_s23 = sshll.u32 %s6606_s11, 4  ;;  %s6000_s16 = scalar_lea.hbm %s5999_s1, 128  ;;  %s1152_s23 = int_to_ptr.vmem [resolvable:$true] %s1151_s23 }
  0x98   : > { %p6001_p1 = scmp.ne.s32.totalorder %s5999_s1, %s6000_s16  ;;  %s6005_s29 = scalar_lea.hbm %s7824_s5, 128 }
  0x99   : > { %p6006_p8 = scmp.lt.s32.totalorder %s5999_s1, %s7824_s5  ;;  %p6007_p9 = scmp.lt.s32.totalorder %s6005_s29, %s6000_s16 }
  0x9a   : > { %p6003_p4 = pnand %p6001_p1, %p6880_p7 }
  0x9b   : > { %p6008_p10 = por %p6007_p9, %p6006_p8 }
  0x9c   : > { %p6004_p6 = pneg %p6003_p4 }
  0x9e   : > { %p6009_p11 = pnand %p6008_p10, %p6004_p6 }
  0xa0   : > { %6012 = shalt.err (!%p6009_p11)
}
  0xa1   : > { %s7777_s30 = smov 256   ;;  %s7779_s28 = smov 16  }
  0xa2   : > { %5637 = dma.hbm_to_vmem [thread:$0]  (!%p6869_p5), %s6922_s7, 2048, %s1152_s23, [#allocation17], %s7777_s30, %s7777_s30, %s7779_s28  }
  0xa3   : > { %s1178_s18 = sshll.u32 %s6762_s20, 4  ;;  %s6609_s16 = smov [#allocation19]   ;;  %s1179_s18 = int_to_ptr.hbm [resolvable:$true] %s1178_s18 }
  0xa4   : > { %s1180_s26 = sshll.u32 %s6609_s16, 4  ;;  %s1203_s11 = sshll.u32 %s6772_s24, 4  ;;  %s1181_s26 = int_to_ptr.vmem [resolvable:$true] %s1180_s26  ;;  %s1204_s11 = int_to_ptr.hbm [resolvable:$true] %s1203_s11 }
  0xa5   : > { %s6028_s1 = sshra.s32 %s1179_s18, 4  ;;  %s6035_s22 = scalar_lea.hbm %s6762_s20, 8  ;;  %s6029_s1 = int_to_ptr.hbm [resolvable:$true] %s6028_s1 }
  0xa6   : > { %s6030_s29 = scalar_lea.hbm %s6029_s1, 8  ;;  %p6036_p1 = scmp.lt.s32.totalorder %s6029_s1, %s6762_s20 }
  0xa7   : > { %p6031_p12 = scmp.ne.s32.totalorder %s6029_s1, %s6030_s29  ;;  %p6037_p4 = scmp.lt.s32.totalorder %s6035_s22, %s6030_s29 }
  0xa9   : > { %p6033_p13 = pnand %p6031_p12, %p6880_p7  ;;  %p6038_p6 = por %p6037_p4, %p6036_p1 }
  0xab   : > { %p6034_p0 = pneg %p6033_p13 }
  0xad   : > { %p6039_p8 = pnand %p6038_p6, %p6034_p0 }
  0xaf   : > { %6042 = shalt.err (!%p6039_p8)
}
  0xb0   : > { %5643 = dma.hbm_to_vmem [thread:$0]  (!%p6869_p5), %s1179_s18, 128, %s1181_s26, [#allocation20]  }
  0xb1   : > { %s6610_s7 = smov [#allocation22]   ;;  %s1231_s16 = sshll.u32 %s6782_s25, 4  ;;  %s6952_s16 = int_to_ptr.hbm [resolvable:$true] %s1231_s16 }
  0xb2   : > { %s1205_s23 = sshll.u32 %s6610_s7, 4  ;;  %s6058_s30 = sshra.s32 %s1204_s11, 4  ;;  %s1206_s23 = int_to_ptr.vmem [resolvable:$true] %s1205_s23  ;;  %s6059_s30 = int_to_ptr.hbm [resolvable:$true] %s6058_s30 }
  0xb3   : > { %s6060_s22 = scalar_lea.hbm %s6059_s30, 576  ;;  %s6065_s1 = scalar_lea.hbm %s6772_s24, 576 }
  0xb4   : > { %p6061_p9 = scmp.ne.s32.totalorder %s6059_s30, %s6060_s22  ;;  %p6066_p12 = scmp.lt.s32.totalorder %s6059_s30, %s6772_s24 }
  0xb5   : > { %p6067_p13 = scmp.lt.s32.totalorder %s6065_s1, %s6060_s22 }
  0xb6   : > { %p6063_p10 = pnand %p6061_p9, %p6880_p7 }
  0xb7   : > { %p6068_p0 = por %p6067_p13, %p6066_p12 }
  0xb8   : > { %p6064_p11 = pneg %p6063_p10 }
  0xba   : > { %p6069_p1 = pnand %p6068_p0, %p6064_p11 }
  0xbc   : > { %6072 = shalt.err (!%p6069_p1)
}
  0xbd   : > { %s7836_s18 = smov 8   ;;  %s7837_s26 = smov 128  }
  0xbe   : > { %5649 = dma.hbm_to_vmem [thread:$0]  (!%p6869_p5), %s1204_s11, 9216, %s1206_s23, [#allocation23], %s7837_s26, %s7837_s26, %s7836_s18  }
  0xbf   : > { %s1265_s29 = sshll.u32 %s7823_s6, 4  ;;  %s6611_s7 = smov [#allocation25]   ;;  %s6964_s29 = int_to_ptr.hbm [resolvable:$true] %s1265_s29 }
  0xc0   : > { %s1233_s28 = sshll.u32 %s6611_s7, 4  ;;  %s6088_s30 = sshra.s32 %s6952_s16, 4  ;;  %s1234_s28 = int_to_ptr.vmem [resolvable:$true] %s1233_s28  ;;  %s6089_s30 = int_to_ptr.hbm [resolvable:$true] %s6088_s30 }
  0xc1   : > { %s6090_s22 = scalar_lea.hbm %s6089_s30, 16  ;;  %s6095_s1 = scalar_lea.hbm %s6782_s25, 16 }
  0xc2   : > { %p6091_p4 = scmp.ne.s32.totalorder %s6089_s30, %s6090_s22  ;;  %p6096_p9 = scmp.lt.s32.totalorder %s6089_s30, %s6782_s25 }
  0xc3   : > { %p6097_p10 = scmp.lt.s32.totalorder %s6095_s1, %s6090_s22 }
  0xc4   : > { %p6093_p6 = pnand %p6091_p4, %p6880_p7 }
  0xc5   : > { %p6098_p11 = por %p6097_p10, %p6096_p9 }
  0xc6   : > { %p6094_p8 = pneg %p6093_p6 }
  0xc8   : > { %p6099_p12 = pnand %p6098_p11, %p6094_p8 }
  0xca   : > { %6102 = shalt.err (!%p6099_p12)
}
  0xcb   : > { %5655 = dma.hbm_to_vmem [thread:$0]  (!%p6869_p5), %s6952_s16, 256, %s1234_s28, [#allocation26], %s7837_s26, %s7837_s26, %s7836_s18  }
  0xcc   : > { %s6612_s11 = smov [#allocation28]   ;;  %s1299_s7 = sshll.u32 %s7825_s3, 4  ;;  %s6978_s7 = int_to_ptr.hbm [resolvable:$true] %s1299_s7 }
  0xcd   : > { %s1267_s23 = sshll.u32 %s6612_s11, 4  ;;  %s6118_s30 = sshra.s32 %s6964_s29, 4  ;;  %s1268_s23 = int_to_ptr.vmem [resolvable:$true] %s1267_s23  ;;  %s6119_s30 = int_to_ptr.hbm [resolvable:$true] %s6118_s30 }
  0xce   : > { %s6120_s22 = scalar_lea.hbm %s6119_s30, 16  ;;  %s6125_s1 = scalar_lea.hbm %s7823_s6, 16 }
  0xcf   : > { %p6121_p13 = scmp.ne.s32.totalorder %s6119_s30, %s6120_s22  ;;  %p6126_p4 = scmp.lt.s32.totalorder %s6119_s30, %s7823_s6 }
  0xd0   : > { %p6127_p6 = scmp.lt.s32.totalorder %s6125_s1, %s6120_s22 }
  0xd1   : > { %p6123_p0 = pnand %p6121_p13, %p6880_p7 }
  0xd2   : > { %p6128_p8 = por %p6127_p6, %p6126_p4 }
  0xd3   : > { %p6124_p1 = pneg %p6123_p0 }
  0xd5   : > { %p6129_p9 = pnand %p6128_p8, %p6124_p1 }
  0xd7   : > { %6132 = shalt.err (!%p6129_p9)
}
  0xd8   : > { %5661 = dma.hbm_to_vmem [thread:$0]  (!%p6869_p5), %s6964_s29, 256, %s1268_s23, [#allocation29], %s7837_s26, %s7837_s26, %s7836_s18  }
  0xd9   : > { %s995_s28 = sshll.u32 %s6657_s17, 4  ;;  %s6613_s16 = smov [#allocation31]   ;;  %s6992_s28 = int_to_ptr.hbm [resolvable:$true] %s995_s28 }
  0xda   : > { %s1301_s11 = sshll.u32 %s6613_s16, 4  ;;  %s6148_s30 = sshra.s32 %s6978_s7, 4  ;;  %s1302_s11 = int_to_ptr.vmem [resolvable:$true] %s1301_s11  ;;  %s6149_s30 = int_to_ptr.hbm [resolvable:$true] %s6148_s30 }
  0xdb   : > { %s6150_s22 = scalar_lea.hbm %s6149_s30, 16  ;;  %s6155_s1 = scalar_lea.hbm %s7825_s3, 16 }
  0xdc   : > { %p6151_p10 = scmp.ne.s32.totalorder %s6149_s30, %s6150_s22  ;;  %p6156_p13 = scmp.lt.s32.totalorder %s6149_s30, %s7825_s3 }
  0xdd   : > { %p6157_p0 = scmp.lt.s32.totalorder %s6155_s1, %s6150_s22 }
  0xde   : > { %p6153_p11 = pnand %p6151_p10, %p6880_p7 }
  0xdf   : > { %p6158_p1 = por %p6157_p0, %p6156_p13 }
  0xe0   : > { %p6154_p12 = pneg %p6153_p11 }
  0xe2   : > { %p6159_p4 = pnand %p6158_p1, %p6154_p12 }
  0xe4   : > { %6162 = shalt.err (!%p6159_p4)
}
  0xe5   : > { %5667 = dma.hbm_to_vmem [thread:$0]  (!%p6869_p5), %s6978_s7, 256, %s1302_s11, [#allocation32], %s7837_s26, %s7837_s26, %s7836_s18  }
  0xe6   : > { %s6614_s29 = smov [#allocation2]   ;;  %s1035_s16 = sshll.u32 %s7821_s14, 4  ;;  %s7006_s16 = int_to_ptr.hbm [resolvable:$true] %s1035_s16 }
  0xe7   : > { %s997_s23 = sshll.u32 %s6614_s29, 4  ;;  %s6178_s30 = sshra.s32 %s6992_s28, 4  ;;  %s998_s23 = int_to_ptr.vmem [resolvable:$true] %s997_s23  ;;  %s6179_s30 = int_to_ptr.hbm [resolvable:$true] %s6178_s30 }
  0xe8   : > { %s6180_s22 = scalar_lea.hbm %s6179_s30, 256  ;;  %s6185_s1 = scalar_lea.hbm %s6657_s17, 256 }
  0xe9   : > { %p6181_p6 = scmp.ne.s32.totalorder %s6179_s30, %s6180_s22  ;;  %p6186_p10 = scmp.lt.s32.totalorder %s6179_s30, %s6657_s17 }
  0xea   : > { %p6187_p11 = scmp.lt.s32.totalorder %s6185_s1, %s6180_s22 }
  0xeb   : > { %p6183_p8 = pnand %p6181_p6, %p6880_p7 }
  0xec   : > { %p6188_p12 = por %p6187_p11, %p6186_p10 }
  0xed   : > { %p6184_p9 = pneg %p6183_p8 }
  0xef   : > { %p6189_p13 = pnand %p6188_p12, %p6184_p9 }
  0xf1   : > { %6192 = shalt.err (!%p6189_p13)
}
  0xf2   : > { %5610 = dma.hbm_to_vmem [thread:$0]  (!%p6869_p5), %s6992_s28, 4096, %s998_s23, [#allocation3], %s7837_s26, %s7837_s26, %s7836_s18  }
  0xf3   : > { %s1072_s7 = sshll.u32 %s7822_s12, 4  ;;  %s6615_s11 = smov [#allocation6]   ;;  %s7020_s7 = int_to_ptr.hbm [resolvable:$true] %s1072_s7 }
  0xf4   : > { %s1037_s29 = sshll.u32 %s6615_s11, 4  ;;  %s6208_s30 = sshra.s32 %s7006_s16, 4  ;;  %s1038_s29 = int_to_ptr.vmem [resolvable:$true] %s1037_s29  ;;  %s6209_s30 = int_to_ptr.hbm [resolvable:$true] %s6208_s30 }
  0xf5   : > { %s6210_s22 = scalar_lea.hbm %s6209_s30, 16  ;;  %s6215_s1 = scalar_lea.hbm %s7821_s14, 16 }
  0xf6   : > { %p6211_p0 = scmp.ne.s32.totalorder %s6209_s30, %s6210_s22  ;;  %p6216_p6 = scmp.lt.s32.totalorder %s6209_s30, %s7821_s14 }
  0xf7   : > { %p6217_p8 = scmp.lt.s32.totalorder %s6215_s1, %s6210_s22 }
  0xf8   : > { %p6213_p1 = pnand %p6211_p0, %p6880_p7 }
  0xf9   : > { %p6218_p9 = por %p6217_p8, %p6216_p6 }
  0xfa   : > { %p6214_p4 = pneg %p6213_p1 }
  0xfc   : > { %p6219_p10 = pnand %p6218_p9, %p6214_p4 }
  0xfe   : > { %6222 = shalt.err (!%p6219_p10)
}
  0xff   : > { %5616 = dma.hbm_to_vmem [thread:$0]  (!%p6869_p5), %s7006_s16, 256, %s1038_s29, [#allocation5], %s7837_s26, %s7837_s26, %s7836_s18  }
 0x100   : > { %s6616_s28 = smov [#allocation9]   ;;  %s1106_s11 = sshll.u32 %s6732_s19, 4  ;;  %s7034_s11 = int_to_ptr.hbm [resolvable:$true] %s1106_s11 }
 0x101   : > { %s1074_s23 = sshll.u32 %s6616_s28, 4  ;;  %s6238_s30 = sshra.s32 %s7020_s7, 4  ;;  %s1075_s23 = int_to_ptr.vmem [resolvable:$true] %s1074_s23  ;;  %s6239_s30 = int_to_ptr.hbm [resolvable:$true] %s6238_s30 }
 0x102   : > { %s6240_s22 = scalar_lea.hbm %s6239_s30, 16  ;;  %s6245_s1 = scalar_lea.hbm %s7822_s12, 16 }
 0x103   : > { %p6241_p11 = scmp.ne.s32.totalorder %s6239_s30, %s6240_s22  ;;  %p6246_p0 = scmp.lt.s32.totalorder %s6239_s30, %s7822_s12 }
 0x104   : > { %p6247_p1 = scmp.lt.s32.totalorder %s6245_s1, %s6240_s22 }
 0x105   : > { %p6243_p12 = pnand %p6241_p11, %p6880_p7 }
 0x106   : > { %p6248_p4 = por %p6247_p1, %p6246_p0 }
 0x107   : > { %p6244_p13 = pneg %p6243_p12 }
 0x109   : > { %p6249_p6 = pnand %p6248_p4, %p6244_p13 }
 0x10b   : > { %6252 = shalt.err (!%p6249_p6)
}
 0x10c   : > { %s7838_s16 = sld [smem:[#allocation62_spill]]  ;;  %s6617_s28 = smov [#allocation12]  }
 0x10d   : > { %5622 = dma.hbm_to_vmem [thread:$0]  (!%p6869_p5), %s7020_s7, 256, %s1075_s23, [#allocation8], %s7837_s26, %s7837_s26, %s7836_s18  }
 0x10e   : > { %s1108_s3 = sshll.u32 %s6617_s28, 4  ;;  %s6268_s30 = sshra.s32 %s7034_s11, 4  ;;  %s1109_s3 = int_to_ptr.vmem [resolvable:$true] %s1108_s3  ;;  %s6269_s30 = int_to_ptr.hbm [resolvable:$true] %s6268_s30 }
 0x10f   : > { %s6270_s22 = scalar_lea.hbm %s6269_s30, 16  ;;  %s6275_s1 = scalar_lea.hbm %s6732_s19, 16 }
 0x110   : > { %p6271_p8 = scmp.ne.s32.totalorder %s6269_s30, %s6270_s22  ;;  %p6276_p11 = scmp.lt.s32.totalorder %s6269_s30, %s6732_s19 }
 0x111   : > { %p6277_p12 = scmp.lt.s32.totalorder %s6275_s1, %s6270_s22 }
 0x112   : > { %s1135_s29 = sshll.u32 %s7838_s16, 4  ;;  %p6273_p9 = pnand %p6271_p8, %p6880_p7  ;;  %s7048_s29 = int_to_ptr.hbm [resolvable:$true] %s1135_s29 }
 0x113   : > { %p6278_p13 = por %p6277_p12, %p6276_p11 }
 0x114   : > { %p6274_p10 = pneg %p6273_p9 }
 0x116   : > { %p6279_p0 = pnand %p6278_p13, %p6274_p10 }
 0x118   : > { %6282 = shalt.err (!%p6279_p0)
}
 0x119   : > { %s7839_s7 = sld [smem:[#allocation64_spill]]  ;;  %s6618_s23 = smov [#allocation15]  }
 0x11a   : > { %5628 = dma.hbm_to_vmem [thread:$0]  (!%p6869_p5), %s7034_s11, 256, %s1109_s3, [#allocation11], %s7837_s26, %s7837_s26, %s7836_s18  }
 0x11b   : > { %s1137_s28 = sshll.u32 %s6618_s23, 4  ;;  %s6298_s30 = sshra.s32 %s7048_s29, 4  ;;  %s1138_s28 = int_to_ptr.vmem [resolvable:$true] %s1137_s28  ;;  %s6299_s30 = int_to_ptr.hbm [resolvable:$true] %s6298_s30 }
 0x11c   : > { %s6300_s22 = scalar_lea.hbm %s6299_s30, 16  ;;  %s6305_s1 = scalar_lea.hbm %s7838_s16, 16 }
 0x11d   : > { %p6301_p1 = scmp.ne.s32.totalorder %s6299_s30, %s6300_s22  ;;  %p6306_p8 = scmp.lt.s32.totalorder %s6299_s30, %s7838_s16 }
 0x11e   : > { %p6307_p9 = scmp.lt.s32.totalorder %s6305_s1, %s6300_s22 }
 0x11f   : > { %s1163_s5 = sshll.u32 %s7839_s7, 4  ;;  %p6303_p4 = pnand %p6301_p1, %p6880_p7  ;;  %s7062_s5 = int_to_ptr.hbm [resolvable:$true] %s1163_s5 }
 0x120   : > { %p6308_p10 = por %p6307_p9, %p6306_p8 }
 0x121   : > { %p6304_p6 = pneg %p6303_p4 }
 0x123   : > { %p6309_p11 = pnand %p6308_p10, %p6304_p6 }
 0x125   : > { %6312 = shalt.err (!%p6309_p11)
}
 0x126   : > { %s7840_s3 = sld [smem:[#allocation65_spill]]  ;;  %s6619_s23 = smov [#allocation18]  }
 0x127   : > { %5634 = dma.hbm_to_vmem [thread:$0]  (!%p6869_p5), %s7048_s29, 256, %s1138_s28, [#allocation14], %s7837_s26, %s7837_s26, %s7836_s18  }
 0x128   : > { %s1165_s6 = sshll.u32 %s6619_s23, 4  ;;  %s6328_s30 = sshra.s32 %s7062_s5, 4  ;;  %s1166_s6 = int_to_ptr.vmem [resolvable:$true] %s1165_s6  ;;  %s6329_s30 = int_to_ptr.hbm [resolvable:$true] %s6328_s30 }
 0x129   : > { %s6330_s22 = scalar_lea.hbm %s6329_s30, 32  ;;  %s6335_s1 = scalar_lea.hbm %s7839_s7, 32 }
 0x12a   : > { %p6331_p12 = scmp.ne.s32.totalorder %s6329_s30, %s6330_s22  ;;  %p6336_p1 = scmp.lt.s32.totalorder %s6329_s30, %s7839_s7 }
 0x12b   : > { %p6337_p4 = scmp.lt.s32.totalorder %s6335_s1, %s6330_s22 }
 0x12c   : > { %s1189_s11 = sshll.u32 %s7840_s3, 4  ;;  %p6333_p13 = pnand %p6331_p12, %p6880_p7  ;;  %s7076_s11 = int_to_ptr.hbm [resolvable:$true] %s1189_s11 }
 0x12d   : > { %p6338_p6 = por %p6337_p4, %p6336_p1 }
 0x12e   : > { %p6334_p0 = pneg %p6333_p13 }
 0x130   : > { %p6339_p8 = pnand %p6338_p6, %p6334_p0 }
 0x132   : > { %6342 = shalt.err (!%p6339_p8)
}
 0x133   : > { %s7841_s29 = smov 16   ;;  %s7842_s28 = smov 256  }
 0x134   : > { %s7843_s23 = sld [smem:[#allocation66_spill]]  ;;  %s6620_s12 = smov [#allocation21]  }
 0x135   : > { %5640 = dma.hbm_to_vmem [thread:$0]  (!%p6869_p5), %s7062_s5, 512, %s1166_s6, [#allocation17], %s7842_s28, %s7842_s28, %s7841_s29  }
 0x136   : > { %s1191_s14 = sshll.u32 %s6620_s12, 4  ;;  %s6358_s30 = sshra.s32 %s7076_s11, 4  ;;  %s1192_s14 = int_to_ptr.vmem [resolvable:$true] %s1191_s14  ;;  %s6359_s30 = int_to_ptr.hbm [resolvable:$true] %s6358_s30 }
 0x137   : > { %s6360_s22 = scalar_lea.hbm %s6359_s30, 144  ;;  %s6365_s1 = scalar_lea.hbm %s7840_s3, 144 }
 0x138   : > { %p6361_p9 = scmp.ne.s32.totalorder %s6359_s30, %s6360_s22  ;;  %p6366_p12 = scmp.lt.s32.totalorder %s6359_s30, %s7840_s3 }
 0x139   : > { %p6367_p13 = scmp.lt.s32.totalorder %s6365_s1, %s6360_s22 }
 0x13a   : > { %s1217_s16 = sshll.u32 %s7843_s23, 4  ;;  %p6363_p10 = pnand %p6361_p9, %p6880_p7  ;;  %s7090_s16 = int_to_ptr.hbm [resolvable:$true] %s1217_s16 }
 0x13b   : > { %p6368_p0 = por %p6367_p13, %p6366_p12 }
 0x13c   : > { %p6364_p11 = pneg %p6363_p10 }
 0x13e   : > { %p6369_p1 = pnand %p6368_p0, %p6364_p11 }
 0x140   : > { %6372 = shalt.err (!%p6369_p1)
}
 0x141   : > { %s7844_s5 = sld [smem:[#allocation68_spill]]  ;;  %s6621_s12 = smov [#allocation24]  }
 0x142   : > { %5646 = dma.hbm_to_vmem [thread:$0]  (!%p6869_p5), %s7076_s11, 2304, %s1192_s14, [#allocation20], %s7837_s26, %s7837_s26, %s7836_s18  }
 0x143   : > { %s1219_s7 = sshll.u32 %s6621_s12, 4  ;;  %s6388_s30 = sshra.s32 %s7090_s16, 4  ;;  %s1220_s7 = int_to_ptr.vmem [resolvable:$true] %s1219_s7  ;;  %s6389_s30 = int_to_ptr.hbm [resolvable:$true] %s6388_s30 }
 0x144   : > { %s6390_s22 = scalar_lea.hbm %s6389_s30, 4608  ;;  %s6395_s1 = scalar_lea.hbm %s7843_s23, 4608 }
 0x145   : > { %p6391_p4 = scmp.ne.s32.totalorder %s6389_s30, %s6390_s22  ;;  %p6396_p9 = scmp.lt.s32.totalorder %s6389_s30, %s7843_s23 }
 0x146   : > { %p6397_p10 = scmp.lt.s32.totalorder %s6395_s1, %s6390_s22 }
 0x147   : > { %s1248_s6 = sshll.u32 %s7844_s5, 4  ;;  %p6393_p6 = pnand %p6391_p4, %p6880_p7  ;;  %s7104_s6 = int_to_ptr.hbm [resolvable:$true] %s1248_s6 }
 0x148   : > { %p6398_p11 = por %p6397_p10, %p6396_p9 }
 0x149   : > { %p6394_p8 = pneg %p6393_p6 }
 0x14b   : > { %p6399_p12 = pnand %p6398_p11, %p6394_p8 }
 0x14d   : > { %6402 = shalt.err (!%p6399_p12)
}
 0x14e   : > { %s7845_s14 = sld [smem:[#allocation72_spill]]  ;;  %s6622_s11 = smov [#allocation27]  }
 0x14f   : > { %5652 = dma.hbm_to_vmem [thread:$0]  (!%p6869_p5), %s7090_s16, 73728, %s1220_s7, [#allocation23], %s7842_s28, %s7842_s28, %s7841_s29  }
 0x150   : > { %s1250_s12 = sshll.u32 %s6622_s11, 4  ;;  %s6418_s30 = sshra.s32 %s7104_s6, 4  ;;  %s1251_s12 = int_to_ptr.vmem [resolvable:$true] %s1250_s12  ;;  %s6419_s30 = int_to_ptr.hbm [resolvable:$true] %s6418_s30 }
 0x151   : > { %s6420_s22 = scalar_lea.hbm %s6419_s30, 16  ;;  %s6425_s1 = scalar_lea.hbm %s7844_s5, 16 }
 0x152   : > { %p6421_p13 = scmp.ne.s32.totalorder %s6419_s30, %s6420_s22  ;;  %p6426_p4 = scmp.lt.s32.totalorder %s6419_s30, %s7844_s5 }
 0x153   : > { %p6427_p6 = scmp.lt.s32.totalorder %s6425_s1, %s6420_s22 }
 0x154   : > { %s1282_s3 = sshll.u32 %s7845_s14, 4  ;;  %p6423_p0 = pnand %p6421_p13, %p6880_p7  ;;  %s7118_s3 = int_to_ptr.hbm [resolvable:$true] %s1282_s3 }
 0x155   : > { %p6428_p8 = por %p6427_p6, %p6426_p4 }
 0x156   : > { %p6424_p1 = pneg %p6423_p0 }
 0x158   : > { %p6429_p9 = pnand %p6428_p8, %p6424_p1 }
 0x15a   : > { %6432 = shalt.err (!%p6429_p9)
}
 0x15b   : > { %5658 = dma.hbm_to_vmem [thread:$0]  (!%p6869_p5), %s7104_s6, 256, %s1251_s12, [#allocation26], %s7837_s26, %s7837_s26, %s7836_s18  }
 0x15c   : > { %s1316_s16 = sshll.u32 %s6832_s9, 4  ;;  %s6623_s7 = smov [#allocation30]   ;;  %s7132_s16 = int_to_ptr.hbm [resolvable:$true] %s1316_s16 }
 0x15d   : > { %s1284_s29 = sshll.u32 %s6623_s7, 4  ;;  %s6448_s28 = sshra.s32 %s7118_s3, 4  ;;  %s1285_s29 = int_to_ptr.vmem [resolvable:$true] %s1284_s29  ;;  %s6449_s28 = int_to_ptr.hbm [resolvable:$true] %s6448_s28 }
 0x15e   : > { %s6450_s11 = scalar_lea.hbm %s6449_s28, 16  ;;  %s6455_s30 = scalar_lea.hbm %s7845_s14, 16 }
 0x15f   : > { %p6451_p10 = scmp.ne.s32.totalorder %s6449_s28, %s6450_s11  ;;  %p6456_p13 = scmp.lt.s32.totalorder %s6449_s28, %s7845_s14 }
 0x160   : > { %p6457_p0 = scmp.lt.s32.totalorder %s6455_s30, %s6450_s11 }
 0x161   : > { %p6453_p11 = pnand %p6451_p10, %p6880_p7 }
 0x162   : > { %p6458_p1 = por %p6457_p0, %p6456_p13 }
 0x163   : > { %p6454_p12 = pneg %p6453_p11 }
 0x165   : > { %p6459_p4 = pnand %p6458_p1, %p6454_p12 }
 0x167   : > { %6462 = shalt.err (!%p6459_p4)
}
 0x168   : > { %5664 = dma.hbm_to_vmem [thread:$0]  (!%p6869_p5), %s7118_s3, 256, %s1285_s29, [#allocation29], %s7837_s26, %s7837_s26, %s7836_s18  }
 0x169   : > { %s6624_s6 = smov [#allocation33]   ;;  %s6478_s22 = sshra.s32 %s7132_s16, 4  ;;  %s6479_s22 = int_to_ptr.hbm [resolvable:$true] %s6478_s22 }
 0x16a   : > { %s1318_s12 = sshll.u32 %s6624_s6, 4  ;;  %s6480_s1 = scalar_lea.hbm %s6479_s22, 16  ;;  %s1319_s12 = int_to_ptr.vmem [resolvable:$true] %s1318_s12 }
 0x16b   : > { %p6481_p6 = scmp.ne.s32.totalorder %s6479_s22, %s6480_s1  ;;  %s6485_s7 = scalar_lea.hbm %s6832_s9, 16 }
 0x16c   : > { %p6486_p10 = scmp.lt.s32.totalorder %s6479_s22, %s6832_s9  ;;  %p6487_p11 = scmp.lt.s32.totalorder %s6485_s7, %s6480_s1 }
 0x16d   : > { %p6483_p8 = pnand %p6481_p6, %p6880_p7 }
 0x16e   : > { %p6488_p12 = por %p6487_p11, %p6486_p10 }
 0x16f   : > { %p6484_p9 = pneg %p6483_p8 }
 0x171   : > { %p6489_p13 = pnand %p6488_p12, %p6484_p9 }
 0x173   : > { %6492 = shalt.err (!%p6489_p13)
}
 0x174   : > { %5670 = dma.hbm_to_vmem [thread:$0]  (!%p6869_p5), %s7132_s16, 256, %s1319_s12, [#allocation32], %s7837_s26, %s7837_s26, %s7836_s18  }
 0x175   : > { %1345 = sbr.rel (%p6856_p3) target bundleno = 3163 (0xc5b), region = 180 }
 0x17a   : > { %6513 = dma.done.wait (%p5671_p2), [#allocation3], 4096  }
 0x17b   : > { %6515 = vsyncadd (%p5671_p2), [#allocation3], 4294963200 }
 0x17c   : > { %6517 = dma.done.wait (%p5671_p2), [#allocation5], 1280  }
 0x17d   : > { %6519 = vsyncadd (%p5671_p2), [#allocation5], 4294966016 }
 0x17e   : > { %6521 = dma.done.wait (%p5671_p2), [#allocation8], 512  }
 0x17f   : > { %6523 = vsyncadd (%p5671_p2), [#allocation8], 4294966784 }
 0x180   : > { %6525 = dma.done.wait (%p5671_p2), [#allocation11], 512  }
 0x181   : > { %6527 = vsyncadd (%p5671_p2), [#allocation11], 4294966784 }
 0x182   : > { %6529 = dma.done.wait (%p5671_p2), [#allocation14], 320  }
 0x183   : > { %6531 = vsyncadd (%p5671_p2), [#allocation14], 4294966976 }
 0x184   : > { %6533 = dma.done.wait (%p5671_p2), [#allocation17], 2560  }
 0x185   : > { %6535 = vsyncadd (%p5671_p2), [#allocation17], 4294964736 }
 0x186   : > { %6537 = dma.done.wait (%p5671_p2), [#allocation20], 2432  }
 0x187   : > { %6539 = vsyncadd (%p5671_p2), [#allocation20], 4294964864 }
 0x188   : > { %6541 = dma.done.wait (%p5671_p2), [#allocation23], 82944  }
 0x189   : > { %6543 = vsyncadd (%p5671_p2), [#allocation23], 4294884352 }
 0x18a   : > { %6545 = dma.done.wait (%p5671_p2), [#allocation26], 512  }
 0x18b   : > { %6547 = vsyncadd (%p5671_p2), [#allocation26], 4294966784 }
 0x18c   : > { %6549 = dma.done.wait (%p5671_p2), [#allocation29], 512  }
 0x18d   : > { %6551 = vsyncadd (%p5671_p2), [#allocation29], 4294966784 }
 0x18e   : > { %6553 = dma.done.wait (%p5671_p2), [#allocation32], 512  }
 0x18f   : > { %6555 = vsyncadd (%p5671_p2), [#allocation32], 4294966784  ;;  %s7846_s2 = sld [smem:[#allocation46_spill]]  ;;  %v6625_v0 = vmov 2   ;;  %v6626_v1 = vmov 0   ;;  %v6627_v5 = vmov 1  }
 0x190   : > { %s7847_s15 = sld [smem:[#allocation47_spill]]  ;;  %5797 = vset.pattern.permute.xlu1 %v6625_v0  ;;  %5799 = vset.pattern.permute.xlu2 %v6626_v1  ;;  %v1657_v13 = vld [vmem:[#allocation2 + $0x78] sm:$0xff]  ;;  %v1656_v15 = vld [vmem:[#allocation2 + $0x70] sm:$0xff]  ;;  %v1655_v18 = vld [vmem:[#allocation2 + $0x68] sm:$0xff]  ;;  %p1544_p2 = scmp.lt.s32.totalorder %s6850_s0, 1  ;;  %vm1741_vm0 = vcmask 130048  }
 0x191   : > { %5795 = vset.pattern.permute.xlu0 %v6626_v1  ;;  %s7848_s10 = sld [smem:[#allocation49_spill]]  ;;  %v1673_v14 = vld [vmem:[#allocation2 + $0xf8] sm:$0xff]  ;;  %1674 = vmatpush.msra.mxu0 %v1657_v13  ;;  %v1672_v17 = vld [vmem:[#allocation2 + $0xf0] sm:$0xff]  ;;  %v1671_v19 = vld [vmem:[#allocation2 + $0xe8] sm:$0xff]  ;;  %vm1788_vm1 = vcmask 523264   ;;  %vm1852_vm2 = vcmask 195584  }
 0x192   : > { %s7849_s18 = sld [smem:[#allocation52_spill]]  ;;  %1697 = vmatpush.msra.mxu1 %v1673_v14  ;;  %v1654_v20 = vld [vmem:[#allocation2 + $0x60] sm:$0xff]  ;;  %v1653_v22 = vld [vmem:[#allocation2 + $0x58] sm:$0xff]  ;;  %v1652_v24 = vld [vmem:[#allocation2 + $0x50] sm:$0xff]  ;;  %s7867_s0 = smov (!%p1544_p2, %s6850_s0), 1  ;;  %vm1983_vm3 = vcmask 261120  }
 0x193   : > { %s7850_s26 = sld [smem:[#allocation55_spill]]  ;;  %1675 = vmatpush.msra.mxu0 %v1656_v15  ;;  %v1670_v21 = vld [vmem:[#allocation2 + $0xe0] sm:$0xff]  ;;  %v1669_v23 = vld [vmem:[#allocation2 + $0xd8] sm:$0xff]  ;;  %v1668_v25 = vld [vmem:[#allocation2 + $0xd0] sm:$0xff]  ;;  %s5519_s11 = sshll.u32 %s7867_s0, 3  ;;  %vm2057_vm4 = vcmask 392192  }
 0x194   : > { %s7851_s3 = sld [smem:[#allocation57_spill]]  ;;  %1698 = vmatpush.msra.mxu1 %v1672_v17  ;;  %v1651_v26 = vld [vmem:[#allocation2 + $0x48] sm:$0xff]  ;;  %v1650_v28 = vld [vmem:[#allocation2 + $0x40] sm:$0xff]  ;;  %v1649_v30 = vld [vmem:[#allocation2 + $0x38] sm:$0xff]  ;;  %vm2142_vm5 = vcmask 1043456   ;;  %vm2135_vm6 = vcmask 31744  }
 0x195   : > { %v1555_v2 = vld [vmem:[%s7846_s2 + $0x8] sm:$0xff]  ;;  %v1554_v3 = vld [vmem:[%s7846_s2] sm:$0xff]  ;;  %s7852_s16 = sld [smem:[#allocation59_spill]]  ;;  %1676 = vmatpush.msra.mxu0 %v1655_v18  ;;  %v1667_v27 = vld [vmem:[#allocation2 + $0xc8] sm:$0xff] }
 0x196   : > { %1564 = vperm.xlu2 %5799, %v1555_v2   ;;  %1602 = vperm.xlu1 %5797, %v1554_v3   ;;  %v1622_v4 = vld [vmem:[%s7847_s15] sm:$0xff]  ;;  %v1623_v6 = vld [vmem:[%s7847_s15 + $0x8] sm:$0xff]  ;;  %s7853_s29 = sld [smem:[#allocation67_spill]]  ;;  %v1648_v32 = vld [vmem:[#allocation2 + $0x30] sm:$0xff] }
 0x197   : > { %1559 = vperm.xlu0 %5795, %v1554_v3   ;;  %v1725_v7 = vld [vmem:[%s7848_s10 + $0x10] sm:$0xff]  ;;  %1699 = vmatpush.msra.mxu1 %v1671_v19  ;;  %v1666_v29 = vld [vmem:[#allocation2 + $0xc0] sm:$0xff]  ;;  %v1665_v31 = vld [vmem:[#allocation2 + $0xb8] sm:$0xff]  ;;  %s7854_s28 = sld [smem:[#allocation45_spill]] }
 0x198   : > { %v1829_v8 = vld [vmem:[%s7849_s18 + $0x8] sm:$0xff]  ;;  %1677 = vmatpush.msra.mxu0 %v1654_v20  ;;  %v1664_v33 = vld [vmem:[#allocation2 + $0xb0] sm:$0xff]  ;;  %v1647_v34 = vld [vmem:[#allocation2 + $0x28] sm:$0xff]  ;;  %s7855_s6 = sld [smem:[#allocation48_spill]] }
 0x199   : > { %v1952_v9 = vld [vmem:[%s7850_s26 + $0x28] sm:$0xff]  ;;  %v1949_v10 = vld [vmem:[%s7850_s26 + $0x10] sm:$0xff]  ;;  %1700 = vmatpush.msra.mxu1 %v1670_v21  ;;  %v1645_v38 = vld [vmem:[#allocation2 + $0x18] sm:$0xff]  ;;  %s7856_s12 = sld [smem:[#allocation51_spill]] }
 0x19a   : > { %v2045_v11 = vld [vmem:[%s7851_s3] sm:$0xff]  ;;  %1678 = vmatpush.msra.mxu0 %v1653_v22  ;;  %v1663_v35 = vld [vmem:[#allocation2 + $0xa8] sm:$0xff]  ;;  %v1646_v36 = vld [vmem:[#allocation2 + $0x20] sm:$0xff]  ;;  %s7857_s22 = sld [smem:[#allocation54_spill]] }
 0x19b   : > { %v2092_v12 = vld [vmem:[%s7852_s16 + $0x8] sm:$0xff]  ;;  %1701 = vmatpush.msra.mxu1 %v1669_v23  ;;  %v1661_v39 = vld [vmem:[#allocation2 + $0x98] sm:$0xff]  ;;  %v1644_v40 = vld [vmem:[#allocation2 + $0x10] sm:$0xff]  ;;  %s7858_s1 = sld [smem:[#allocation69_spill]] }
 0x19c   : > { %v2170_v16 = vld [vmem:[%s7853_s29 + $0x8] sm:$0xff]  ;;  %1679 = vmatpush.msra.mxu0 %v1652_v24  ;;  %v1660_v41 = vld [vmem:[#allocation2 + $0x90] sm:$0xff]  ;;  %v1643_v42 = vld [vmem:[#allocation2 + $0x8] sm:$0xff]  ;;  %s7859_s7 = sld [smem:[#allocation71_spill]] }
 0x19d   : > { %1702 = vmatpush.msra.mxu1 %v1668_v25  ;;  %v1662_v37 = vld [vmem:[#allocation2 + $0xa0] sm:$0xff]  ;;  %v1659_v43 = vld [vmem:[#allocation2 + $0x88] sm:$0xff]  ;;  %s1548_s30 = scalar_lea.vmem %s7854_s28, %s5519_s11  ;;  %v1723_v17 = vld [vmem:[%s7848_s10] sm:$0xff]  ;;  %s7860_s28 = sld [smem:[#allocation60_spill]] }
 0x19e   : > { %5800 = vset.pattern.permute.xlu2 %v6627_v5  ;;  %5798 = vset.pattern.permute.xlu1 %v6626_v1  ;;  %v1642_v44 = vld [vmem:[#allocation2] sm:$0xff]  ;;  %v1556_v49 = vld [vmem:[%s1548_s30] ss:$4 sm:$0x3] }
 0x19f   : > { %5796 = vset.pattern.permute.xlu0 %v6627_v5  ;;  %1583 = vperm.xlu2 %5800, %v1555_v2   ;;  %v1658_v45 = vld [vmem:[#allocation2 + $0x80] sm:$0xff]  ;;  %v5418_v50 = vld [vmem:[%s1548_s30 + $0x1] ss:$4 sm:$0x3]  ;;  %v1568_v52 = vperm.slane %v1556_v49, 0  ;;  %v1569_v53 = vperm.slane %v1556_v49, 1 }
 0x1a0   : > { %1626 = vperm.xlu1 %5798, %v1622_v4   ;;  %1579 = vperm.xlu0 %5796, %v1554_v3   ;;  %v5419_v51 = vld [vmem:[%s1548_s30 + $0x2] ss:$4 sm:$0x3]  ;;  %v1587_v54 = vperm.slane %v5418_v50, 0  ;;  %v1588_v55 = vperm.slane %v5418_v50, 1  ;;  %s7862_s30 = sld [smem:[#allocation73_spill]] }
 0x1a1   : > { %1680 = vmatpush.msra.mxu0 %v1651_v26  ;;  %1703 = vmatpush.msra.mxu1 %v1667_v27  ;;  %v1610_v56 = vperm.slane %v5419_v51, 0  ;;  %v1611_v57 = vperm.slane %v5419_v51, 1  ;;  %v1720_v50 = vld [vmem:[%s7855_s6] sm:$0xff]  ;;  %v1721_v51 = vld [vmem:[%s7855_s6 + $0x8] sm:$0xff] }
 0x1a3   : > { %1681 = vmatpush.msra.mxu0 %v1650_v28  ;;  %1704 = vmatpush.msra.mxu1 %v1666_v29  ;;  %s7861_s11 = smov %s7860_s28 }
 0x1a5   : > { %1682 = vmatpush.msra.mxu0 %v1649_v30  ;;  %1705 = vmatpush.msra.mxu1 %v1665_v31  ;;  %v1828_v30 = vld [vmem:[%s7849_s18] sm:$0xff]  ;;  %v1830_v31 = vld [vmem:[%s7849_s18 + $0x10] sm:$0xff] }
 0x1a7   : > { %5802 = vset.pattern.permute.xlu2 %v6626_v1  ;;  %1683 = vmatpush.msra.mxu0 %v1648_v32 }
 0x1a8   : > { %5801 = vset.pattern.permute.xlu1 %v6625_v0  ;;  %1631 = vperm.xlu2 %5802, %v1623_v6  }
 0x1a9   : > { %1606 = vperm.xlu1 %5801, %v1555_v2   ;;  %5803 = vset.pattern.permute.xlu0 %v6626_v1 }
 0x1aa   : > { %1706 = vmatpush.msra.mxu1 %v1664_v33  ;;  %1684 = vmatpush.msra.mxu0 %v1647_v34  ;;  %v1831_v34 = vld [vmem:[%s7849_s18 + $0x18] sm:$0xff] }
 0x1ab   : > { %1728 = vperm.xlu0 %5803, %v1723_v17   ;;  %v1824_v17 = vld [vmem:[%s7856_s12] sm:$0xff] }
 0x1ac   : > { %1707 = vmatpush.msra.mxu1 %v1663_v35  ;;  %1685 = vmatpush.msra.mxu0 %v1646_v36  ;;  %v1950_v35 = vld [vmem:[%s7850_s26 + $0x18] sm:$0xff]  ;;  %v1951_v36 = vld [vmem:[%s7850_s26 + $0x20] sm:$0xff] }
 0x1ae   : > { %1708 = vmatpush.msra.mxu1 %v1662_v37  ;;  %1686 = vmatpush.msra.mxu0 %v1645_v38  ;;  %v1947_v37 = vld [vmem:[%s7850_s26] sm:$0xff]  ;;  %v1948_v38 = vld [vmem:[%s7850_s26 + $0x8] sm:$0xff] }
 0x1b0   : > { %1738 = vperm.xlu2 %5802, %v1725_v7   ;;  %1709 = vmatpush.msra.mxu1 %v1661_v39  ;;  %v2091_v39 = vld [vmem:[%s7852_s16] sm:$0xff] }
 0x1b1   : > { %5804 = vset.pattern.permute.xlu1 %v6626_v1  ;;  %1687 = vmatpush.msra.mxu0 %v1644_v40  ;;  %v2046_v40 = vld [vmem:[%s7851_s3 + $0x8] sm:$0xff] }
 0x1b2   : > { %1710 = vmatpush.msra.mxu1 %v1660_v41  ;;  %v7261_v41 = vld [vmem:[#allocation25] sm:$0xff] }
 0x1b3   : > { %1688 = vmatpush.msra.mxu0 %v1643_v42  ;;  %1844 = vperm.xlu0 %5803, %v1830_v31   ;;  %v7263_v42 = vld [vmem:[#allocation25 + $0x8] sm:$0xff] }
 0x1b4   : > { %1711 = vmatpush.msra.mxu1 %v1659_v43 }
 0x1b5   : > { %1689 = vmatpush.msra.mxu0 %v1642_v44 }
 0x1b6   : > { %1712 = vmatpush.msra.mxu1 %v1658_v45  ;;  %v2169_v45 = vld [vmem:[%s7853_s29] sm:$0xff] }
 0x1b8   : > { %1839 = vperm.xlu2 %5802, %v1829_v8  }
 0x1bb   : > { %1975 = vperm.xlu0 %5803, %v1951_v36  }
 0x1c0   : > { %1980 = vperm.xlu2 %5802, %v1952_v9  }
 0x1c3   : > { %1960 = vperm.xlu0 %5803, %v1948_v38  }
 0x1c8   : > { %1965 = vperm.xlu2 %5802, %v1949_v10  }
 0x1cb   : > { %2054 = vperm.xlu0 %5803, %v2046_v40  }
 0x1d0   : > { %2049 = vperm.xlu2 %5802, %v2045_v11  }
 0x1d3   : > { %2211 = vperm.xlu0 %5803, %v7263_v42  }
 0x1d8   : > { %2100 = vperm.xlu2 %5802, %v2092_v12  }
 0x1db   : > { %5805 = vset.pattern.permute.xlu0 %v6627_v5 }
 0x1dc   : > { %2259 = vperm.xlu0 %5805, %v7263_v42  }
 0x1e0   : > { %2223 = vperm.xlu2 %5802, %v2170_v16   ;;  %v1724_v16 = vld [vmem:[%s7848_s10 + $0x8] sm:$0xff] }
 0x1e1   : > { %1733 = vperm.xlu1 %5804, %v1724_v16  }
 0x1e8   : > { %5806 = vset.pattern.permute.xlu2 %v6627_v5 }
 0x1e9   : > { %1834 = vperm.xlu1 %5804, %v1828_v30   ;;  %2255 = vperm.xlu2 %5806, %v7261_v41  }
 0x1f0   : > { %v1565_v48 = vpop.permute.xlu2 %1564 }
 0x1f1   : > { %v1574_v10 = vmul.f32 %v1568_v52, %v1565_v48  ;;  %v1575_v11 = vmul.f32 %v1569_v53, %v1565_v48  ;;  %1849 = vperm.xlu1 %5804, %v1831_v34   ;;  %5808 = vset.pattern.permute.xlu2 %v6625_v0 }
 0x1f2   : > { %2293 = vperm.xlu2 %5808, %v7261_v41  }
 0x1f9   : > { %v1584_v2 = vpop.permute.xlu2 %1583  ;;  %1970 = vperm.xlu1 %5804, %v1950_v35  }
 0x1fa   : > { %v1593_v12 = vmul.f32 %v1587_v54, %v1584_v2  ;;  %v1594_v13 = vmul.f32 %v1588_v55, %v1584_v2 }
 0x1fc   : > { %v1597_v21 = vadd.f32 %v1593_v12, %v1574_v10  ;;  %v1598_v22 = vadd.f32 %v1594_v13, %v1575_v11 }
 0x201   : > { %1955 = vperm.xlu1 %5804, %v1947_v37  }
 0x202   : > { %v1632_v27 = vpop.permute.xlu2 %1631 }
 0x208   : > { %v1603_v47 = vpop.permute.xlu1 %1602 }
 0x209   : > { %v1560_v46 = vpop.permute.xlu0 %1559  ;;  %v1614_v3 = vmul.f32 %v1610_v56, %v1603_v47  ;;  %v1615_v4 = vmul.f32 %v1611_v57, %v1603_v47  ;;  %2095 = vperm.xlu1 %5804, %v2091_v39  }
 0x20a   : > { %v1572_v59 = vmul.f32 %v1568_v52, %v1560_v46  ;;  %v1573_v60 = vmul.f32 %v1569_v53, %v1560_v46  ;;  %v1722_v52 = vld [vmem:[%s7855_s6 + $0x10] sm:$0xff]  ;;  %v1787_v53 = vld [vmem:[#allocation4 + $0x38] sm:$0xff] }
 0x20b   : > { %1806 = vmatpush.msra.mxu3 %v1787_v53  ;;  %v1941_v53 = vld [vmem:[%s7857_s22] sm:$0xff] }
 0x211   : > { %2206 = vperm.xlu1 %5804, %v7261_v41  }
 0x212   : > { %v1580_v58 = vpop.permute.xlu0 %1579  ;;  %v1627_v63 = vpop.permute.xlu1 %1626 }
 0x213   : > { %v1591_v61 = vmul.f32 %v1587_v54, %v1580_v58  ;;  %v1592_v62 = vmul.f32 %v1588_v55, %v1580_v58  ;;  %v1786_v54 = vld [vmem:[#allocation4 + $0x30] sm:$0xff]  ;;  %v1785_v55 = vld [vmem:[#allocation4 + $0x28] sm:$0xff] }
 0x214   : > { %1807 = vmatpush.msra.mxu3 %v1786_v54  ;;  %v1782_v58 = vld [vmem:[#allocation4 + $0x10] sm:$0xff]  ;;  %v1942_v54 = vld [vmem:[%s7857_s22 + $0x8] sm:$0xff] }
 0x215   : > { %v1595_v6 = vadd.f32 %v1591_v61, %v1572_v59  ;;  %v1596_v7 = vadd.f32 %v1592_v62, %v1573_v60  ;;  %v1781_v59 = vld [vmem:[#allocation4 + $0x8] sm:$0xff]  ;;  %v1780_v60 = vld [vmem:[#allocation4] sm:$0xff] }
 0x216   : > { %1808 = vmatpush.msra.mxu3 %v1785_v55  ;;  %v1943_v55 = vld [vmem:[%s7857_s22 + $0x10] sm:$0xff] }
 0x217   : > { %v1618_v8 = vadd.f32 %v1614_v3, %v1595_v6  ;;  %v1619_v9 = vadd.f32 %v1615_v4, %v1596_v7 }
 0x219   : > { %v7230_v14 = vadd.f32 %v1627_v63, %v1618_v8  ;;  %v7232_v15 = vadd.f32 %v1627_v63, %v1619_v9  ;;  %2218 = vperm.xlu1 %5804, %v2169_v45   ;;  %v1739_v8 = vpop.permute.xlu2 %1738 }
 0x21b   : > { %v1607_v18 = vpop.permute.xlu1 %1606  ;;  %v1638_v19 = vmax.f32 %v7230_v14, 0.0  ;;  %v1639_v20 = vmax.f32 %v7232_v15, 0.0  ;;  %v3031_v14 = vld [vmem:[#allocation22 + $0x210] sm:$0xff]  ;;  %v3030_v15 = vld [vmem:[#allocation22 + $0x208] sm:$0xff] }
 0x21c   : > { %v1616_v23 = vmul.f32 %v1610_v56, %v1607_v18  ;;  %v1617_v24 = vmul.f32 %v1611_v57, %v1607_v18  ;;  %v1784_v56 = vld [vmem:[#allocation4 + $0x20] sm:$0xff]  ;;  %v1783_v57 = vld [vmem:[#allocation4 + $0x18] sm:$0xff] }
 0x21d   : > { %1690 = vmatmul.f32.vlgmr.msra.gmra.mxu0 %v1638_v19  ;;  %1713 = vmatmul.f32.vlgmr.msra.gmra.mxu1 %v1639_v20  ;;  %v1729_v61 = vpop.permute.xlu0 %1728  ;;  %v1825_v18 = vld [vmem:[%s7856_s12 + $0x8] sm:$0xff] }
 0x21e   : > { %v1620_v25 = vadd.f32 %v1616_v23, %v1597_v21  ;;  %v1621_v26 = vadd.f32 %v1617_v24, %v1598_v22  ;;  %1809 = vmatpush.msra.mxu3 %v1784_v56  ;;  %v1826_v21 = vld [vmem:[%s7856_s12 + $0x10] sm:$0xff]  ;;  %v1827_v22 = vld [vmem:[%s7856_s12 + $0x18] sm:$0xff]  ;;  %v1898_v24 = vld [vmem:[#allocation6] sm:$0xff] }
 0x21f   : > { %v1899_v23 = vld [vmem:[#allocation6 + $0x8] sm:$0xff]  ;;  %v1944_v56 = vld [vmem:[%s7857_s22 + $0x18] sm:$0xff] }
 0x220   : > { %v7242_v28 = vadd.f32 %v1632_v27, %v1620_v25  ;;  %v7244_v29 = vadd.f32 %v1632_v27, %v1621_v26  ;;  %1810 = vmatpush.msra.mxu3 %v1783_v57  ;;  %v1945_v57 = vld [vmem:[%s7857_s22 + $0x20] sm:$0xff] }
 0x221   : > { %5807 = vset.pattern.permute.xlu1 %v6625_v0  ;;  %v1840_v31 = vpop.permute.xlu2 %1839 }
 0x222   : > { %v1640_v32 = vmax.f32 %v7242_v28, 0.0  ;;  %v1641_v33 = vmax.f32 %v7244_v29, 0.0  ;;  %2297 = vperm.xlu1 %5807, %v7263_v42   ;;  %1811 = vmatpush.msra.mxu3 %v1782_v58  ;;  %v1946_v58 = vld [vmem:[%s7857_s22 + $0x28] sm:$0xff]  ;;  %v3032_v28 = vld [vmem:[#allocation22 + $0x218] sm:$0xff] }
 0x224   : > { %1812 = vmatpush.msra.mxu3 %v1781_v59 }
 0x225   : > { %1693 = vmatmul.f32.gmra.mxu0 %v1640_v32  ;;  %1716 = vmatmul.f32.gmra.mxu1 %v1641_v33  ;;  %v1845_v37 = vpop.permute.xlu0 %1844 }
 0x226   : > { %1813 = vmatpush.msra.mxu3 %v1780_v60 }
 0x228   : > { %1926 = vmatpush.msrb.mxu3 %v1899_v23 }
 0x22a   : > { %1927 = vmatpush.msrb.mxu3 %v1898_v24 }
 0x253   : > { %v1734_v3 = vpop.permute.xlu1 %1733 }
 0x25b   : > { %v1835_v25 = vpop.permute.xlu1 %1834 }
 0x29a   : > { %v1691_v43 = vpop.f32.mrf.mxu0  ;;  %v1714_v44 = vpop.f32.mrf.mxu1 }
 0x29b   : > { %v1715_v49 = vadd.f32 %v1714_v44, %v1691_v43  ;;  %v1850_v43 = vpop.permute.xlu1 %1849 }
 0x2a2   : > { %v1694_v46 = vpop.f32.mrf.mxu0  ;;  %v1717_v47 = vpop.f32.mrf.mxu1 }
 0x2a3   : > { %v1718_v48 = vadd.f32 %v1717_v47, %v1694_v46  ;;  %v2089_v47 = vld [vmem:[#allocation9] sm:$0xff] }
 0x2a5   : > { %1765 = vmatpush.msra.mxu2 %v1718_v48  ;;  %v2090_v48 = vld [vmem:[#allocation9 + $0x8] sm:$0xff] }
 0x2a7   : > { %1766 = vmatpush.msra.mxu2 %v1715_v49 }
 0x2a8   : > { %5420 = vmatmul.msk.f32.vlgmr.msra.gmra.mxu2 %vm1741_vm0, %v1720_v50 }
 0x2b0   : > { %5421 = vmatmul.msk.f32.gmra.mxu2 %vm1741_vm0, %v1721_v51 }
 0x2b8   : > { %5422 = vmatmul.msk.f32.gmra.mxu2 %vm1741_vm0, %v1722_v52 }
 0x32b   : > { %v1768_v62 = vpop.f32.mrf.mxu2 }
 0x32c   : > { %v7281_v63 = vadd.f32 %v1768_v62, %v1729_v61 }
 0x32e   : > { %v1777_v2 = vmax.f32 %v7281_v63, 0.0 }
 0x330   : > { %5423 = vmatmul.msk.f32.vlgmr.msra.gmra.mxu3 %vm1788_vm1, %v1777_v2 }
 0x333   : > { %v1771_v4 = vpop.f32.mrf.mxu2 }
 0x334   : > { %v7287_v6 = vadd.f32 %v1771_v4, %v1734_v3  ;;  %v1981_v4 = vpop.permute.xlu2 %1980 }
 0x336   : > { %v1778_v7 = vmax.f32 %v7287_v6, 0.0 }
 0x338   : > { %5424 = vmatmul.msk.f32.gmra.mxu3 %vm1788_vm1, %v1778_v7 }
 0x33b   : > { %v1774_v9 = vpop.f32.mrf.mxu2 }
 0x33c   : > { %v7293_v10 = vadd.f32 %v1774_v9, %v1739_v8  ;;  %v1976_v8 = vpop.permute.xlu0 %1975  ;;  %v1971_v9 = vpop.permute.xlu1 %1970 }
 0x33e   : > { %v1779_v11 = vmax.f32 %v7293_v10, 0.0 }
 0x340   : > { %5425 = vmatmul.msk.f32.gmra.mxu3 %vm1788_vm1, %v1779_v11 }
 0x344   : > { %v1961_v24 = vpop.permute.xlu0 %1960 }
 0x3b3   : > { %v1815_v12 = vpop.f32.mrf.mxu3 }
 0x3bb   : > { %v1818_v13 = vpop.f32.mrf.mxu3 }
 0x3c3   : > { %v1821_v16 = vpop.f32.mrf.mxu3 }
 0x3c4   : > { %1878 = vmatpush.msrb.mxu2 %v1821_v16 }
 0x3c6   : > { %1879 = vmatpush.msrb.mxu2 %v1818_v13 }
 0x3c8   : > { %1880 = vmatpush.msrb.mxu2 %v1815_v12 }
 0x3c9   : > { %5426 = vmatmul.msk.f32.vlgmr.msrb.gmra.mxu2 %vm1852_vm2, %v1824_v17 }
 0x3d1   : > { %5427 = vmatmul.msk.f32.gmra.mxu2 %vm1852_vm2, %v1825_v18 }
 0x3d9   : > { %5428 = vmatmul.msk.f32.gmra.mxu2 %vm1852_vm2, %v1826_v21  ;;  %v1966_v21 = vpop.permute.xlu2 %1965 }
 0x3e1   : > { %5429 = vmatmul.msk.f32.gmra.mxu2 %vm1852_vm2, %v1827_v22 }
 0x44c   : > { %v1882_v26 = vpop.f32.mrf.mxu2 }
 0x44d   : > { %v1883_v27 = vadd.f32 %v1882_v26, %v1835_v25 }
 0x44f   : > { %v1894_v30 = vmax.f32 %v1883_v27, 0.0  ;;  %v1956_v27 = vpop.permute.xlu1 %1955 }
 0x451   : > { %5430 = vmatmul.msk.f32.vlgmr.msrb.gmra.mxu3 %vm1741_vm0, %v1894_v30 }
 0x454   : > { %v1885_v34 = vpop.f32.mrf.mxu2 }
 0x455   : > { %v1886_v35 = vadd.f32 %v1885_v34, %v1840_v31 }
 0x457   : > { %v1895_v36 = vmax.f32 %v1886_v35, 0.0 }
 0x459   : > { %5431 = vmatmul.msk.f32.gmra.mxu3 %vm1741_vm0, %v1895_v36 }
 0x45c   : > { %v1888_v38 = vpop.f32.mrf.mxu2 }
 0x45d   : > { %v1889_v39 = vadd.f32 %v1888_v38, %v1845_v37  ;;  %v2044_v37 = vld [vmem:[#allocation7 + $0x8] sm:$0xff]  ;;  %v2134_v38 = vld [vmem:[#allocation13] sm:$0xf] }
 0x45f   : > { %v1896_v40 = vmax.f32 %v1889_v39, 0.0  ;;  %v2050_v39 = vpop.permute.xlu2 %2049 }
 0x461   : > { %5432 = vmatmul.msk.f32.gmra.mxu3 %vm1741_vm0, %v1896_v40 }
 0x464   : > { %v1891_v44 = vpop.f32.mrf.mxu2 }
 0x465   : > { %v1892_v45 = vadd.f32 %v1891_v44, %v1850_v43 }
 0x467   : > { %v1897_v46 = vmax.f32 %v1892_v45, 0.0  ;;  %v2055_v45 = vpop.permute.xlu0 %2054 }
 0x469   : > { %5433 = vmatmul.msk.f32.gmra.mxu3 %vm1741_vm0, %v1897_v46  ;;  %2121 = vmatpush.msra.mxu2 %v1897_v46 }
 0x46b   : > { %2122 = vmatpush.msra.mxu2 %v1896_v40 }
 0x46d   : > { %2123 = vmatpush.msra.mxu2 %v1895_v36  ;;  %v2043_v36 = vld [vmem:[#allocation7] sm:$0xff] }
 0x46f   : > { %2124 = vmatpush.msra.mxu2 %v1894_v30 }
 0x470   : > { %5442 = vmatmul.msk.f32.vlgmr.msra.gmra.mxu2 %vm1983_vm3, %v2089_v47 }
 0x478   : > { %5443 = vmatmul.msk.f32.gmra.mxu2 %vm1983_vm3, %v2090_v48 }
 0x4d4   : > { %v1929_v49 = vpop.f32.mrf.mxu3 }
 0x4dc   : > { %v1932_v50 = vpop.f32.mrf.mxu3 }
 0x4e4   : > { %v1935_v51 = vpop.f32.mrf.mxu3 }
 0x4ec   : > { %v1938_v52 = vpop.f32.mrf.mxu3 }
 0x4ed   : > { %2014 = vmatpush.msrb.mxu0 %v1938_v52  ;;  %v2382_v52 = vld [vmem:[#allocation21 + $0x58] sm:$0xff] }
 0x4ef   : > { %2015 = vmatpush.msrb.mxu0 %v1935_v51  ;;  %v2268_v51 = vld [vmem:[#allocation21 + $0x28] sm:$0xff] }
 0x4f1   : > { %2016 = vmatpush.msrb.mxu0 %v1932_v50  ;;  %v2230_v50 = vld [vmem:[#allocation21 + $0x18] sm:$0xff] }
 0x4f2   : > { %2245 = vmatpush.msrb.mxu2 %v2230_v50 }
 0x4f3   : > { %2017 = vmatpush.msrb.mxu0 %v1929_v49  ;;  %v2174_v49 = vld [vmem:[#allocation21 + $0x8] sm:$0xff] }
 0x4f4   : > { %5434 = vmatmul.msk.f32.vlgmr.msrb.gmra.mxu0 %vm1983_vm3, %v1941_v53  ;;  %2195 = vmatpush.msra.mxu3 %v2174_v49  ;;  %v2173_v53 = vld [vmem:[#allocation21] sm:$0xff] }
 0x4f5   : > { %2397 = vmatpush.msra.mxu0 %v2382_v52 }
 0x4f6   : > { %2196 = vmatpush.msra.mxu3 %v2173_v53 }
 0x4fc   : > { %5435 = vmatmul.msk.f32.gmra.mxu0 %vm1983_vm3, %v1942_v54  ;;  %v2229_v54 = vld [vmem:[#allocation21 + $0x10] sm:$0xff] }
 0x4fd   : > { %2246 = vmatpush.msrb.mxu2 %v2229_v54 }
 0x504   : > { %5436 = vmatmul.msk.f32.gmra.mxu0 %vm1983_vm3, %v1943_v55  ;;  %v2267_v55 = vld [vmem:[#allocation21 + $0x20] sm:$0xff] }
 0x50c   : > { %5437 = vmatmul.msk.f32.gmra.mxu0 %vm1983_vm3, %v1944_v56  ;;  %v2381_v56 = vld [vmem:[#allocation21 + $0x50] sm:$0xff] }
 0x50d   : > { %2398 = vmatpush.msra.mxu0 %v2381_v56 }
 0x514   : > { %5438 = vmatmul.msk.f32.gmra.mxu0 %vm1983_vm3, %v1945_v57  ;;  %v6628_v57 = vmov 3  }
 0x515   : > { %5809 = vset.pattern.permute.xlu0 %v6628_v57  ;;  %5810 = vset.pattern.permute.xlu1 %v6628_v57 }
 0x516   : > { %2335 = vperm.xlu0 %5809, %v7263_v42   ;;  %2331 = vperm.xlu1 %5810, %v7261_v41  }
 0x51c   : > { %5439 = vmatmul.msk.f32.gmra.mxu0 %vm1983_vm3, %v1946_v58  ;;  %v2306_v58 = vld [vmem:[#allocation21 + $0x38] sm:$0xff] }
 0x51d   : > { %2321 = vmatpush.msrb.mxu3 %v2306_v58 }
 0x571   : > { %v2019_v59 = vpop.f32.mrf.mxu0 }
 0x572   : > { %v2020_v30 = vadd.f32 %v2019_v59, %v1956_v27  ;;  %v2344_v59 = vld [vmem:[#allocation21 + $0x48] sm:$0xff]  ;;  %v2495_v27 = vld [vmem:[#allocation21 + $0x80] sm:$0xff] }
 0x573   : > { %2359 = vmatpush.msra.mxu2 %v2344_v59 }
 0x574   : > { %v2037_v35 = vmax.f32 %v2020_v30, 0.0  ;;  %v6631_v30 = vmov 6  }
 0x579   : > { %v2022_v60 = vpop.f32.mrf.mxu0 }
 0x57a   : > { %v2023_v25 = vadd.f32 %v2022_v60, %v1961_v24  ;;  %v2305_v60 = vld [vmem:[#allocation21 + $0x30] sm:$0xff]  ;;  %v2496_v24 = vld [vmem:[#allocation21 + $0x88] sm:$0xff] }
 0x57b   : > { %2322 = vmatpush.msrb.mxu3 %v2305_v60 }
 0x57c   : > { %v2038_v34 = vmax.f32 %v2023_v25, 0.0  ;;  %v2419_v25 = vld [vmem:[#allocation21 + $0x60] sm:$0xff] }
 0x581   : > { %v2025_v61 = vpop.f32.mrf.mxu0 }
 0x582   : > { %v2026_v22 = vadd.f32 %v2025_v61, %v1966_v21  ;;  %v2343_v61 = vld [vmem:[#allocation21 + $0x40] sm:$0xff]  ;;  %v2420_v21 = vld [vmem:[#allocation21 + $0x68] sm:$0xff] }
 0x583   : > { %2360 = vmatpush.msra.mxu2 %v2343_v61 }
 0x584   : > { %v2039_v31 = vmax.f32 %v2026_v22, 0.0  ;;  %v2458_v22 = vld [vmem:[#allocation21 + $0x78] sm:$0xff] }
 0x589   : > { %v2028_v62 = vpop.f32.mrf.mxu0 }
 0x58a   : > { %v2029_v17 = vadd.f32 %v2028_v62, %v1971_v9  ;;  %v6629_v62 = vmov 5  }
 0x58b   : > { %5814 = vset.pattern.permute.xlu0 %v6629_v62 }
 0x58c   : > { %v2040_v26 = vmax.f32 %v2029_v17, 0.0  ;;  %2407 = vperm.xlu0 %5814, %v7261_v41  }
 0x591   : > { %v2031_v3 = vpop.f32.mrf.mxu0 }
 0x592   : > { %v2032_v13 = vadd.f32 %v2031_v3, %v1976_v8  ;;  %v2126_v3 = vpop.f32.mrf.mxu2  ;;  %v6630_v8 = vmov 4  }
 0x593   : > { %5812 = vset.pattern.permute.xlu1 %v6630_v8  ;;  %5811 = vset.pattern.permute.xlu2 %v6630_v8 }
 0x594   : > { %v2041_v23 = vmax.f32 %v2032_v13, 0.0  ;;  %2369 = vperm.xlu1 %5812, %v7261_v41   ;;  %2373 = vperm.xlu2 %5811, %v7263_v42  }
 0x599   : > { %v2034_v12 = vpop.f32.mrf.mxu0 }
 0x59a   : > { %v2035_v16 = vadd.f32 %v2034_v12, %v1981_v4  ;;  %v2096_v4 = vpop.permute.xlu1 %2095  ;;  %v2129_v13 = vpop.f32.mrf.mxu2 }
 0x59b   : > { %v2127_v9 = vadd.f32 %v2126_v3, %v2096_v4  ;;  %v2579_v4 = vld [vmem:[#allocation10] sm:$0xff] }
 0x59c   : > { %v2042_v18 = vmax.f32 %v2035_v16, 0.0  ;;  %5815 = vset.pattern.permute.xlu1 %v6631_v30  ;;  %5813 = vset.pattern.permute.xlu2 %v6629_v62 }
 0x59d   : > { %v2132_v12 = vmax.f32 %v2127_v9, 0.0  ;;  %2449 = vperm.xlu1 %5815, %v7263_v42   ;;  %2411 = vperm.xlu2 %5813, %v7263_v42   ;;  %v2537_v9 = vld [vmem:[%s7858_s1 + $0x8] sm:$0xff] }
 0x59e   : > { %2074 = vmatpush.msrb.mxu1 %v2042_v18  ;;  %v2101_v18 = vpop.permute.xlu2 %2100 }
 0x5a0   : > { %2075 = vmatpush.msrb.mxu1 %v2041_v23  ;;  %v2130_v23 = vadd.f32 %v2129_v13, %v2101_v18 }
 0x5a2   : > { %2076 = vmatpush.msrb.mxu1 %v2040_v26  ;;  %v2457_v26 = vld [vmem:[#allocation21 + $0x70] sm:$0xff] }
 0x5a4   : > { %2077 = vmatpush.msrb.mxu1 %v2039_v31  ;;  %v2133_v31 = vmax.f32 %v2130_v23, 0.0 }
 0x5a5   : > { %5816 = vset.pattern.permute.xlu2 %v6631_v30 }
 0x5a6   : > { %2078 = vmatpush.msrb.mxu1 %v2038_v34  ;;  %2445 = vperm.xlu2 %5816, %v7261_v41   ;;  %v2224_v63 = vpop.permute.xlu2 %2223 }
 0x5a8   : > { %2079 = vmatpush.msrb.mxu1 %v2037_v35 }
 0x5a9   : > { %5440 = vmatmul.msk.f32.vlgmr.msrb.gmra.mxu1 %vm2057_vm4, %v2043_v36  ;;  %v6632_v36 = vmov 8  }
 0x5aa   : > { %5444 = vmatpush.msk.msra.mxu1 %vm2142_vm5, %v2134_v38  ;;  %5819 = vset.pattern.permute.xlu0 %v6632_v36 }
 0x5ab   : > { %2525 = vperm.xlu0 %5819, %v7263_v42  }
 0x5ac   : > { %2283 = vmatpush.msrb.mxu1 %v2268_v51 }
 0x5ae   : > { %2284 = vmatpush.msrb.mxu1 %v2267_v55  ;;  %v2256_v6 = vpop.permute.xlu2 %2255 }
 0x5b1   : > { %5441 = vmatmul.msk.f32.gmra.mxu1 %vm2057_vm4, %v2044_v37  ;;  %v6633_v37 = vmov 7  }
 0x5b2   : > { %5817 = vset.pattern.permute.xlu1 %v6633_v37  ;;  %5818 = vset.pattern.permute.xlu2 %v6633_v37 }
 0x5b3   : > { %2487 = vperm.xlu1 %5817, %v7263_v42   ;;  %5823 = vset.pattern.permute.xlu0 %v6626_v1  ;;  %v2207_v42 = vpop.permute.xlu1 %2206 }
 0x5b4   : > { %2483 = vperm.xlu2 %5818, %v7261_v41  }
 0x5bb   : > { %5820 = vset.pattern.permute.xlu1 %v6632_v36 }
 0x5bc   : > { %2521 = vperm.xlu1 %5820, %v7261_v41   ;;  %5821 = vset.pattern.permute.xlu2 %v6626_v1  ;;  %v2294_v41 = vpop.permute.xlu2 %2293 }
 0x5c4   : > { %5822 = vset.pattern.permute.xlu1 %v6626_v1 }
 0x5c5   : > { %2545 = vperm.xlu1 %5822, %v2537_v9  }
 0x626   : > { %v2081_v40 = vpop.f32.mrf.mxu1 }
 0x627   : > { %v2082_v43 = vadd.f32 %v2081_v40, %v2050_v39  ;;  %v2212_v40 = vpop.permute.xlu0 %2211 }
 0x629   : > { %v7326_v44 = vmax.f32 %v2082_v43, 0.0  ;;  %v2374_v43 = vpop.permute.xlu2 %2373 }
 0x62b   : > { %5445 = vmatmul.msk.f32.vlgmr.msra.gmra.mxu1 %vm2135_vm6, %v7326_v44 }
 0x62c   : > { %5521 = vmatpush.msra.mxu1 %v2382_v52 }
 0x62e   : > { %v2084_v46 = vpop.f32.mrf.mxu1  ;;  %5522 = vmatpush.msra.mxu1 %v2381_v56 }
 0x62f   : > { %v2085_v47 = vadd.f32 %v2084_v46, %v2055_v45  ;;  %v2260_v50 = vpop.permute.xlu0 %2259 }
 0x631   : > { %v7330_v48 = vmax.f32 %v2085_v47, 0.0  ;;  %v2412_v53 = vpop.permute.xlu2 %2411 }
 0x633   : > { %5446 = vmatmul.msk.f32.gmra.mxu1 %vm2135_vm6, %v7330_v48 }
 0x637   : > { %v2336_v3 = vpop.permute.xlu0 %2335 }
 0x6a8   : > { %v2163_v16 = vpop.f32.mrf.mxu1 }
 0x6a9   : > { %v2164_v17 = vadd.f32 %v2163_v16, %v2132_v12 }
 0x6ab   : > { %5447 = vmatmul.msk.f32.vlgmr.msra.gmra.mxu3 %vm1741_vm0, %v2164_v17  ;;  %5449 = vmatmul.msk.f32.vlgmr.msrb.gmra.mxu2 %vm1741_vm0, %v2164_v17 }
 0x6ac   : > { %5451 = vmatmul.msk.f32.vlgmr.msrb.gmra.mxu1 %vm1741_vm0, %v2164_v17  ;;  %5457 = vmatmul.msk.f32.vlgmr.msra.gmra.mxu0 %vm1741_vm0, %v2164_v17 }
 0x6ad   : > { %2435 = vmatpush.msrb.mxu1 %v2420_v21  ;;  %2473 = vmatpush.msra.mxu3 %v2458_v22 }
 0x6ae   : > { %2511 = vmatpush.msrb.mxu2 %v2496_v24 }
 0x6af   : > { %2436 = vmatpush.msrb.mxu1 %v2419_v25  ;;  %2474 = vmatpush.msra.mxu3 %v2457_v26  ;;  %v2446_v26 = vpop.permute.xlu2 %2445 }
 0x6b0   : > { %v2166_v34 = vpop.f32.mrf.mxu1  ;;  %2512 = vmatpush.msrb.mxu2 %v2495_v27 }
 0x6b1   : > { %v2167_v35 = vadd.f32 %v2166_v34, %v2133_v31 }
 0x6b3   : > { %5448 = vmatmul.msk.f32.gmra.mxu3 %vm1741_vm0, %v2167_v35  ;;  %5450 = vmatmul.msk.f32.gmra.mxu2 %vm1741_vm0, %v2167_v35 }
 0x6b4   : > { %5452 = vmatmul.msk.f32.gmra.mxu1 %vm1741_vm0, %v2167_v35 }
 0x6bb   : > { %5453 = vmatmul.msk.f32.vlgmr.msrb.gmra.mxu3 %vm1741_vm0, %v2164_v17  ;;  %5455 = vmatmul.msk.f32.vlgmr.msra.gmra.mxu2 %vm1741_vm0, %v2164_v17 }
 0x6bc   : > { %5458 = vmatmul.msk.f32.vlgmr.msra.gmra.mxu1 %vm1741_vm0, %v2167_v35 }
 0x6bd   : > { %2612 = vmatpush.msra.mxu1 %v1779_v11 }
 0x6bf   : > { %2613 = vmatpush.msra.mxu1 %v1778_v7 }
 0x6c1   : > { %2614 = vmatpush.msra.mxu1 %v1777_v2  ;;  %v2219_v2 = vpop.permute.xlu1 %2218 }
 0x6c3   : > { %5454 = vmatmul.msk.f32.gmra.mxu3 %vm1741_vm0, %v2167_v35  ;;  %5456 = vmatmul.msk.f32.gmra.mxu2 %vm1741_vm0, %v2167_v35 }
 0x6c4   : > { %5459 = vmatmul.msk.f32.vlgmr.msrb.gmra.mxu1 %vm1741_vm0, %v2164_v17 }
 0x6c9   : > { %v2298_v7 = vpop.permute.xlu1 %2297 }
 0x6cb   : > { %5461 = vmatmul.msk.f32.vlgmr.msra.gmra.mxu3 %vm1741_vm0, %v2164_v17  ;;  %5463 = vmatmul.msk.f32.vlgmr.msrb.gmra.mxu2 %vm1741_vm0, %v2164_v17 }
 0x6cc   : > { %5460 = vmatmul.msk.f32.gmra.mxu1 %vm1741_vm0, %v2167_v35 }
 0x6d1   : > { %v2332_v11 = vpop.permute.xlu1 %2331 }
 0x6d3   : > { %5462 = vmatmul.msk.f32.gmra.mxu3 %vm1741_vm0, %v2167_v35  ;;  %5464 = vmatmul.msk.f32.gmra.mxu2 %vm1741_vm0, %v2167_v35  ;;  %v7387_v35 = vld [vmem:[#allocation28 + $0x8] sm:$0xff] }
 0x6d4   : > { %5467 = vmatmul.msk.f32.vlgmr.msra.gmra.mxu1 %vm1852_vm2, %v2579_v4  ;;  %2703 = vperm.xlu1 %5822, %v7387_v35  }
 0x6d9   : > { %v2370_v49 = vpop.permute.xlu1 %2369 }
 0x6e1   : > { %v2450_v61 = vpop.permute.xlu1 %2449 }
 0x729   : > { %v2286_v10 = vpop.f32.mrf.mxu1 }
 0x72a   : > { %v2300_v16 = vmul.f32 %v2294_v41, %v2286_v10  ;;  %v2400_v41 = vpop.f32.mrf.mxu0  ;;  %v2408_v10 = vpop.permute.xlu0 %2407 }
 0x72e   : > { %v2198_v38 = vpop.f32.mrf.mxu3  ;;  %v2248_v39 = vpop.f32.mrf.mxu2 }
 0x72f   : > { %v2214_v51 = vmul.f32 %v2207_v42, %v2198_v38  ;;  %v2262_v59 = vmul.f32 %v2256_v6, %v2248_v39  ;;  %v2536_v42 = vld [vmem:[%s7858_s1] sm:$0xff] }
 0x730   : > { %2540 = vperm.xlu2 %5821, %v2536_v42   ;;  %v2772_v42 = vld [vmem:[#allocation22 + $0xb8] sm:$0xff] }
 0x731   : > { %v2289_v45 = vpop.f32.mrf.mxu1  ;;  %v2226_v58 = vadd.f32 %v2219_v2, %v2214_v51  ;;  %v2488_v2 = vpop.permute.xlu1 %2487  ;;  %2781 = vmatpush.msrb.mxu1 %v2772_v42 }
 0x732   : > { %v2301_v23 = vmul.f32 %v2298_v7, %v2289_v45  ;;  %v2526_v4 = vpop.permute.xlu0 %2525 }
 0x733   : > { %v2264_v12 = vadd.f32 %v2262_v59, %v2226_v58 }
 0x735   : > { %v2302_v24 = vadd.f32 %v2300_v16, %v2264_v12 }
 0x736   : > { %v2201_v46 = vpop.f32.mrf.mxu3  ;;  %v2251_v47 = vpop.f32.mrf.mxu2 }
 0x737   : > { %v2215_v52 = vmul.f32 %v2212_v40, %v2201_v46  ;;  %v2263_v13 = vmul.f32 %v2260_v50, %v2251_v47  ;;  %v2414_v40 = vmul.f32 %v2408_v10, %v2400_v41  ;;  %v2484_v46 = vpop.permute.xlu2 %2483  ;;  %v2656_v47 = vld [vmem:[%s7859_s7 + $0x8] sm:$0xff]  ;;  %v2581_v50 = vld [vmem:[%s7860_s28] sm:$0xff]  ;;  %s7863_s28 = sld [smem:[#allocation61_spill]] }
 0x738   : > { %2715 = vperm.xlu1 %5822, %v2656_v47   ;;  %2585 = vperm.xlu2 %5821, %v2581_v50   ;;  %v2770_v41 = vld [vmem:[#allocation22 + $0xa8] sm:$0xff]  ;;  %v2665_v47 = vld [vmem:[#allocation22 + $0x30] sm:$0xff] }
 0x739   : > { %v2403_v54 = vpop.f32.mrf.mxu1  ;;  %v2227_v60 = vadd.f32 %v2224_v63, %v2215_v52  ;;  %v2814_v10 = vld [vmem:[#allocation22 + $0xe8] sm:$0xff]  ;;  %v2727_v50 = vld [vmem:[#allocation22 + $0x70] sm:$0xff] }
 0x73a   : > { %v2415_v51 = vmul.f32 %v2412_v53, %v2403_v54 }
 0x73b   : > { %v2265_v17 = vadd.f32 %v2263_v13, %v2227_v60 }
 0x73d   : > { %v2303_v34 = vadd.f32 %v2301_v23, %v2265_v17  ;;  %v7393_v17 = vld [vmem:[#allocation28] sm:$0xff]  ;;  %s7864_s1 = smov %s7863_s28 }
 0x73e   : > { %v2324_v55 = vpop.f32.mrf.mxu3  ;;  %v2362_v56 = vpop.f32.mrf.mxu2 }
 0x73f   : > { %v2338_v18 = vmul.f32 %v2332_v11, %v2324_v55  ;;  %v2376_v63 = vmul.f32 %v2370_v49, %v2362_v56 }
 0x740   : > { %2698 = vperm.xlu2 %5821, %v7393_v17   ;;  %5825 = vset.pattern.permute.xlu1 %v6627_v5 }
 0x741   : > { %v2438_v27 = vpop.f32.mrf.mxu1  ;;  %v2340_v31 = vadd.f32 %v2338_v18, %v2302_v24  ;;  %2753 = vperm.xlu1 %5825, %v7393_v17   ;;  %v2534_v24 = vld [vmem:[#allocation27] sm:$0xff] }
 0x742   : > { %v2452_v49 = vmul.f32 %v2446_v26, %v2438_v27  ;;  %v2625_v26 = vld [vmem:[#allocation15 + $0x8] sm:$0xff]  ;;  %v2624_v27 = vld [vmem:[#allocation15] sm:$0xff] }
 0x743   : > { %v2378_v7 = vadd.f32 %v2376_v63, %v2340_v31  ;;  %2646 = vmatpush.msrb.mxu3 %v2625_v26  ;;  %v2580_v31 = vld [vmem:[#allocation10 + $0x8] sm:$0xff] }
 0x744   : > { %5468 = vmatmul.msk.f32.gmra.mxu1 %vm1852_vm2, %v2580_v31  ;;  %v2816_v63 = vld [vmem:[#allocation22 + $0xf8] sm:$0xff] }
 0x745   : > { %v2416_v52 = vadd.f32 %v2414_v40, %v2378_v7  ;;  %2647 = vmatpush.msrb.mxu3 %v2624_v27  ;;  %v2769_v7 = vld [vmem:[#allocation22 + $0xa0] sm:$0xff]  ;;  %v2728_v40 = vld [vmem:[#allocation22 + $0x78] sm:$0xff] }
 0x746   : > { %v2327_v21 = vpop.f32.mrf.mxu3  ;;  %v2365_v22 = vpop.f32.mrf.mxu2 }
 0x747   : > { %v2339_v25 = vmul.f32 %v2336_v3, %v2327_v21  ;;  %v2377_v11 = vmul.f32 %v2374_v43, %v2365_v22  ;;  %v2454_v59 = vadd.f32 %v2452_v49, %v2416_v52  ;;  %v2522_v3 = vpop.permute.xlu1 %2521  ;;  %2825 = vmatpush.msra.mxu3 %v2816_v63  ;;  %v2811_v52 = vld [vmem:[#allocation22 + $0xd0] sm:$0xff]  ;;  %v2726_v49 = vld [vmem:[#allocation22 + $0x68] sm:$0xff]  ;;  %v2988_v63 = vld [vmem:[#allocation22 + $0x1d8] sm:$0xff] }
 0x748   : > { %5824 = vset.pattern.permute.xlu2 %v6627_v5 }
 0x749   : > { %v2341_v6 = vadd.f32 %v2339_v25, %v2303_v34  ;;  %v2441_v55 = vpop.f32.mrf.mxu1  ;;  %5828 = vset.pattern.permute.xlu1 %v6628_v57  ;;  %2757 = vperm.xlu2 %5824, %v7387_v35   ;;  %v2535_v25 = vld [vmem:[#allocation27 + $0x8] sm:$0xff]  ;;  %v2582_v34 = vld [vmem:[%s7861_s11 + $0x8] sm:$0xff] }
 0x74a   : > { %v2453_v60 = vmul.f32 %v2450_v61, %v2441_v55  ;;  %2845 = vperm.xlu1 %5828, %v7387_v35   ;;  %2590 = vperm.xlu0 %5823, %v2582_v34   ;;  %v2664_v55 = vld [vmem:[#allocation22 + $0x28] sm:$0xff]  ;;  %v2989_v34 = vld [vmem:[#allocation22 + $0x1e0] sm:$0xff] }
 0x74b   : > { %v2379_v45 = vadd.f32 %v2377_v11, %v2341_v6  ;;  %v2815_v6 = vld [vmem:[#allocation22 + $0xf0] sm:$0xff]  ;;  %v2813_v11 = vld [vmem:[#allocation22 + $0xe0] sm:$0xff] }
 0x74c   : > { %2826 = vmatpush.msra.mxu3 %v2815_v6  ;;  %v2723_v6 = vld [vmem:[#allocation22 + $0x50] sm:$0xff] }
 0x74d   : > { %v2417_v56 = vadd.f32 %v2415_v51, %v2379_v45  ;;  %v2768_v45 = vld [vmem:[#allocation22 + $0x98] sm:$0xff]  ;;  %v2767_v51 = vld [vmem:[#allocation22 + $0x90] sm:$0xff] }
 0x74e   : > { %v2476_v38 = vpop.f32.mrf.mxu3  ;;  %v2514_v39 = vpop.f32.mrf.mxu2  ;;  %2827 = vmatpush.msra.mxu3 %v2814_v10  ;;  %v2660_v10 = vld [vmem:[#allocation22 + $0x8] sm:$0xff] }
 0x74f   : > { %v2490_v58 = vmul.f32 %v2484_v46, %v2476_v38  ;;  %v2455_v12 = vadd.f32 %v2453_v60, %v2417_v56  ;;  %v2528_v18 = vmul.f32 %v2522_v3, %v2514_v39  ;;  %v2655_v38 = vld [vmem:[%s7859_s7] sm:$0xff]  ;;  %v2546_v26 = vpop.permute.xlu1 %2545 }
 0x750   : > { %v2666_v39 = vld [vmem:[#allocation22 + $0x38] sm:$0xff]  ;;  %2828 = vmatpush.msra.mxu3 %v2813_v11  ;;  %v2663_v56 = vld [vmem:[#allocation22 + $0x20] sm:$0xff]  ;;  %v2942_v11 = vld [vmem:[#allocation22 + $0x188] sm:$0xff] }
 0x751   : > { %v2492_v13 = vadd.f32 %v2490_v58, %v2454_v59  ;;  %5826 = vset.pattern.permute.xlu2 %v6625_v0  ;;  %v2812_v46 = vld [vmem:[#allocation22 + $0xd8] sm:$0xff]  ;;  %2681 = vmatpush.msra.mxu2 %v2666_v39  ;;  %v2766_v58 = vld [vmem:[#allocation22 + $0x88] sm:$0xff]  ;;  %v2725_v60 = vld [vmem:[#allocation22 + $0x60] sm:$0xff] }
 0x752   : > { %5830 = vset.pattern.permute.xlu1 %v6630_v8  ;;  %2801 = vperm.xlu2 %5826, %v7387_v35   ;;  %v2810_v59 = vld [vmem:[#allocation22 + $0xc8] sm:$0xff]  ;;  %v2662_v3 = vld [vmem:[#allocation22 + $0x18] sm:$0xff]  ;;  %v2659_v39 = vld [vmem:[#allocation22] sm:$0xff] }
 0x753   : > { %v2530_v21 = vadd.f32 %v2528_v18, %v2492_v13  ;;  %2889 = vperm.xlu1 %5830, %v7387_v35   ;;  %2710 = vperm.xlu0 %5823, %v2655_v38   ;;  %v2947_v13 = vld [vmem:[#allocation22 + $0x1b0] sm:$0xff]  ;;  %v2986_v38 = vld [vmem:[#allocation22 + $0x1c8] sm:$0xff] }
 0x754   : > { %2682 = vmatpush.msra.mxu2 %v2665_v47  ;;  %2829 = vmatpush.msra.mxu3 %v2812_v46  ;;  %v2860_v46 = vld [vmem:[#allocation22 + $0x138] sm:$0xff] }
 0x755   : > { %v2532_v23 = vmax.f32 %v2530_v21, 0.0  ;;  %v2945_v21 = vld [vmem:[#allocation22 + $0x1a0] sm:$0xff]  ;;  %v2904_v47 = vld [vmem:[#allocation22 + $0x178] sm:$0xff] }
 0x756   : > { %v2479_v43 = vpop.f32.mrf.mxu3  ;;  %v2517_v9 = vpop.f32.mrf.mxu2  ;;  %2683 = vmatpush.msra.mxu2 %v2664_v55  ;;  %2830 = vmatpush.msra.mxu3 %v2811_v52  ;;  %v2858_v52 = vld [vmem:[#allocation22 + $0x128] sm:$0xff] }
 0x757   : > { %v2491_v16 = vmul.f32 %v2488_v2, %v2479_v43  ;;  %v2529_v54 = vmul.f32 %v2526_v4, %v2517_v9  ;;  %v2771_v2 = vld [vmem:[#allocation22 + $0xb0] sm:$0xff]  ;;  %v2765_v4 = vld [vmem:[#allocation22 + $0x80] sm:$0xff]  ;;  %v2948_v9 = vld [vmem:[#allocation22 + $0x1b8] sm:$0xff]  ;;  %v2704_v29 = vpop.permute.xlu1 %2703 }
 0x758   : > { %2782 = vmatpush.msrb.mxu1 %v2771_v2  ;;  %v2809_v43 = vld [vmem:[#allocation22 + $0xc0] sm:$0xff]  ;;  %2684 = vmatpush.msra.mxu2 %v2663_v56  ;;  %v2661_v2 = vld [vmem:[#allocation22 + $0x10] sm:$0xff]  ;;  %v2902_v55 = vld [vmem:[#allocation22 + $0x168] sm:$0xff] }
 0x759   : > { %v2493_v53 = vadd.f32 %v2491_v16, %v2455_v12  ;;  %2831 = vmatpush.msra.mxu3 %v2810_v59  ;;  %v2724_v12 = vld [vmem:[#allocation22 + $0x58] sm:$0xff]  ;;  %v2946_v16 = vld [vmem:[#allocation22 + $0x1a8] sm:$0xff]  ;;  %v2901_v56 = vld [vmem:[#allocation22 + $0x160] sm:$0xff] }
 0x75a   : > { %5829 = vset.pattern.permute.xlu2 %v6628_v57  ;;  %2783 = vmatpush.msrb.mxu1 %v2770_v41  ;;  %v2943_v41 = vld [vmem:[#allocation22 + $0x190] sm:$0xff]  ;;  %v2900_v59 = vld [vmem:[#allocation22 + $0x158] sm:$0xff] }
 0x75b   : > { %v2531_v22 = vadd.f32 %v2529_v54, %v2493_v53  ;;  %5833 = vset.pattern.permute.xlu1 %v6629_v62  ;;  %2841 = vperm.xlu2 %5829, %v7393_v17  }
 0x75c   : > { %2929 = vperm.xlu1 %5833, %v7393_v17   ;;  %2784 = vmatpush.msrb.mxu1 %v2769_v7  ;;  %v2722_v7 = vld [vmem:[#allocation22 + $0x48] sm:$0xff] }
 0x75d   : > { %v2533_v61 = vmax.f32 %v2531_v22, 0.0  ;;  %2685 = vmatpush.msra.mxu2 %v2662_v3  ;;  %2832 = vmatpush.msra.mxu3 %v2809_v43  ;;  %v2899_v3 = vld [vmem:[#allocation22 + $0x150] sm:$0xff]  ;;  %v2898_v43 = vld [vmem:[#allocation22 + $0x148] sm:$0xff] }
 0x75e   : > { %2785 = vmatpush.msrb.mxu1 %v2768_v45  ;;  %5827 = vset.pattern.permute.xlu0 %v6625_v0  ;;  %v2985_v45 = vld [vmem:[#allocation22 + $0x1c0] sm:$0xff] }
 0x75f   : > { %2568 = vmatpush.msrb.mxu0 %v2533_v61  ;;  %2797 = vperm.xlu0 %5827, %v7393_v17   ;;  %v2992_v61 = vld [vmem:[#allocation22 + $0x1f8] sm:$0xff] }
 0x760   : > { %2786 = vmatpush.msrb.mxu1 %v2767_v51  ;;  %2686 = vmatpush.msra.mxu2 %v2661_v2  ;;  %v2903_v51 = vld [vmem:[#allocation22 + $0x170] sm:$0xff]  ;;  %v3033_v2 = vld [vmem:[#allocation22 + $0x220] sm:$0xff] }
 0x761   : > { %2569 = vmatpush.msrb.mxu0 %v2532_v23  ;;  %v2944_v23 = vld [vmem:[#allocation22 + $0x198] sm:$0xff] }
 0x762   : > { %5465 = vmatmul.msk.f32.vlgmr.msrb.gmra.mxu0 %vm1741_vm0, %v2534_v24  ;;  %2787 = vmatpush.msrb.mxu1 %v2766_v58  ;;  %v2991_v24 = vld [vmem:[#allocation22 + $0x1f0] sm:$0xff]  ;;  %v2856_v58 = vld [vmem:[#allocation22 + $0x118] sm:$0xff] }
 0x763   : > { %5831 = vset.pattern.permute.xlu2 %v6630_v8  ;;  %2737 = vmatpush.msra.mxu0 %v2728_v40  ;;  %v2721_v40 = vld [vmem:[#allocation22 + $0x40] sm:$0xff] }
 0x764   : > { %5835 = vset.pattern.permute.xlu1 %v6631_v30  ;;  %2885 = vperm.xlu2 %5831, %v7393_v17  }
 0x765   : > { %2973 = vperm.xlu1 %5835, %v7393_v17   ;;  %2738 = vmatpush.msra.mxu0 %v2727_v50  ;;  %v2859_v50 = vld [vmem:[#allocation22 + $0x130] sm:$0xff] }
 0x766   : > { %2788 = vmatpush.msrb.mxu1 %v2765_v4  ;;  %2687 = vmatpush.msra.mxu2 %v2660_v10  ;;  %v2854_v4 = vld [vmem:[#allocation22 + $0x108] sm:$0xff] }
 0x767   : > { %2739 = vmatpush.msra.mxu0 %v2726_v49  ;;  %5832 = vset.pattern.permute.xlu0 %v6629_v62  ;;  %v2857_v49 = vld [vmem:[#allocation22 + $0x120] sm:$0xff] }
 0x768   : > { %2957 = vmatpush.msra.mxu1 %v2948_v9  ;;  %2933 = vperm.xlu0 %5832, %v7387_v35   ;;  %v2853_v9 = vld [vmem:[#allocation22 + $0x100] sm:$0xff] }
 0x769   : > { %2740 = vmatpush.msra.mxu0 %v2725_v60  ;;  %2688 = vmatpush.msra.mxu2 %v2659_v39  ;;  %v2855_v60 = vld [vmem:[#allocation22 + $0x110] sm:$0xff]  ;;  %v3119_v39 = vld [vmem:[#allocation12] sm:$0xff] }
 0x76a   : > { %5466 = vmatmul.msk.f32.gmra.mxu0 %vm1741_vm0, %v2535_v25  ;;  %2958 = vmatpush.msra.mxu1 %v2947_v13  ;;  %v2990_v25 = vld [vmem:[#allocation22 + $0x1e8] sm:$0xff]  ;;  %v2616_v13 = vpop.f32.mrf.mxu1 }
 0x76b   : > { %2741 = vmatpush.msra.mxu0 %v2724_v12  ;;  %2869 = vmatpush.msrb.mxu2 %v2860_v46  ;;  %v2897_v12 = vld [vmem:[#allocation22 + $0x140] sm:$0xff] }
 0x76c   : > { %5834 = vset.pattern.permute.xlu2 %v6631_v30  ;;  %2959 = vmatpush.msra.mxu1 %v2946_v16 }
 0x76d   : > { %2977 = vperm.xlu2 %5834, %v7387_v35   ;;  %5838 = vset.pattern.permute.xlu1 %v6632_v36 }
 0x76e   : > { %3065 = vperm.xlu1 %5838, %v7387_v35   ;;  %2960 = vmatpush.msra.mxu1 %v2945_v21 }
 0x76f   : > { %2742 = vmatpush.msra.mxu0 %v2723_v6  ;;  %2870 = vmatpush.msrb.mxu2 %v2859_v50 }
 0x770   : > { %2961 = vmatpush.msra.mxu1 %v2944_v23  ;;  %5837 = vset.pattern.permute.xlu0 %v6633_v37 }
 0x771   : > { %3017 = vperm.xlu0 %5837, %v7393_v17   ;;  %2743 = vmatpush.msra.mxu0 %v2722_v7 }
 0x772   : > { %2962 = vmatpush.msra.mxu1 %v2943_v41  ;;  %2871 = vmatpush.msrb.mxu2 %v2858_v52 }
 0x773   : > { %2744 = vmatpush.msra.mxu0 %v2721_v40  ;;  %v3076_v40 = vld [vmem:[%s7862_s30] sm:$0xff] }
 0x774   : > { %2963 = vmatpush.msra.mxu1 %v2942_v11  ;;  %2872 = vmatpush.msrb.mxu2 %v2857_v49 }
 0x775   : > { %5836 = vset.pattern.permute.xlu2 %v6633_v37  ;;  %2913 = vmatpush.msrb.mxu0 %v2904_v47 }
 0x776   : > { %3021 = vperm.xlu2 %5836, %v7387_v35   ;;  %5840 = vset.pattern.permute.xlu1 %v6626_v1  ;;  %v2987_v35 = vld [vmem:[#allocation22 + $0x1d0] sm:$0xff] }
 0x777   : > { %2914 = vmatpush.msrb.mxu0 %v2903_v51  ;;  %2873 = vmatpush.msrb.mxu2 %v2856_v58  ;;  %v3122_v58 = vld [vmem:[%s7863_s28 + $0x8] sm:$0xff]  ;;  %s5520_s28 = sshll.u32 %s7867_s0, 7 }
 0x778   : > { %3080 = vperm.xlu1 %5840, %v3076_v40  }
 0x779   : > { %5842 = vset.pattern.permute.xlu0 %v6626_v1  ;;  %2915 = vmatpush.msrb.mxu0 %v2902_v55 }
 0x77a   : > { %2874 = vmatpush.msrb.mxu2 %v2855_v60 }
 0x77b   : > { %2916 = vmatpush.msrb.mxu0 %v2901_v56  ;;  %v3120_v56 = vld [vmem:[#allocation12 + $0x8] sm:$0xff] }
 0x77c   : > { %2875 = vmatpush.msrb.mxu2 %v2854_v4 }
 0x77d   : > { %2917 = vmatpush.msrb.mxu0 %v2900_v59 }
 0x77e   : > { %5839 = vset.pattern.permute.xlu2 %v6632_v36  ;;  %2876 = vmatpush.msrb.mxu2 %v2853_v9 }
 0x77f   : > { %3061 = vperm.xlu2 %5839, %v7393_v17   ;;  %v2941_v17 = vld [vmem:[#allocation22 + $0x180] sm:$0xff]  ;;  %2918 = vmatpush.msrb.mxu0 %v2899_v3 }
 0x780   : > { %2964 = vmatpush.msra.mxu1 %v2941_v17  ;;  %3130 = vperm.xlu1 %5840, %v3122_v58  }
 0x781   : > { %2919 = vmatpush.msrb.mxu0 %v2898_v43 }
 0x783   : > { %2920 = vmatpush.msrb.mxu0 %v2897_v12 }
 0x787   : > { %5841 = vset.pattern.permute.xlu2 %v6626_v1 }
 0x78a   : > { %v2541_v18 = vpop.permute.xlu2 %2540 }
 0x792   : > { %v2586_v16 = vpop.permute.xlu2 %2585 }
 0x7bc   : > { %v2591_v21 = vpop.permute.xlu0 %2590 }
 0x7c5   : > { %v2711_v50 = vpop.permute.xlu0 %2710 }
 0x7d1   : > { %v2798_v12 = vpop.permute.xlu0 %2797 }
 0x7df   : > { %v2571_v53 = vpop.f32.mrf.mxu0 }
 0x7e0   : > { %v2572_v54 = vadd.f32 %v2571_v53, %v2541_v18  ;;  %v2617_v18 = vadd.f32 %v2616_v13, %v2586_v16  ;;  %v2619_v53 = vpop.f32.mrf.mxu1 }
 0x7e2   : > { %v7431_v22 = vmax.f32 %v2572_v54, 0.0  ;;  %v2622_v54 = vmax.f32 %v2617_v18, 0.0 }
 0x7e4   : > { %5469 = vmatmul.msk.f32.vlgmr.msrb.gmra.mxu3 %vm1741_vm0, %v7431_v22 }
 0x7e5   : > { %3001 = vmatpush.msrb.mxu3 %v2992_v61 }
 0x7e7   : > { %v2574_v27 = vpop.f32.mrf.mxu0  ;;  %3002 = vmatpush.msrb.mxu3 %v2991_v24  ;;  %v2620_v24 = vadd.f32 %v2619_v53, %v2591_v21 }
 0x7e8   : > { %v2575_v31 = vadd.f32 %v2574_v27, %v2546_v26  ;;  %v3035_v27 = vld [vmem:[#allocation22 + $0x230] sm:$0xff] }
 0x7e9   : > { %3003 = vmatpush.msrb.mxu3 %v2990_v25  ;;  %v3036_v25 = vld [vmem:[#allocation22 + $0x238] sm:$0xff]  ;;  %v2623_v26 = vmax.f32 %v2620_v24, 0.0 }
 0x7ea   : > { %v7437_v42 = vmax.f32 %v2575_v31, 0.0  ;;  %v3034_v31 = vld [vmem:[#allocation22 + $0x228] sm:$0xff] }
 0x7eb   : > { %3004 = vmatpush.msrb.mxu3 %v2989_v34 }
 0x7ec   : > { %5470 = vmatmul.msk.f32.gmra.mxu3 %vm1741_vm0, %v7437_v42 }
 0x7ed   : > { %3005 = vmatpush.msrb.mxu3 %v2988_v63 }
 0x7ef   : > { %3006 = vmatpush.msrb.mxu3 %v2987_v35 }
 0x7f1   : > { %3007 = vmatpush.msrb.mxu3 %v2986_v38 }
 0x7f3   : > { %3008 = vmatpush.msrb.mxu3 %v2985_v45 }
 0x867   : > { %v2649_v61 = vpop.f32.mrf.mxu3 }
 0x868   : > { %v2650_v23 = vadd.f32 %v2649_v61, %v2622_v54  ;;  %v7476_v54 = vld [vmem:[#allocation31] sm:$0xff] }
 0x869   : > { %3419 = vperm.xlu1 %5840, %v7476_v54  }
 0x86a   : > { %5471 = vmatmul.msk.f32.vlgmr.msra.gmra.mxu2 %vm1788_vm1, %v2650_v23  ;;  %5473 = vmatmul.msk.f32.vlgmr.msra.gmra.mxu0 %vm1788_vm1, %v2650_v23 }
 0x86b   : > { %5475 = vmatmul.msk.f32.vlgmr.msrb.gmra.mxu1 %vm1788_vm1, %v2650_v23  ;;  %5477 = vmatmul.msk.f32.vlgmr.msra.gmra.mxu3 %vm1788_vm1, %v2650_v23 }
 0x86c   : > { %3153 = vmatpush.msrb.mxu1 %v1640_v32  ;;  %3176 = vmatpush.msra.mxu3 %v1641_v33  ;;  %v2716_v33 = vpop.permute.xlu1 %2715 }
 0x86d   : > { %3045 = vmatpush.msra.mxu2 %v3036_v25 }
 0x86e   : > { %3154 = vmatpush.msrb.mxu1 %v1638_v19  ;;  %3177 = vmatpush.msra.mxu3 %v1639_v20  ;;  %v3029_v19 = vld [vmem:[#allocation22 + $0x200] sm:$0xff]  ;;  %v2699_v20 = vpop.permute.xlu2 %2698 }
 0x86f   : > { %v2652_v34 = vpop.f32.mrf.mxu3  ;;  %3046 = vmatpush.msra.mxu2 %v3035_v27 }
 0x870   : > { %v2653_v63 = vadd.f32 %v2652_v34, %v2623_v26 }
 0x871   : > { %3047 = vmatpush.msra.mxu2 %v3034_v31 }
 0x872   : > { %5472 = vmatmul.msk.f32.gmra.mxu2 %vm1788_vm1, %v2653_v63  ;;  %5474 = vmatmul.msk.f32.gmra.mxu0 %vm1788_vm1, %v2653_v63 }
 0x873   : > { %5476 = vmatmul.msk.f32.gmra.mxu1 %vm1788_vm1, %v2653_v63  ;;  %5478 = vmatmul.msk.f32.gmra.mxu3 %vm1788_vm1, %v2653_v63 }
 0x874   : > { %3048 = vmatpush.msra.mxu2 %v3033_v2  ;;  %v2754_v41 = vpop.permute.xlu1 %2753 }
 0x876   : > { %3049 = vmatpush.msra.mxu2 %v3032_v28  ;;  %v2758_v32 = vpop.permute.xlu2 %2757 }
 0x878   : > { %3050 = vmatpush.msra.mxu2 %v3031_v14 }
 0x87a   : > { %5479 = vmatmul.msk.f32.vlgmr.msrb.gmra.mxu2 %vm1788_vm1, %v2650_v23  ;;  %5481 = vmatmul.msk.f32.vlgmr.msrb.gmra.mxu0 %vm1788_vm1, %v2650_v23 }
 0x87b   : > { %5483 = vmatmul.msk.f32.vlgmr.msra.gmra.mxu1 %vm1788_vm1, %v2650_v23  ;;  %5485 = vmatmul.msk.f32.vlgmr.msrb.gmra.mxu3 %vm1788_vm1, %v2650_v23 }
 0x87c   : > { %3051 = vmatpush.msra.mxu2 %v3030_v15  ;;  %v2846_v7 = vpop.permute.xlu1 %2845 }
 0x87e   : > { %3052 = vmatpush.msra.mxu2 %v3029_v19  ;;  %v2802_v6 = vpop.permute.xlu2 %2801  ;;  %v3077_v19 = vld [vmem:[%s7862_s30 + $0x8] sm:$0xff] }
 0x87f   : > { %3085 = vperm.xlu2 %5841, %v3077_v19   ;;  %v3323_v19 = vld [vmem:[#allocation24 + $0x1f0] sm:$0xff] }
 0x880   : > { %3348 = vmatpush.msrb.mxu3 %v3323_v19  ;;  %v3298_v19 = vld [vmem:[#allocation24 + $0x128] sm:$0xff] }
 0x882   : > { %5480 = vmatmul.msk.f32.gmra.mxu2 %vm1788_vm1, %v2653_v63  ;;  %5482 = vmatmul.msk.f32.gmra.mxu0 %vm1788_vm1, %v2653_v63 }
 0x883   : > { %5484 = vmatmul.msk.f32.gmra.mxu1 %vm1788_vm1, %v2653_v63  ;;  %5486 = vmatmul.msk.f32.gmra.mxu3 %vm1788_vm1, %v2653_v63 }
 0x884   : > { %v2890_v51 = vpop.permute.xlu1 %2889 }
 0x886   : > { %v2842_v35 = vpop.permute.xlu2 %2841 }
 0x88a   : > { %5487 = vmatmul.msk.f32.vlgmr.msra.gmra.mxu2 %vm1788_vm1, %v2650_v23 }
 0x88b   : > { %5493 = vmatmul.msk.f32.vlgmr.msra.gmra.mxu3 %vm1741_vm0, %v3119_v39  ;;  %5491 = vmatmul.msk.f32.vlgmr.msrb.gmra.mxu1 %vm1741_vm0, %v3119_v39 }
 0x88c   : > { %v2930_v21 = vpop.permute.xlu1 %2929 }
 0x88e   : > { %v2886_v17 = vpop.permute.xlu2 %2885 }
 0x892   : > { %5488 = vmatmul.msk.f32.gmra.mxu2 %vm1788_vm1, %v2653_v63  ;;  %v2934_v63 = vpop.permute.xlu0 %2933 }
 0x893   : > { %5494 = vmatmul.msk.f32.gmra.mxu3 %vm1741_vm0, %v3120_v56  ;;  %5492 = vmatmul.msk.f32.gmra.mxu1 %vm1741_vm0, %v3120_v56 }
 0x896   : > { %v2978_v3 = vpop.permute.xlu2 %2977 }
 0x89e   : > { %v3022_v15 = vpop.permute.xlu2 %3021 }
 0x8e7   : > { %v2746_v10 = vpop.f32.mrf.mxu0 }
 0x8e8   : > { %v2790_v38 = vpop.f32.mrf.mxu1  ;;  %v2760_v9 = vmul.f32 %v2754_v41, %v2746_v10  ;;  %v2974_v10 = vpop.permute.xlu1 %2973 }
 0x8e9   : > { %v2804_v61 = vmul.f32 %v2798_v12, %v2790_v38 }
 0x8ed   : > { %v2690_v11 = vpop.f32.mrf.mxu2 }
 0x8ee   : > { %v2834_v45 = vpop.f32.mrf.mxu3  ;;  %v2706_v52 = vmul.f32 %v2699_v20, %v2690_v11 }
 0x8ef   : > { %v2749_v46 = vpop.f32.mrf.mxu0  ;;  %v2848_v31 = vmul.f32 %v2842_v35, %v2834_v45 }
 0x8f0   : > { %v2793_v49 = vpop.f32.mrf.mxu1  ;;  %v2718_v59 = vadd.f32 %v2711_v50, %v2706_v52  ;;  %v2761_v13 = vmul.f32 %v2758_v32, %v2749_v46  ;;  %v3257_v32 = vld [vmem:[%s6827_s13] sm:$0xff]  ;;  %v3018_v46 = vpop.permute.xlu0 %3017 }
 0x8f1   : > { %v2805_v23 = vmul.f32 %v2802_v6, %v2793_v49  ;;  %3433 = vperm.xlu1 %5840, %v3257_v32   ;;  %v3066_v49 = vpop.permute.xlu1 %3065  ;;  %v3322_v32 = vld [vmem:[#allocation24 + $0x1e8] sm:$0xff] }
 0x8f2   : > { %v2762_v18 = vadd.f32 %v2760_v9, %v2718_v59 }
 0x8f4   : > { %v2806_v25 = vadd.f32 %v2804_v61, %v2762_v18  ;;  %v3201_v61 = vld [vmem:[#allocation16 + $0x60] sm:$0xff] }
 0x8f5   : > { %v2693_v47 = vpop.f32.mrf.mxu2 }
 0x8f6   : > { %v2707_v55 = vmul.f32 %v2704_v29, %v2693_v47  ;;  %v2837_v4 = vpop.f32.mrf.mxu3  ;;  %v2850_v20 = vadd.f32 %v2848_v31, %v2806_v25  ;;  %v3200_v25 = vld [vmem:[#allocation16 + $0x58] sm:$0xff] }
 0x8f7   : > { %v2922_v16 = vpop.f32.mrf.mxu0  ;;  %v2849_v34 = vmul.f32 %v2846_v7, %v2837_v4  ;;  %v7481_v7 = vld [vmem:[#allocation31 + $0x8] sm:$0xff]  ;;  %v3196_v31 = vld [vmem:[#allocation16 + $0x38] sm:$0xff] }
 0x8f8   : > { %v2719_v60 = vadd.f32 %v2716_v33, %v2707_v55  ;;  %v2966_v24 = vpop.f32.mrf.mxu1  ;;  %v2936_v11 = vmul.f32 %v2930_v21, %v2922_v16  ;;  %3424 = vperm.xlu2 %5841, %v7481_v7   ;;  %v3258_v4 = vld [vmem:[%s6827_s13 + $0x8] sm:$0xff]  ;;  %v3075_v21 = vld [vmem:[#allocation30 + $0x8] sm:$0xff] }
 0x8f9   : > { %v2980_v45 = vmul.f32 %v2974_v10, %v2966_v24  ;;  %5845 = vset.pattern.permute.xlu1 %v6625_v0  ;;  %v3199_v24 = vld [vmem:[#allocation16 + $0x50] sm:$0xff] }
 0x8fa   : > { %v2763_v53 = vadd.f32 %v2761_v13, %v2719_v60  ;;  %3780 = vperm.xlu1 %5845, %v7481_v7   ;;  %v3292_v10 = vld [vmem:[#allocation24 + $0xf8] sm:$0xff] }
 0x8fc   : > { %v2807_v26 = vadd.f32 %v2805_v23, %v2763_v53  ;;  %v3074_v53 = vld [vmem:[#allocation30] sm:$0xff] }
 0x8fd   : > { %v2878_v43 = vpop.f32.mrf.mxu2  ;;  %v3202_v23 = vld [vmem:[#allocation16 + $0x68] sm:$0xff] }
 0x8fe   : > { %v2892_v2 = vmul.f32 %v2886_v17, %v2878_v43  ;;  %v3010_v14 = vpop.f32.mrf.mxu3  ;;  %v2851_v29 = vadd.f32 %v2849_v34, %v2807_v26  ;;  %v3197_v26 = vld [vmem:[#allocation16 + $0x40] sm:$0xff]  ;;  %v3194_v34 = vld [vmem:[#allocation16 + $0x28] sm:$0xff] }
 0x8ff   : > { %v2925_v33 = vpop.f32.mrf.mxu0  ;;  %v3024_v56 = vmul.f32 %v3018_v46, %v3010_v14  ;;  %v3190_v14 = vld [vmem:[#allocation16 + $0x8] sm:$0xff]  ;;  %v3316_v46 = vld [vmem:[#allocation24 + $0x1b8] sm:$0xff] }
 0x900   : > { %v2894_v6 = vadd.f32 %v2892_v2, %v2850_v20  ;;  %v2937_v38 = vmul.f32 %v2934_v63, %v2925_v33  ;;  %v2969_v39 = vpop.f32.mrf.mxu1  ;;  %3438 = vperm.xlu2 %5841, %v3258_v4   ;;  %v3191_v63 = vld [vmem:[#allocation16 + $0x10] sm:$0xff]  ;;  %v3192_v2 = vld [vmem:[#allocation16 + $0x18] sm:$0xff]  ;;  %v3319_v33 = vld [vmem:[#allocation24 + $0x1d0] sm:$0xff] }
 0x901   : > { %v2981_v47 = vmul.f32 %v2978_v3, %v2969_v39  ;;  %v3324_v20 = vld [vmem:[#allocation24 + $0x1f8] sm:$0xff]  ;;  %v3318_v39 = vld [vmem:[#allocation24 + $0x1c8] sm:$0xff]  ;;  %v3309_v4 = vld [vmem:[#allocation24 + $0x180] sm:$0xff] }
 0x902   : > { %v2938_v40 = vadd.f32 %v2936_v11, %v2894_v6  ;;  %5848 = vset.pattern.permute.xlu1 %v6628_v57  ;;  %v3320_v6 = vld [vmem:[#allocation24 + $0x1d8] sm:$0xff]  ;;  %v3289_v11 = vld [vmem:[#allocation24 + $0xe0] sm:$0xff] }
 0x903   : > { %3949 = vperm.xlu1 %5848, %v7476_v54  }
 0x904   : > { %v2982_v52 = vadd.f32 %v2980_v45, %v2938_v40  ;;  %v3287_v40 = vld [vmem:[#allocation24 + $0xd0] sm:$0xff] }
 0x905   : > { %v2881_v27 = vpop.f32.mrf.mxu2  ;;  %v3315_v45 = vld [vmem:[#allocation24 + $0x1b0] sm:$0xff] }
 0x906   : > { %v2893_v28 = vmul.f32 %v2890_v51, %v2881_v27  ;;  %v3013_v50 = vpop.f32.mrf.mxu3  ;;  %v3062_v51 = vpop.permute.xlu2 %3061  ;;  %v3026_v43 = vadd.f32 %v3024_v56, %v2982_v52  ;;  %v3195_v27 = vld [vmem:[#allocation16 + $0x30] sm:$0xff]  ;;  %v3314_v52 = vld [vmem:[#allocation24 + $0x1a8] sm:$0xff]  ;;  %v3311_v56 = vld [vmem:[#allocation24 + $0x190] sm:$0xff] }
 0x907   : > { %v3025_v58 = vmul.f32 %v3022_v15, %v3013_v50  ;;  %v3121_v15 = vld [vmem:[%s7864_s1] sm:$0xff]  ;;  %v3286_v50 = vld [vmem:[#allocation24 + $0xc8] sm:$0xff]  ;;  %s7709_s1 = scalar_lea.vmem %s6842_s4, %s5520_s28 }
 0x908   : > { %v2895_v41 = vadd.f32 %v2893_v28, %v2851_v29  ;;  %5844 = vset.pattern.permute.xlu2 %v6627_v5  ;;  %v3189_v28 = vld [vmem:[#allocation16] sm:$0xff]  ;;  %3125 = vperm.xlu0 %5842, %v3121_v15   ;;  %v3321_v29 = vld [vmem:[#allocation24 + $0x1e0] sm:$0xff] }
 0x909   : > { %3603 = vperm.xlu2 %5844, %v7476_v54   ;;  %3349 = vmatpush.msrb.mxu3 %v3321_v29  ;;  %v3297_v15 = vld [vmem:[#allocation24 + $0x120] sm:$0xff] }
 0x90a   : > { %v2939_v17 = vadd.f32 %v2937_v38, %v2895_v41  ;;  %v3291_v41 = vld [vmem:[#allocation24 + $0xf0] sm:$0xff]  ;;  %v3317_v38 = vld [vmem:[#allocation24 + $0x1c0] sm:$0xff] }
 0x90b   : > { %5850 = vset.pattern.permute.xlu1 %v6630_v8  ;;  %3325 = vmatpush.msra.mxu1 %v3291_v41  ;;  %v3269_v29 = vld [vmem:[#allocation24 + $0x40] sm:$0xff] }
 0x90c   : > { %v2983_v55 = vadd.f32 %v2981_v47, %v2939_v17  ;;  %4122 = vperm.xlu1 %5850, %v7476_v54   ;;  %3350 = vmatpush.msrb.mxu3 %v3319_v33  ;;  %v3288_v17 = vld [vmem:[#allocation24 + $0xd8] sm:$0xff]  ;;  %v3285_v47 = vld [vmem:[#allocation24 + $0xc0] sm:$0xff]  ;;  %v3295_v33 = vld [vmem:[#allocation24 + $0x110] sm:$0xff] }
 0x90d   : > { %v3054_v35 = vpop.f32.mrf.mxu2  ;;  %3326 = vmatpush.msra.mxu1 %v3289_v11  ;;  %v3268_v11 = vld [vmem:[#allocation24 + $0x38] sm:$0xff] }
 0x90e   : > { %v3068_v59 = vmul.f32 %v3062_v51, %v3054_v35  ;;  %v3027_v9 = vadd.f32 %v3025_v58, %v2983_v55  ;;  %v3290_v35 = vld [vmem:[#allocation24 + $0xe8] sm:$0xff]  ;;  %3351 = vmatpush.msrb.mxu3 %v3317_v38  ;;  %v3313_v51 = vld [vmem:[#allocation24 + $0x1a0] sm:$0xff]  ;;  %v3283_v55 = vld [vmem:[#allocation24 + $0xb0] sm:$0xff] }
 0x90f   : > { %3327 = vmatpush.msra.mxu1 %v3287_v40  ;;  %v3312_v58 = vld [vmem:[#allocation24 + $0x198] sm:$0xff] }
 0x910   : > { %v3070_v3 = vadd.f32 %v3068_v59, %v3026_v43  ;;  %3352 = vmatpush.msrb.mxu3 %v3315_v45  ;;  %v3281_v59 = vld [vmem:[#allocation24 + $0xa0] sm:$0xff]  ;;  %v3310_v43 = vld [vmem:[#allocation24 + $0x188] sm:$0xff]  ;;  %v3509_v45 = vld [vmem:[#allocation24 + $0x3f8] sm:$0xff]  ;;  %5843 = vset.pattern.permute.xlu0 %v6627_v5 }
 0x911   : > { %5846 = vset.pattern.permute.xlu2 %v6625_v0  ;;  %v3203_v0 = vld [vmem:[#allocation16 + $0x70] sm:$0xff]  ;;  %3328 = vmatpush.msra.mxu1 %v3285_v47  ;;  %v3266_v47 = vld [vmem:[#allocation24 + $0x28] sm:$0xff]  ;;  %v3454_v5 = vld [vmem:[#allocation24 + $0x240] sm:$0xff] }
 0x912   : > { %v3072_v18 = vmax.f32 %v3070_v3, 0.0  ;;  %3776 = vperm.xlu2 %5846, %v7476_v54   ;;  %3219 = vmatpush.msrb.mxu2 %v3203_v0  ;;  %v3307_v3 = vld [vmem:[#allocation24 + $0x170] sm:$0xff] }
 0x913   : > { %3353 = vmatpush.msrb.mxu3 %v3313_v51  ;;  %3329 = vmatpush.msra.mxu1 %v3283_v55  ;;  %v3275_v0 = vld [vmem:[#allocation24 + $0x70] sm:$0xff]  ;;  %v3507_v51 = vld [vmem:[#allocation24 + $0x3e8] sm:$0xff]  ;;  %v3264_v55 = vld [vmem:[#allocation24 + $0x18] sm:$0xff] }
 0x914   : > { %5853 = vset.pattern.permute.xlu1 %v6631_v30  ;;  %3220 = vmatpush.msrb.mxu2 %v3201_v61  ;;  %v3303_v61 = vld [vmem:[#allocation24 + $0x150] sm:$0xff] }
 0x915   : > { %v3057_v60 = vpop.f32.mrf.mxu2  ;;  %4472 = vperm.xlu1 %5853, %v7481_v7   ;;  %3354 = vmatpush.msrb.mxu3 %v3311_v56  ;;  %v3505_v56 = vld [vmem:[#allocation24 + $0x3d8] sm:$0xff] }
 0x916   : > { %v3069_v12 = vmul.f32 %v3066_v49, %v3057_v60  ;;  %3221 = vmatpush.msrb.mxu2 %v3199_v24  ;;  %v3284_v49 = vld [vmem:[#allocation24 + $0xb8] sm:$0xff]  ;;  %v3282_v60 = vld [vmem:[#allocation24 + $0xa8] sm:$0xff]  ;;  %3330 = vmatpush.msra.mxu1 %v3281_v59  ;;  %v3081_v24 = vpop.permute.xlu1 %3080 }
 0x917   : > { %3355 = vmatpush.msrb.mxu3 %v3309_v4  ;;  %v3262_v59 = vld [vmem:[#allocation24 + $0x8] sm:$0xff]  ;;  %v3502_v4 = vld [vmem:[#allocation24 + $0x3c0] sm:$0xff]  ;;  %3607 = vperm.xlu0 %5843, %v7481_v7  }
 0x918   : > { %v3071_v13 = vadd.f32 %v3069_v12, %v3027_v9  ;;  %3222 = vmatpush.msrb.mxu2 %v3197_v26  ;;  %v3279_v9 = vld [vmem:[#allocation24 + $0x90] sm:$0xff]  ;;  %v3280_v12 = vld [vmem:[#allocation24 + $0x98] sm:$0xff]  ;;  %v3273_v26 = vld [vmem:[#allocation24 + $0x60] sm:$0xff] }
 0x919   : > { %3331 = vmatpush.msra.mxu1 %v3279_v9  ;;  %3356 = vmatpush.msrb.mxu3 %v3307_v3  ;;  %v3503_v9 = vld [vmem:[#allocation24 + $0x3c8] sm:$0xff]  ;;  %v3500_v3 = vld [vmem:[#allocation24 + $0x3b0] sm:$0xff] }
 0x91a   : > { %v3073_v16 = vmax.f32 %v3071_v13, 0.0  ;;  %5849 = vset.pattern.permute.xlu2 %v6630_v8  ;;  %v3204_v8 = vld [vmem:[#allocation16 + $0x78] sm:$0xff]  ;;  %3223 = vmatpush.msrb.mxu2 %v3195_v27  ;;  %v3308_v13 = vld [vmem:[#allocation24 + $0x178] sm:$0xff] }
 0x91b   : > { %4126 = vperm.xlu2 %5849, %v7481_v7  }
 0x91c   : > { %3108 = vmatpush.msra.mxu0 %v3073_v16  ;;  %v3277_v16 = vld [vmem:[#allocation24 + $0x80] sm:$0xff] }
 0x91d   : > { %5855 = vset.pattern.permute.xlu1 %v6633_v37  ;;  %3332 = vmatpush.msra.mxu1 %v3277_v16  ;;  %v3501_v16 = vld [vmem:[#allocation24 + $0x3b8] sm:$0xff] }
 0x91e   : > { %3109 = vmatpush.msra.mxu0 %v3072_v18  ;;  %4645 = vperm.xlu1 %5855, %v7481_v7   ;;  %v3278_v18 = vld [vmem:[#allocation24 + $0x88] sm:$0xff] }
 0x91f   : > { %5489 = vmatmul.msk.f32.vlgmr.msra.gmra.mxu0 %vm1741_vm0, %v3074_v53  ;;  %v3305_v53 = vld [vmem:[#allocation24 + $0x160] sm:$0xff]  ;;  %3333 = vmatpush.msra.mxu1 %v3275_v0  ;;  %v3499_v0 = vld [vmem:[#allocation24 + $0x3a8] sm:$0xff] }
 0x920   : > { %3242 = vmatpush.msrb.mxu0 %v3204_v8  ;;  %v3276_v8 = vld [vmem:[#allocation24 + $0x78] sm:$0xff]  ;;  %3357 = vmatpush.msrb.mxu3 %v3305_v53  ;;  %v3498_v53 = vld [vmem:[#allocation24 + $0x3a0] sm:$0xff] }
 0x921   : > { %3334 = vmatpush.msra.mxu1 %v3273_v26  ;;  %v3494_v26 = vld [vmem:[#allocation24 + $0x380] sm:$0xff]  ;;  %5847 = vset.pattern.permute.xlu0 %v6628_v57  ;;  %v3480_v57 = vld [vmem:[#allocation24 + $0x310] sm:$0xff] }
 0x922   : > { %3243 = vmatpush.msrb.mxu0 %v3202_v23  ;;  %v3304_v23 = vld [vmem:[#allocation24 + $0x158] sm:$0xff]  ;;  %3358 = vmatpush.msrb.mxu3 %v3303_v61  ;;  %v3496_v61 = vld [vmem:[#allocation24 + $0x390] sm:$0xff] }
 0x923   : > { %5851 = vset.pattern.permute.xlu2 %v6629_v62  ;;  %3953 = vperm.xlu0 %5847, %v7481_v7  }
 0x924   : > { %4299 = vperm.xlu2 %5851, %v7481_v7   ;;  %3244 = vmatpush.msrb.mxu0 %v3200_v25 }
 0x926   : > { %5858 = vset.pattern.permute.xlu1 %v6632_v36 }
 0x927   : > { %5490 = vmatmul.msk.f32.gmra.mxu0 %vm1741_vm0, %v3075_v21  ;;  %4814 = vperm.xlu1 %5858, %v7476_v54   ;;  %v3306_v21 = vld [vmem:[#allocation24 + $0x168] sm:$0xff] }
 0x92b   : > { %5852 = vset.pattern.permute.xlu0 %v6629_v62  ;;  %v3481_v62 = vld [vmem:[#allocation24 + $0x318] sm:$0xff] }
 0x92c   : > { %5854 = vset.pattern.permute.xlu2 %v6631_v30  ;;  %v3198_v30 = vld [vmem:[#allocation16 + $0x48] sm:$0xff]  ;;  %4295 = vperm.xlu0 %5852, %v7476_v54  }
 0x92d   : > { %4468 = vperm.xlu2 %5854, %v7476_v54   ;;  %3245 = vmatpush.msrb.mxu0 %v3198_v30  ;;  %v3274_v30 = vld [vmem:[#allocation24 + $0x68] sm:$0xff] }
 0x92f   : > { %5860 = vset.pattern.permute.xlu1 %v6626_v1  ;;  %3246 = vmatpush.msrb.mxu0 %v3196_v31  ;;  %v3301_v31 = vld [vmem:[#allocation24 + $0x140] sm:$0xff] }
 0x930   : > { %3359 = vmatpush.msrb.mxu3 %v3301_v31  ;;  %v3466_v31 = vld [vmem:[#allocation24 + $0x2a0] sm:$0xff] }
 0x931   : > { %3247 = vmatpush.msrb.mxu0 %v3194_v34 }
 0x933   : > { %3248 = vmatpush.msrb.mxu0 %v3192_v2  ;;  %v3300_v2 = vld [vmem:[#allocation24 + $0x138] sm:$0xff] }
 0x934   : > { %5857 = vset.pattern.permute.xlu0 %v6632_v36  ;;  %v3451_v36 = vld [vmem:[#allocation24 + $0x228] sm:$0xff] }
 0x935   : > { %5856 = vset.pattern.permute.xlu2 %v6633_v37  ;;  %v3193_v37 = vld [vmem:[#allocation16 + $0x20] sm:$0xff]  ;;  %3249 = vmatpush.msrb.mxu0 %v3190_v14  ;;  %v3272_v14 = vld [vmem:[#allocation24 + $0x58] sm:$0xff] }
 0x936   : > { %4641 = vperm.xlu2 %5856, %v7476_v54   ;;  %3224 = vmatpush.msrb.mxu2 %v3193_v37  ;;  %v3302_v37 = vld [vmem:[#allocation24 + $0x148] sm:$0xff]  ;;  %v3452_v54 = vld [vmem:[#allocation24 + $0x230] sm:$0xff] }
 0x937   : > { %3394 = vmatpush.msra.mxu0 %v3324_v20  ;;  %v3086_v20 = vpop.permute.xlu2 %3085  ;;  %4818 = vperm.xlu0 %5857, %v7481_v7   ;;  %v3449_v7 = vld [vmem:[#allocation24 + $0x218] sm:$0xff] }
 0x938   : > { %3225 = vmatpush.msrb.mxu2 %v3191_v63  ;;  %v3299_v63 = vld [vmem:[#allocation24 + $0x130] sm:$0xff] }
 0x939   : > { %3395 = vmatpush.msra.mxu0 %v3322_v32  ;;  %3360 = vmatpush.msrb.mxu3 %v3299_v63  ;;  %v3270_v32 = vld [vmem:[#allocation24 + $0x48] sm:$0xff] }
 0x93a   : > { %3226 = vmatpush.msrb.mxu2 %v3189_v28  ;;  %v3271_v28 = vld [vmem:[#allocation24 + $0x50] sm:$0xff]  ;;  %v3467_v63 = vld [vmem:[#allocation24 + $0x2a8] sm:$0xff] }
 0x93b   : > { %3396 = vmatpush.msra.mxu0 %v3320_v6  ;;  %3335 = vmatpush.msra.mxu1 %v3271_v28  ;;  %v3296_v6 = vld [vmem:[#allocation24 + $0x118] sm:$0xff]  ;;  %v3464_v28 = vld [vmem:[#allocation24 + $0x290] sm:$0xff] }
 0x93c   : > { %3371 = vmatpush.msra.mxu2 %v3292_v10  ;;  %3361 = vmatpush.msrb.mxu3 %v3297_v15  ;;  %v3267_v10 = vld [vmem:[#allocation24 + $0x30] sm:$0xff]  ;;  %v3465_v15 = vld [vmem:[#allocation24 + $0x298] sm:$0xff] }
 0x93d   : > { %3397 = vmatpush.msra.mxu0 %v3318_v39  ;;  %3336 = vmatpush.msra.mxu1 %v3269_v29  ;;  %v3293_v39 = vld [vmem:[#allocation24 + $0x100] sm:$0xff]  ;;  %v3488_v29 = vld [vmem:[#allocation24 + $0x350] sm:$0xff] }
 0x93e   : > { %5859 = vset.pattern.permute.xlu2 %v6626_v1  ;;  %3372 = vmatpush.msra.mxu2 %v3290_v35  ;;  %v3294_v35 = vld [vmem:[#allocation24 + $0x108] sm:$0xff] }
 0x93f   : > { %3398 = vmatpush.msra.mxu0 %v3316_v46  ;;  %3362 = vmatpush.msrb.mxu3 %v3295_v33  ;;  %v3265_v46 = vld [vmem:[#allocation24 + $0x20] sm:$0xff]  ;;  %v3489_v33 = vld [vmem:[#allocation24 + $0x358] sm:$0xff] }
 0x940   : > { %3373 = vmatpush.msra.mxu2 %v3288_v17  ;;  %3337 = vmatpush.msra.mxu1 %v3267_v10  ;;  %v3508_v17 = vld [vmem:[#allocation24 + $0x3f0] sm:$0xff]  ;;  %v3461_v10 = vld [vmem:[#allocation24 + $0x278] sm:$0xff] }
 0x941   : > { %3399 = vmatpush.msra.mxu0 %v3314_v52  ;;  %3363 = vmatpush.msrb.mxu3 %v3293_v39  ;;  %v3263_v52 = vld [vmem:[#allocation24 + $0x10] sm:$0xff] }
 0x942   : > { %3374 = vmatpush.msra.mxu2 %v3286_v50  ;;  %v3506_v50 = vld [vmem:[#allocation24 + $0x3e0] sm:$0xff]  ;;  %3338 = vmatpush.msra.mxu1 %v3265_v46  ;;  %v3484_v39 = vld [vmem:[#allocation24 + $0x330] sm:$0xff] }
 0x943   : > { %3400 = vmatpush.msra.mxu0 %v3312_v58  ;;  %3533 = vmatpush.msra.mxu3 %v3508_v17  ;;  %v3261_v58 = vld [vmem:[#allocation24] sm:$0xff]  ;;  %v3485_v17 = vld [vmem:[#allocation24 + $0x338] sm:$0xff] }
 0x944   : > { %3375 = vmatpush.msra.mxu2 %v3284_v49  ;;  %v3504_v49 = vld [vmem:[#allocation24 + $0x3d0] sm:$0xff]  ;;  %3339 = vmatpush.msra.mxu1 %v3263_v52  ;;  %v3482_v46 = vld [vmem:[#allocation24 + $0x320] sm:$0xff] }
 0x945   : > { %3401 = vmatpush.msra.mxu0 %v3310_v43  ;;  %3534 = vmatpush.msra.mxu3 %v3506_v50  ;;  %v3477_v43 = vld [vmem:[#allocation24 + $0x2f8] sm:$0xff]  ;;  %v3483_v50 = vld [vmem:[#allocation24 + $0x328] sm:$0xff]  ;;  %v3478_v52 = vld [vmem:[#allocation24 + $0x300] sm:$0xff] }
 0x946   : > { %3376 = vmatpush.msra.mxu2 %v3282_v60  ;;  %v3476_v60 = vld [vmem:[#allocation24 + $0x2f0] sm:$0xff]  ;;  %3340 = vmatpush.msra.mxu1 %v3261_v58  ;;  %v3446_v58 = vld [vmem:[#allocation24 + $0x200] sm:$0xff] }
 0x947   : > { %3402 = vmatpush.msra.mxu0 %v3308_v13  ;;  %3535 = vmatpush.msra.mxu3 %v3504_v49  ;;  %v3475_v13 = vld [vmem:[#allocation24 + $0x2e8] sm:$0xff] }
 0x948   : > { %3377 = vmatpush.msra.mxu2 %v3280_v12  ;;  %v3474_v12 = vld [vmem:[#allocation24 + $0x2e0] sm:$0xff]  ;;  %3510 = vmatpush.msrb.mxu1 %v3476_v60  ;;  %v3479_v49 = vld [vmem:[#allocation24 + $0x308] sm:$0xff]  ;;  %v3179_v60 = vpop.f32.mrf.mxu3 }
 0x949   : > { %3403 = vmatpush.msra.mxu0 %v3306_v21  ;;  %3536 = vmatpush.msra.mxu3 %v3502_v4  ;;  %v3473_v21 = vld [vmem:[#allocation24 + $0x2d8] sm:$0xff] }
 0x94a   : > { %3378 = vmatpush.msra.mxu2 %v3278_v18  ;;  %v3472_v18 = vld [vmem:[#allocation24 + $0x2d0] sm:$0xff]  ;;  %3511 = vmatpush.msrb.mxu1 %v3474_v12 }
 0x94b   : > { %3404 = vmatpush.msra.mxu0 %v3304_v23  ;;  %3537 = vmatpush.msra.mxu3 %v3500_v3  ;;  %v3471_v23 = vld [vmem:[#allocation24 + $0x2c8] sm:$0xff] }
 0x94c   : > { %3379 = vmatpush.msra.mxu2 %v3276_v8  ;;  %v3470_v8 = vld [vmem:[#allocation24 + $0x2c0] sm:$0xff]  ;;  %3512 = vmatpush.msrb.mxu1 %v3472_v18 }
 0x94d   : > { %3405 = vmatpush.msra.mxu0 %v3302_v37  ;;  %3538 = vmatpush.msra.mxu3 %v3498_v53  ;;  %v3492_v37 = vld [vmem:[#allocation24 + $0x370] sm:$0xff] }
 0x94e   : > { %3380 = vmatpush.msra.mxu2 %v3274_v30  ;;  %3513 = vmatpush.msrb.mxu1 %v3470_v8  ;;  %v3469_v30 = vld [vmem:[#allocation24 + $0x2b8] sm:$0xff]  ;;  %v3681_v53 = vld [vmem:[#allocation24 + $0x5f0] sm:$0xff] }
 0x94f   : > { %3406 = vmatpush.msra.mxu0 %v3300_v2  ;;  %3539 = vmatpush.msra.mxu3 %v3496_v61  ;;  %v3493_v2 = vld [vmem:[#allocation24 + $0x378] sm:$0xff] }
 0x950   : > { %3381 = vmatpush.msra.mxu2 %v3272_v14  ;;  %v3490_v14 = vld [vmem:[#allocation24 + $0x360] sm:$0xff]  ;;  %5861 = vset.pattern.permute.xlu0 %v6626_v1  ;;  %v3448_v1 = vld [vmem:[#allocation24 + $0x210] sm:$0xff] }
 0x951   : > { %3407 = vmatpush.msra.mxu0 %v3298_v19  ;;  %3540 = vmatpush.msra.mxu3 %v3494_v26  ;;  %v3491_v19 = vld [vmem:[#allocation24 + $0x368] sm:$0xff]  ;;  %v3678_v26 = vld [vmem:[#allocation24 + $0x5d8] sm:$0xff] }
 0x952   : > { %3382 = vmatpush.msra.mxu2 %v3270_v32  ;;  %v3463_v32 = vld [vmem:[#allocation24 + $0x288] sm:$0xff] }
 0x953   : > { %3408 = vmatpush.msra.mxu0 %v3296_v6  ;;  %3541 = vmatpush.msra.mxu3 %v3492_v37  ;;  %v3460_v6 = vld [vmem:[#allocation24 + $0x270] sm:$0xff] }
 0x954   : > { %3383 = vmatpush.msra.mxu2 %v3268_v11  ;;  %v3487_v11 = vld [vmem:[#allocation24 + $0x348] sm:$0xff] }
 0x955   : > { %3409 = vmatpush.msra.mxu0 %v3294_v35  ;;  %3542 = vmatpush.msra.mxu3 %v3490_v14  ;;  %v3459_v35 = vld [vmem:[#allocation24 + $0x268] sm:$0xff]  ;;  %v3650_v14 = vld [vmem:[#allocation24 + $0x4f8] sm:$0xff] }
 0x956   : > { %3384 = vmatpush.msra.mxu2 %v3266_v47  ;;  %v3457_v47 = vld [vmem:[#allocation24 + $0x258] sm:$0xff] }
 0x957   : > { %3543 = vmatpush.msra.mxu3 %v3488_v29  ;;  %v3647_v29 = vld [vmem:[#allocation24 + $0x4e0] sm:$0xff] }
 0x958   : > { %3385 = vmatpush.msra.mxu2 %v3264_v55  ;;  %v3453_v55 = vld [vmem:[#allocation24 + $0x238] sm:$0xff] }
 0x95a   : > { %3386 = vmatpush.msra.mxu2 %v3262_v59  ;;  %v3447_v59 = vld [vmem:[#allocation24 + $0x208] sm:$0xff] }
 0x97a   : > { %v3126_v4 = vpop.permute.xlu0 %3125 }
 0x99c   : > { %v3111_v25 = vpop.f32.mrf.mxu0 }
 0x99d   : > { %v3112_v27 = vadd.f32 %v3111_v25, %v3081_v24  ;;  %v3497_v24 = vld [vmem:[#allocation24 + $0x398] sm:$0xff]  ;;  %v3468_v25 = vld [vmem:[#allocation24 + $0x2b0] sm:$0xff] }
 0x99e   : > { %3514 = vmatpush.msrb.mxu1 %v3468_v25  ;;  %v3677_v25 = vld [vmem:[#allocation24 + $0x5d0] sm:$0xff] }
 0x99f   : > { %v7514_v34 = vmax.f32 %v3112_v27, 0.0  ;;  %v3495_v27 = vld [vmem:[#allocation24 + $0x388] sm:$0xff] }
 0x9a0   : > { %3515 = vmatpush.msrb.mxu1 %v3466_v31 }
 0x9a1   : > { %5495 = vmatmul.msk.f32.vlgmr.msrb.gmra.mxu2 %vm1788_vm1, %v7514_v34  ;;  %5497 = vmatmul.msk.f32.vlgmr.msrb.gmra.mxu0 %vm1788_vm1, %v7514_v34 }
 0x9a2   : > { %3579 = vmatpush.msrb.mxu0 %v3509_v45  ;;  %3556 = vmatpush.msrb.mxu2 %v3477_v43  ;;  %v3456_v45 = vld [vmem:[#allocation24 + $0x250] sm:$0xff]  ;;  %v3180_v43 = vadd.f32 %v3179_v60, %v3126_v4  ;;  %v3636_v60 = vld [vmem:[#allocation24 + $0x488] sm:$0xff] }
 0x9a3   : > { %3516 = vmatpush.msrb.mxu1 %v3464_v28 }
 0x9a4   : > { %v3114_v41 = vpop.f32.mrf.mxu0  ;;  %3580 = vmatpush.msrb.mxu0 %v3507_v51  ;;  %3557 = vmatpush.msrb.mxu2 %v3475_v13  ;;  %v3455_v51 = vld [vmem:[#allocation24 + $0x248] sm:$0xff]  ;;  %v3186_v12 = vmax.f32 %v3180_v43, 0.0  ;;  %v3182_v13 = vpop.f32.mrf.mxu3  ;;  %v3633_v43 = vld [vmem:[#allocation24 + $0x470] sm:$0xff] }
 0x9a5   : > { %v3115_v38 = vadd.f32 %v3114_v41, %v3086_v20  ;;  %v3462_v20 = vld [vmem:[#allocation24 + $0x280] sm:$0xff] }
 0x9a6   : > { %3581 = vmatpush.msrb.mxu0 %v3505_v56  ;;  %3558 = vmatpush.msrb.mxu2 %v3473_v21  ;;  %v3486_v41 = vld [vmem:[#allocation24 + $0x340] sm:$0xff]  ;;  %v3682_v21 = vld [vmem:[#allocation24 + $0x5f8] sm:$0xff] }
 0x9a7   : > { %v7520_v40 = vmax.f32 %v3115_v38, 0.0  ;;  %3517 = vmatpush.msrb.mxu1 %v3462_v20  ;;  %v3458_v38 = vld [vmem:[#allocation24 + $0x260] sm:$0xff]  ;;  %3544 = vmatpush.msra.mxu3 %v3486_v41  ;;  %v3645_v41 = vld [vmem:[#allocation24 + $0x4d0] sm:$0xff] }
 0x9a8   : > { %3582 = vmatpush.msrb.mxu0 %v3503_v9  ;;  %3559 = vmatpush.msrb.mxu2 %v3471_v23  ;;  %v3450_v56 = vld [vmem:[#allocation24 + $0x220] sm:$0xff]  ;;  %v3156_v9 = vpop.f32.mrf.mxu1 }
 0x9a9   : > { %5496 = vmatmul.msk.f32.gmra.mxu2 %vm1788_vm1, %v7520_v40  ;;  %5498 = vmatmul.msk.f32.gmra.mxu0 %vm1788_vm1, %v7520_v40  ;;  %v3157_v3 = vadd.f32 %v3156_v9, %v3126_v4  ;;  %v3679_v23 = vld [vmem:[#allocation24 + $0x5e0] sm:$0xff]  ;;  %v3662_v4 = vld [vmem:[#allocation24 + $0x558] sm:$0xff] }
 0x9aa   : > { %3583 = vmatpush.msrb.mxu0 %v3501_v16  ;;  %3560 = vmatpush.msrb.mxu2 %v3469_v30  ;;  %v3659_v9 = vld [vmem:[#allocation24 + $0x540] sm:$0xff] }
 0x9ab   : > { %3518 = vmatpush.msrb.mxu1 %v3460_v6  ;;  %3545 = vmatpush.msra.mxu3 %v3484_v39  ;;  %v3185_v61 = vmax.f32 %v3157_v3, 0.0  ;;  %v3674_v6 = vld [vmem:[#allocation24 + $0x5b8] sm:$0xff]  ;;  %v3672_v39 = vld [vmem:[#allocation24 + $0x5a8] sm:$0xff] }
 0x9ac   : > { %3584 = vmatpush.msrb.mxu0 %v3499_v0  ;;  %3561 = vmatpush.msrb.mxu2 %v3467_v63  ;;  %v3131_v0 = vpop.permute.xlu1 %3130  ;;  %v3649_v63 = vld [vmem:[#allocation24 + $0x4f0] sm:$0xff]  ;;  %v3660_v3 = vld [vmem:[#allocation24 + $0x548] sm:$0xff] }
 0x9ad   : > { %3519 = vmatpush.msrb.mxu1 %v3458_v38  ;;  %3546 = vmatpush.msra.mxu3 %v3482_v46  ;;  %v3183_v8 = vadd.f32 %v3182_v13, %v3131_v0  ;;  %v3646_v38 = vld [vmem:[#allocation24 + $0x4d8] sm:$0xff]  ;;  %v3631_v13 = vld [vmem:[#allocation24 + $0x460] sm:$0xff] }
 0x9ae   : > { %3585 = vmatpush.msrb.mxu0 %v3497_v24  ;;  %3562 = vmatpush.msrb.mxu2 %v3465_v15  ;;  %v3680_v24 = vld [vmem:[#allocation24 + $0x5e8] sm:$0xff] }
 0x9af   : > { %3520 = vmatpush.msrb.mxu1 %v3456_v45  ;;  %3547 = vmatpush.msra.mxu3 %v3480_v57  ;;  %v3188_v31 = vmax.f32 %v3183_v8, 0.0  ;;  %v3676_v15 = vld [vmem:[#allocation24 + $0x5c8] sm:$0xff]  ;;  %v3669_v45 = vld [vmem:[#allocation24 + $0x590] sm:$0xff]  ;;  %v3667_v57 = vld [vmem:[#allocation24 + $0x580] sm:$0xff] }
 0x9b0   : > { %3586 = vmatpush.msrb.mxu0 %v3495_v27  ;;  %3563 = vmatpush.msrb.mxu2 %v3463_v32  ;;  %v3159_v30 = vpop.f32.mrf.mxu1  ;;  %v3673_v32 = vld [vmem:[#allocation24 + $0x5b0] sm:$0xff]  ;;  %v3655_v8 = vld [vmem:[#allocation24 + $0x520] sm:$0xff] }
 0x9b1   : > { %3521 = vmatpush.msrb.mxu1 %v3454_v5  ;;  %3548 = vmatpush.msra.mxu3 %v3478_v52  ;;  %v3641_v5 = vld [vmem:[#allocation24 + $0x4b0] sm:$0xff] }
 0x9b2   : > { %3587 = vmatpush.msrb.mxu0 %v3493_v2  ;;  %3564 = vmatpush.msrb.mxu2 %v3461_v10  ;;  %v3675_v2 = vld [vmem:[#allocation24 + $0x5c0] sm:$0xff]  ;;  %v3665_v52 = vld [vmem:[#allocation24 + $0x570] sm:$0xff] }
 0x9b3   : > { %3522 = vmatpush.msrb.mxu1 %v3452_v54  ;;  %v3671_v10 = vld [vmem:[#allocation24 + $0x5a0] sm:$0xff] }
 0x9b4   : > { %3588 = vmatpush.msrb.mxu0 %v3491_v19  ;;  %3565 = vmatpush.msrb.mxu2 %v3459_v35  ;;  %v3160_v19 = vadd.f32 %v3159_v30, %v3131_v0  ;;  %v3639_v54 = vld [vmem:[#allocation24 + $0x4a0] sm:$0xff]  ;;  %v3629_v0 = vld [vmem:[#allocation24 + $0x450] sm:$0xff]  ;;  %v3654_v30 = vld [vmem:[#allocation24 + $0x518] sm:$0xff] }
 0x9b5   : > { %3523 = vmatpush.msrb.mxu1 %v3450_v56  ;;  %v3637_v56 = vld [vmem:[#allocation24 + $0x490] sm:$0xff] }
 0x9b6   : > { %3589 = vmatpush.msrb.mxu0 %v3489_v33  ;;  %3566 = vmatpush.msrb.mxu2 %v3457_v47  ;;  %v3648_v33 = vld [vmem:[#allocation24 + $0x4e8] sm:$0xff] }
 0x9b7   : > { %3524 = vmatpush.msrb.mxu1 %v3448_v1  ;;  %v3644_v47 = vld [vmem:[#allocation24 + $0x4c8] sm:$0xff]  ;;  %v3638_v1 = vld [vmem:[#allocation24 + $0x498] sm:$0xff] }
 0x9b8   : > { %3590 = vmatpush.msrb.mxu0 %v3487_v11  ;;  %3567 = vmatpush.msrb.mxu2 %v3455_v51  ;;  %v3187_v11 = vmax.f32 %v3160_v19, 0.0  ;;  %v3642_v51 = vld [vmem:[#allocation24 + $0x4b8] sm:$0xff]  ;;  %v3624_v19 = vld [vmem:[#allocation24 + $0x428] sm:$0xff] }
 0x9b9   : > { %3525 = vmatpush.msrb.mxu1 %v3446_v58  ;;  %v3635_v58 = vld [vmem:[#allocation24 + $0x480] sm:$0xff] }
 0x9ba   : > { %3591 = vmatpush.msrb.mxu0 %v3485_v17  ;;  %3568 = vmatpush.msrb.mxu2 %v3453_v55  ;;  %v3643_v17 = vld [vmem:[#allocation24 + $0x4c0] sm:$0xff]  ;;  %v3640_v55 = vld [vmem:[#allocation24 + $0x4a8] sm:$0xff] }
 0x9bc   : > { %3592 = vmatpush.msrb.mxu0 %v3483_v50  ;;  %3569 = vmatpush.msrb.mxu2 %v3451_v36  ;;  %v3670_v50 = vld [vmem:[#allocation24 + $0x598] sm:$0xff]  ;;  %v3663_v36 = vld [vmem:[#allocation24 + $0x560] sm:$0xff] }
 0x9be   : > { %3593 = vmatpush.msrb.mxu0 %v3481_v62  ;;  %3570 = vmatpush.msrb.mxu2 %v3449_v7  ;;  %v3668_v62 = vld [vmem:[#allocation24 + $0x588] sm:$0xff] }
 0x9bf   : > { %v3664_v7 = vld [vmem:[#allocation24 + $0x568] sm:$0xff] }
 0x9c0   : > { %3594 = vmatpush.msrb.mxu0 %v3479_v49  ;;  %3571 = vmatpush.msrb.mxu2 %v3447_v59  ;;  %v3666_v49 = vld [vmem:[#allocation24 + $0x578] sm:$0xff]  ;;  %v3661_v59 = vld [vmem:[#allocation24 + $0x550] sm:$0xff] }
 0xa1e   : > { %v3251_v16 = vpop.f32.mrf.mxu0 }
 0xa1f   : > { %v7535_v18 = vadd.f32 %v3251_v16, %v3186_v12  ;;  %v3634_v12 = vld [vmem:[#allocation24 + $0x478] sm:$0xff]  ;;  %v3657_v16 = vld [vmem:[#allocation24 + $0x530] sm:$0xff] }
 0xa21   : > { %3364 = vmatmul.f32.vlgmr.msrb.gmra.mxu3 %v7535_v18  ;;  %3410 = vmatmul.f32.vlgmr.msra.gmra.mxu0 %v7535_v18 }
 0xa22   : > { %3706 = vmatpush.msrb.mxu3 %v3681_v53  ;;  %3752 = vmatpush.msra.mxu0 %v3682_v21  ;;  %v3632_v53 = vld [vmem:[#allocation24 + $0x468] sm:$0xff]  ;;  %v3658_v21 = vld [vmem:[#allocation24 + $0x538] sm:$0xff] }
 0xa24   : > { %3707 = vmatpush.msrb.mxu3 %v3679_v23  ;;  %3753 = vmatpush.msra.mxu0 %v3680_v24  ;;  %v3228_v27 = vpop.f32.mrf.mxu2  ;;  %v3656_v23 = vld [vmem:[#allocation24 + $0x528] sm:$0xff]  ;;  %v3627_v24 = vld [vmem:[#allocation24 + $0x440] sm:$0xff] }
 0xa25   : > { %v7539_v37 = vadd.f32 %v3228_v27, %v3185_v61  ;;  %v3630_v61 = vld [vmem:[#allocation24 + $0x458] sm:$0xff]  ;;  %v3625_v27 = vld [vmem:[#allocation24 + $0x430] sm:$0xff] }
 0xa26   : > { %3708 = vmatpush.msrb.mxu3 %v3677_v25  ;;  %3754 = vmatpush.msra.mxu0 %v3678_v26  ;;  %v3254_v28 = vpop.f32.mrf.mxu0  ;;  %v3653_v25 = vld [vmem:[#allocation24 + $0x510] sm:$0xff]  ;;  %v3628_v26 = vld [vmem:[#allocation24 + $0x448] sm:$0xff] }
 0xa27   : > { %v7541_v20 = vadd.f32 %v3254_v28, %v3188_v31  ;;  %3341 = vmatmul.f32.vlgmr.msra.gmra.mxu1 %v7539_v37  ;;  %3387 = vmatmul.f32.vlgmr.msra.gmra.mxu2 %v7539_v37  ;;  %v3651_v31 = vld [vmem:[#allocation24 + $0x500] sm:$0xff]  ;;  %v3854_v28 = vld [vmem:[#allocation24 + $0x7f0] sm:$0xff] }
 0xa28   : > { %3683 = vmatpush.msra.mxu1 %v3649_v63  ;;  %3709 = vmatpush.msrb.mxu3 %v3675_v2  ;;  %v3626_v63 = vld [vmem:[#allocation24 + $0x438] sm:$0xff]  ;;  %v3652_v2 = vld [vmem:[#allocation24 + $0x508] sm:$0xff] }
 0xa29   : > { %3729 = vmatpush.msra.mxu2 %v3650_v14  ;;  %3755 = vmatpush.msra.mxu0 %v3676_v15  ;;  %v3855_v14 = vld [vmem:[#allocation24 + $0x7f8] sm:$0xff]  ;;  %v3623_v15 = vld [vmem:[#allocation24 + $0x420] sm:$0xff] }
 0xa2a   : > { %3367 = vmatmul.f32.gmra.mxu3 %v7541_v20  ;;  %3413 = vmatmul.f32.gmra.mxu0 %v7541_v20 }
 0xa2b   : > { %3684 = vmatpush.msra.mxu1 %v3647_v29  ;;  %3710 = vmatpush.msrb.mxu3 %v3673_v32  ;;  %v3852_v29 = vld [vmem:[#allocation24 + $0x7e0] sm:$0xff]  ;;  %v3853_v32 = vld [vmem:[#allocation24 + $0x7e8] sm:$0xff] }
 0xa2c   : > { %3730 = vmatpush.msra.mxu2 %v3648_v33  ;;  %3756 = vmatpush.msra.mxu0 %v3674_v6  ;;  %v3231_v35 = vpop.f32.mrf.mxu2  ;;  %v3621_v33 = vld [vmem:[#allocation24 + $0x410] sm:$0xff]  ;;  %v3622_v6 = vld [vmem:[#allocation24 + $0x418] sm:$0xff] }
 0xa2d   : > { %3685 = vmatpush.msra.mxu1 %v3645_v41  ;;  %3711 = vmatpush.msrb.mxu3 %v3671_v10  ;;  %v7547_v46 = vadd.f32 %v3231_v35, %v3187_v11  ;;  %v3850_v41 = vld [vmem:[#allocation24 + $0x7d0] sm:$0xff]  ;;  %v3851_v10 = vld [vmem:[#allocation24 + $0x7d8] sm:$0xff]  ;;  %v3619_v11 = vld [vmem:[#allocation24 + $0x400] sm:$0xff] }
 0xa2e   : > { %3731 = vmatpush.msra.mxu2 %v3646_v38  ;;  %3757 = vmatpush.msra.mxu0 %v3672_v39  ;;  %v3620_v38 = vld [vmem:[#allocation24 + $0x408] sm:$0xff]  ;;  %v3822_v39 = vld [vmem:[#allocation24 + $0x6f0] sm:$0xff]  ;;  %v3848_v35 = vld [vmem:[#allocation24 + $0x7c0] sm:$0xff] }
 0xa2f   : > { %3686 = vmatpush.msra.mxu1 %v3643_v17  ;;  %3712 = vmatpush.msrb.mxu3 %v3669_v45  ;;  %v3823_v17 = vld [vmem:[#allocation24 + $0x6f8] sm:$0xff]  ;;  %v3849_v45 = vld [vmem:[#allocation24 + $0x7c8] sm:$0xff] }
 0xa30   : > { %3732 = vmatpush.msra.mxu2 %v3644_v47  ;;  %3758 = vmatpush.msra.mxu0 %v3670_v50  ;;  %v3820_v47 = vld [vmem:[#allocation24 + $0x6e0] sm:$0xff]  ;;  %v3846_v50 = vld [vmem:[#allocation24 + $0x7b0] sm:$0xff] }
 0xa31   : > { %3344 = vmatmul.f32.gmra.mxu1 %v7547_v46  ;;  %3390 = vmatmul.f32.gmra.mxu2 %v7547_v46 }
 0xa32   : > { %3687 = vmatpush.msra.mxu1 %v3641_v5  ;;  %3713 = vmatpush.msrb.mxu3 %v3667_v57  ;;  %v3821_v5 = vld [vmem:[#allocation24 + $0x6e8] sm:$0xff]  ;;  %v3847_v57 = vld [vmem:[#allocation24 + $0x7b8] sm:$0xff] }
 0xa33   : > { %3733 = vmatpush.msra.mxu2 %v3642_v51  ;;  %3759 = vmatpush.msra.mxu0 %v3668_v62  ;;  %v3818_v51 = vld [vmem:[#allocation24 + $0x6d0] sm:$0xff]  ;;  %v3844_v62 = vld [vmem:[#allocation24 + $0x7a0] sm:$0xff] }
 0xa34   : > { %3549 = vmatmul.f32.vlgmr.msra.gmra.mxu3 %v7535_v18  ;;  %3595 = vmatmul.f32.vlgmr.msrb.gmra.mxu0 %v7535_v18 }
 0xa35   : > { %3688 = vmatpush.msra.mxu1 %v3639_v54  ;;  %3714 = vmatpush.msrb.mxu3 %v3665_v52  ;;  %v3819_v54 = vld [vmem:[#allocation24 + $0x6d8] sm:$0xff]  ;;  %v3845_v52 = vld [vmem:[#allocation24 + $0x7a8] sm:$0xff] }
 0xa36   : > { %3734 = vmatpush.msra.mxu2 %v3640_v55  ;;  %3760 = vmatpush.msra.mxu0 %v3666_v49  ;;  %v3816_v55 = vld [vmem:[#allocation24 + $0x6c0] sm:$0xff]  ;;  %v3842_v49 = vld [vmem:[#allocation24 + $0x790] sm:$0xff] }
 0xa37   : > { %3689 = vmatpush.msra.mxu1 %v3637_v56  ;;  %3715 = vmatpush.msrb.mxu3 %v3663_v36  ;;  %v3817_v56 = vld [vmem:[#allocation24 + $0x6c8] sm:$0xff]  ;;  %v3843_v36 = vld [vmem:[#allocation24 + $0x798] sm:$0xff] }
 0xa38   : > { %3735 = vmatpush.msra.mxu2 %v3638_v1  ;;  %3761 = vmatpush.msra.mxu0 %v3664_v7  ;;  %v3814_v1 = vld [vmem:[#allocation24 + $0x6b0] sm:$0xff]  ;;  %v3840_v7 = vld [vmem:[#allocation24 + $0x780] sm:$0xff] }
 0xa39   : > { %3690 = vmatpush.msra.mxu1 %v3635_v58  ;;  %3716 = vmatpush.msrb.mxu3 %v3661_v59  ;;  %v3815_v58 = vld [vmem:[#allocation24 + $0x6b8] sm:$0xff]  ;;  %v3841_v59 = vld [vmem:[#allocation24 + $0x788] sm:$0xff] }
 0xa3a   : > { %3736 = vmatpush.msra.mxu2 %v3636_v60  ;;  %3762 = vmatpush.msra.mxu0 %v3662_v4  ;;  %v3812_v60 = vld [vmem:[#allocation24 + $0x6a0] sm:$0xff]  ;;  %v3838_v4 = vld [vmem:[#allocation24 + $0x770] sm:$0xff] }
 0xa3b   : > { %3526 = vmatmul.f32.vlgmr.msrb.gmra.mxu1 %v7539_v37  ;;  %3572 = vmatmul.f32.vlgmr.msrb.gmra.mxu2 %v7539_v37 }
 0xa3c   : > { %3691 = vmatpush.msra.mxu1 %v3633_v43  ;;  %3717 = vmatpush.msrb.mxu3 %v3659_v9  ;;  %v3813_v43 = vld [vmem:[#allocation24 + $0x6a8] sm:$0xff]  ;;  %v3839_v9 = vld [vmem:[#allocation24 + $0x778] sm:$0xff] }
 0xa3d   : > { %3737 = vmatpush.msra.mxu2 %v3634_v12  ;;  %3763 = vmatpush.msra.mxu0 %v3660_v3  ;;  %v3810_v12 = vld [vmem:[#allocation24 + $0x690] sm:$0xff]  ;;  %v3836_v3 = vld [vmem:[#allocation24 + $0x760] sm:$0xff] }
 0xa3e   : > { %3552 = vmatmul.f32.gmra.mxu3 %v7541_v20  ;;  %3598 = vmatmul.f32.gmra.mxu0 %v7541_v20 }
 0xa3f   : > { %3692 = vmatpush.msra.mxu1 %v3631_v13  ;;  %3718 = vmatpush.msrb.mxu3 %v3657_v16  ;;  %v3811_v13 = vld [vmem:[#allocation24 + $0x698] sm:$0xff]  ;;  %v3837_v16 = vld [vmem:[#allocation24 + $0x768] sm:$0xff] }
 0xa40   : > { %3738 = vmatpush.msra.mxu2 %v3632_v53  ;;  %3764 = vmatpush.msra.mxu0 %v3658_v21  ;;  %v3808_v53 = vld [vmem:[#allocation24 + $0x680] sm:$0xff]  ;;  %v3834_v21 = vld [vmem:[#allocation24 + $0x750] sm:$0xff] }
 0xa41   : > { %3693 = vmatpush.msra.mxu1 %v3629_v0  ;;  %3719 = vmatpush.msrb.mxu3 %v3655_v8  ;;  %v3809_v0 = vld [vmem:[#allocation24 + $0x688] sm:$0xff]  ;;  %v3835_v8 = vld [vmem:[#allocation24 + $0x758] sm:$0xff] }
 0xa42   : > { %3739 = vmatpush.msra.mxu2 %v3630_v61  ;;  %3765 = vmatpush.msra.mxu0 %v3656_v23  ;;  %v3806_v61 = vld [vmem:[#allocation24 + $0x670] sm:$0xff]  ;;  %v3832_v23 = vld [vmem:[#allocation24 + $0x740] sm:$0xff] }
 0xa43   : > { %3694 = vmatpush.msra.mxu1 %v3627_v24  ;;  %3720 = vmatpush.msrb.mxu3 %v3653_v25  ;;  %v3807_v24 = vld [vmem:[#allocation24 + $0x678] sm:$0xff]  ;;  %v3833_v25 = vld [vmem:[#allocation24 + $0x748] sm:$0xff] }
 0xa44   : > { %3740 = vmatpush.msra.mxu2 %v3628_v26  ;;  %3766 = vmatpush.msra.mxu0 %v3654_v30  ;;  %v3804_v26 = vld [vmem:[#allocation24 + $0x660] sm:$0xff]  ;;  %v3830_v30 = vld [vmem:[#allocation24 + $0x730] sm:$0xff] }
 0xa45   : > { %3529 = vmatmul.f32.gmra.mxu1 %v7547_v46  ;;  %3575 = vmatmul.f32.gmra.mxu2 %v7547_v46 }
 0xa46   : > { %3695 = vmatpush.msra.mxu1 %v3625_v27  ;;  %3721 = vmatpush.msrb.mxu3 %v3651_v31  ;;  %v3805_v27 = vld [vmem:[#allocation24 + $0x668] sm:$0xff]  ;;  %v3831_v31 = vld [vmem:[#allocation24 + $0x738] sm:$0xff] }
 0xa47   : > { %3741 = vmatpush.msra.mxu2 %v3626_v63  ;;  %3767 = vmatpush.msra.mxu0 %v3652_v2  ;;  %v3802_v63 = vld [vmem:[#allocation24 + $0x650] sm:$0xff]  ;;  %v3828_v2 = vld [vmem:[#allocation24 + $0x720] sm:$0xff] }
 0xa48   : > { %3879 = vmatpush.msra.mxu3 %v3854_v28  ;;  %3696 = vmatpush.msra.mxu1 %v3623_v15  ;;  %v3803_v28 = vld [vmem:[#allocation24 + $0x658] sm:$0xff]  ;;  %v3800_v15 = vld [vmem:[#allocation24 + $0x640] sm:$0xff] }
 0xa49   : > { %3925 = vmatpush.msrb.mxu0 %v3855_v14  ;;  %3722 = vmatmul.f32.vlgmr.msrb.gmra.mxu3 %v7535_v18  ;;  %v3829_v14 = vld [vmem:[#allocation24 + $0x728] sm:$0xff] }
 0xa4a   : > { %3742 = vmatpush.msra.mxu2 %v3624_v19  ;;  %3768 = vmatmul.f32.vlgmr.msra.gmra.mxu0 %v7535_v18  ;;  %v3826_v19 = vld [vmem:[#allocation24 + $0x710] sm:$0xff] }
 0xa4b   : > { %3880 = vmatpush.msra.mxu3 %v3852_v29  ;;  %3926 = vmatpush.msrb.mxu0 %v3853_v32  ;;  %v3801_v29 = vld [vmem:[#allocation24 + $0x648] sm:$0xff]  ;;  %v3827_v32 = vld [vmem:[#allocation24 + $0x718] sm:$0xff] }
 0xa4c   : > { %3697 = vmatpush.msra.mxu1 %v3621_v33  ;;  %3743 = vmatpush.msra.mxu2 %v3622_v6  ;;  %v3798_v33 = vld [vmem:[#allocation24 + $0x630] sm:$0xff]  ;;  %v3824_v6 = vld [vmem:[#allocation24 + $0x700] sm:$0xff] }
 0xa4d   : > { %3881 = vmatpush.msra.mxu3 %v3850_v41  ;;  %3927 = vmatpush.msrb.mxu0 %v3851_v10  ;;  %v3799_v41 = vld [vmem:[#allocation24 + $0x638] sm:$0xff]  ;;  %v3825_v10 = vld [vmem:[#allocation24 + $0x708] sm:$0xff] }
 0xa4e   : > { %3698 = vmatpush.msra.mxu1 %v3619_v11  ;;  %3744 = vmatpush.msra.mxu2 %v3620_v38  ;;  %v4027_v11 = vld [vmem:[#allocation24 + $0x9f0] sm:$0xff]  ;;  %v4028_v38 = vld [vmem:[#allocation24 + $0x9f8] sm:$0xff] }
 0xa4f   : > { %3882 = vmatpush.msra.mxu3 %v3848_v35  ;;  %3928 = vmatpush.msrb.mxu0 %v3849_v45  ;;  %v3797_v35 = vld [vmem:[#allocation24 + $0x628] sm:$0xff] }
 0xa50   : > { %3856 = vmatpush.msrb.mxu1 %v3822_v39  ;;  %3902 = vmatpush.msrb.mxu2 %v3823_v17  ;;  %v3796_v39 = vld [vmem:[#allocation24 + $0x620] sm:$0xff]  ;;  %v4026_v45 = vld [vmem:[#allocation24 + $0x9e8] sm:$0xff] }
 0xa51   : > { %3699 = vmatmul.f32.vlgmr.msra.gmra.mxu1 %v7539_v37  ;;  %3745 = vmatmul.f32.vlgmr.msra.gmra.mxu2 %v7539_v37  ;;  %v4025_v17 = vld [vmem:[#allocation24 + $0x9e0] sm:$0xff] }
 0xa52   : > { %3857 = vmatpush.msrb.mxu1 %v3820_v47  ;;  %3883 = vmatpush.msra.mxu3 %v3846_v50  ;;  %v3794_v47 = vld [vmem:[#allocation24 + $0x610] sm:$0xff]  ;;  %v3795_v50 = vld [vmem:[#allocation24 + $0x618] sm:$0xff] }
 0xa53   : > { %3903 = vmatpush.msrb.mxu2 %v3821_v5  ;;  %3929 = vmatpush.msrb.mxu0 %v3847_v57  ;;  %v4023_v5 = vld [vmem:[#allocation24 + $0x9d0] sm:$0xff]  ;;  %v4024_v57 = vld [vmem:[#allocation24 + $0x9d8] sm:$0xff] }
 0xa54   : > { %3725 = vmatmul.f32.gmra.mxu3 %v7541_v20  ;;  %3771 = vmatmul.f32.gmra.mxu0 %v7541_v20 }
 0xa55   : > { %3858 = vmatpush.msrb.mxu1 %v3818_v51  ;;  %3884 = vmatpush.msra.mxu3 %v3844_v62  ;;  %v3792_v51 = vld [vmem:[#allocation24 + $0x600] sm:$0xff]  ;;  %v3793_v62 = vld [vmem:[#allocation24 + $0x608] sm:$0xff] }
 0xa56   : > { %3904 = vmatpush.msrb.mxu2 %v3819_v54  ;;  %3930 = vmatpush.msrb.mxu0 %v3845_v52  ;;  %v3995_v54 = vld [vmem:[#allocation24 + $0x8f0] sm:$0xff]  ;;  %v4021_v52 = vld [vmem:[#allocation24 + $0x9c0] sm:$0xff] }
 0xa57   : > { %3859 = vmatpush.msrb.mxu1 %v3816_v55  ;;  %3885 = vmatpush.msra.mxu3 %v3842_v49  ;;  %v3996_v55 = vld [vmem:[#allocation24 + $0x8f8] sm:$0xff]  ;;  %v4022_v49 = vld [vmem:[#allocation24 + $0x9c8] sm:$0xff] }
 0xa58   : > { %3905 = vmatpush.msrb.mxu2 %v3817_v56  ;;  %3931 = vmatpush.msrb.mxu0 %v3843_v36  ;;  %v3993_v56 = vld [vmem:[#allocation24 + $0x8e0] sm:$0xff]  ;;  %v4019_v36 = vld [vmem:[#allocation24 + $0x9b0] sm:$0xff] }
 0xa59   : > { %3860 = vmatpush.msrb.mxu1 %v3814_v1  ;;  %3886 = vmatpush.msra.mxu3 %v3840_v7  ;;  %v3994_v1 = vld [vmem:[#allocation24 + $0x8e8] sm:$0xff]  ;;  %v4020_v7 = vld [vmem:[#allocation24 + $0x9b8] sm:$0xff] }
 0xa5a   : > { %3906 = vmatpush.msrb.mxu2 %v3815_v58  ;;  %3932 = vmatpush.msrb.mxu0 %v3841_v59  ;;  %v3991_v58 = vld [vmem:[#allocation24 + $0x8d0] sm:$0xff]  ;;  %v4017_v59 = vld [vmem:[#allocation24 + $0x9a0] sm:$0xff] }
 0xa5b   : > { %3702 = vmatmul.f32.gmra.mxu1 %v7547_v46  ;;  %3748 = vmatmul.f32.gmra.mxu2 %v7547_v46 }
 0xa5c   : > { %3861 = vmatpush.msrb.mxu1 %v3812_v60  ;;  %3887 = vmatpush.msra.mxu3 %v3838_v4  ;;  %v3992_v60 = vld [vmem:[#allocation24 + $0x8d8] sm:$0xff]  ;;  %v4018_v4 = vld [vmem:[#allocation24 + $0x9a8] sm:$0xff] }
 0xa5d   : > { %3907 = vmatpush.msrb.mxu2 %v3813_v43  ;;  %3933 = vmatpush.msrb.mxu0 %v3839_v9  ;;  %v3989_v43 = vld [vmem:[#allocation24 + $0x8c0] sm:$0xff]  ;;  %v4015_v9 = vld [vmem:[#allocation24 + $0x990] sm:$0xff] }
 0xa5e   : > { %3862 = vmatpush.msrb.mxu1 %v3810_v12  ;;  %3888 = vmatpush.msra.mxu3 %v3836_v3  ;;  %v3990_v12 = vld [vmem:[#allocation24 + $0x8c8] sm:$0xff]  ;;  %v4016_v3 = vld [vmem:[#allocation24 + $0x998] sm:$0xff] }
 0xa5f   : > { %3908 = vmatpush.msrb.mxu2 %v3811_v13  ;;  %3934 = vmatpush.msrb.mxu0 %v3837_v16  ;;  %v3987_v13 = vld [vmem:[#allocation24 + $0x8b0] sm:$0xff]  ;;  %v4013_v16 = vld [vmem:[#allocation24 + $0x980] sm:$0xff] }
 0xa60   : > { %3863 = vmatpush.msrb.mxu1 %v3808_v53  ;;  %3889 = vmatpush.msra.mxu3 %v3834_v21  ;;  %v3988_v53 = vld [vmem:[#allocation24 + $0x8b8] sm:$0xff]  ;;  %v4014_v21 = vld [vmem:[#allocation24 + $0x988] sm:$0xff] }
 0xa61   : > { %3909 = vmatpush.msrb.mxu2 %v3809_v0  ;;  %3935 = vmatpush.msrb.mxu0 %v3835_v8  ;;  %v3985_v0 = vld [vmem:[#allocation24 + $0x8a0] sm:$0xff]  ;;  %v4011_v8 = vld [vmem:[#allocation24 + $0x970] sm:$0xff] }
 0xa62   : > { %3864 = vmatpush.msrb.mxu1 %v3806_v61  ;;  %3890 = vmatpush.msra.mxu3 %v3832_v23  ;;  %v3986_v61 = vld [vmem:[#allocation24 + $0x8a8] sm:$0xff]  ;;  %v4012_v23 = vld [vmem:[#allocation24 + $0x978] sm:$0xff] }
 0xa63   : > { %3910 = vmatpush.msrb.mxu2 %v3807_v24  ;;  %3936 = vmatpush.msrb.mxu0 %v3833_v25  ;;  %v3983_v24 = vld [vmem:[#allocation24 + $0x890] sm:$0xff]  ;;  %v4009_v25 = vld [vmem:[#allocation24 + $0x960] sm:$0xff] }
 0xa64   : > { %3865 = vmatpush.msrb.mxu1 %v3804_v26  ;;  %3891 = vmatpush.msra.mxu3 %v3830_v30  ;;  %v3984_v26 = vld [vmem:[#allocation24 + $0x898] sm:$0xff]  ;;  %v4010_v30 = vld [vmem:[#allocation24 + $0x968] sm:$0xff] }
 0xa65   : > { %3911 = vmatpush.msrb.mxu2 %v3805_v27  ;;  %3937 = vmatpush.msrb.mxu0 %v3831_v31  ;;  %v3981_v27 = vld [vmem:[#allocation24 + $0x880] sm:$0xff]  ;;  %v4007_v31 = vld [vmem:[#allocation24 + $0x950] sm:$0xff] }
 0xa66   : > { %3866 = vmatpush.msrb.mxu1 %v3802_v63  ;;  %3892 = vmatpush.msra.mxu3 %v3828_v2  ;;  %v3982_v63 = vld [vmem:[#allocation24 + $0x888] sm:$0xff]  ;;  %v4008_v2 = vld [vmem:[#allocation24 + $0x958] sm:$0xff] }
 0xa67   : > { %3912 = vmatpush.msrb.mxu2 %v3803_v28  ;;  %3938 = vmatpush.msrb.mxu0 %v3829_v14  ;;  %v3979_v28 = vld [vmem:[#allocation24 + $0x870] sm:$0xff]  ;;  %v4005_v14 = vld [vmem:[#allocation24 + $0x940] sm:$0xff] }
 0xa68   : > { %3867 = vmatpush.msrb.mxu1 %v3800_v15  ;;  %3893 = vmatpush.msra.mxu3 %v3826_v19  ;;  %v3980_v15 = vld [vmem:[#allocation24 + $0x878] sm:$0xff]  ;;  %v4006_v19 = vld [vmem:[#allocation24 + $0x948] sm:$0xff] }
 0xa69   : > { %3913 = vmatpush.msrb.mxu2 %v3801_v29  ;;  %3939 = vmatpush.msrb.mxu0 %v3827_v32  ;;  %v3977_v29 = vld [vmem:[#allocation24 + $0x860] sm:$0xff]  ;;  %v4003_v32 = vld [vmem:[#allocation24 + $0x930] sm:$0xff] }
 0xa6a   : > { %3868 = vmatpush.msrb.mxu1 %v3798_v33  ;;  %3894 = vmatpush.msra.mxu3 %v3824_v6  ;;  %v3978_v33 = vld [vmem:[#allocation24 + $0x868] sm:$0xff]  ;;  %v4004_v6 = vld [vmem:[#allocation24 + $0x938] sm:$0xff] }
 0xa6b   : > { %3914 = vmatpush.msrb.mxu2 %v3799_v41  ;;  %3940 = vmatpush.msrb.mxu0 %v3825_v10  ;;  %v3975_v41 = vld [vmem:[#allocation24 + $0x850] sm:$0xff]  ;;  %v4001_v10 = vld [vmem:[#allocation24 + $0x920] sm:$0xff] }
 0xa6c   : > { %3895 = vmatmul.f32.vlgmr.msra.gmra.mxu3 %v7535_v18  ;;  %3941 = vmatmul.f32.vlgmr.msrb.gmra.mxu0 %v7535_v18 }
 0xa6d   : > { %4052 = vmatpush.msrb.mxu3 %v4027_v11  ;;  %4098 = vmatpush.msra.mxu0 %v4028_v38  ;;  %v3976_v11 = vld [vmem:[#allocation24 + $0x858] sm:$0xff]  ;;  %v4002_v38 = vld [vmem:[#allocation24 + $0x928] sm:$0xff] }
 0xa6e   : > { %3869 = vmatpush.msrb.mxu1 %v3796_v39  ;;  %3915 = vmatpush.msrb.mxu2 %v3797_v35  ;;  %v3973_v39 = vld [vmem:[#allocation24 + $0x840] sm:$0xff]  ;;  %v3999_v35 = vld [vmem:[#allocation24 + $0x910] sm:$0xff] }
 0xa6f   : > { %4053 = vmatpush.msrb.mxu3 %v4025_v17  ;;  %4099 = vmatpush.msra.mxu0 %v4026_v45  ;;  %v3974_v17 = vld [vmem:[#allocation24 + $0x848] sm:$0xff]  ;;  %v4000_v45 = vld [vmem:[#allocation24 + $0x918] sm:$0xff] }
 0xa70   : > { %3870 = vmatpush.msrb.mxu1 %v3794_v47  ;;  %3916 = vmatpush.msrb.mxu2 %v3795_v50  ;;  %v3971_v47 = vld [vmem:[#allocation24 + $0x830] sm:$0xff]  ;;  %v3997_v50 = vld [vmem:[#allocation24 + $0x900] sm:$0xff] }
 0xa71   : > { %4054 = vmatpush.msrb.mxu3 %v4023_v5  ;;  %4100 = vmatpush.msra.mxu0 %v4024_v57  ;;  %v3972_v5 = vld [vmem:[#allocation24 + $0x838] sm:$0xff]  ;;  %v3998_v57 = vld [vmem:[#allocation24 + $0x908] sm:$0xff] }
 0xa72   : > { %3871 = vmatpush.msrb.mxu1 %v3792_v51  ;;  %3917 = vmatpush.msrb.mxu2 %v3793_v62  ;;  %v4200_v51 = vld [vmem:[#allocation24 + $0xbf0] sm:$0xff]  ;;  %v4201_v62 = vld [vmem:[#allocation24 + $0xbf8] sm:$0xff] }
 0xa73   : > { %3872 = vmatmul.f32.vlgmr.msrb.gmra.mxu1 %v7539_v37  ;;  %3918 = vmatmul.f32.vlgmr.msrb.gmra.mxu2 %v7539_v37 }
 0xa74   : > { %4029 = vmatpush.msra.mxu1 %v3995_v54  ;;  %4055 = vmatpush.msrb.mxu3 %v4021_v52  ;;  %v3969_v54 = vld [vmem:[#allocation24 + $0x820] sm:$0xff]  ;;  %v3970_v52 = vld [vmem:[#allocation24 + $0x828] sm:$0xff] }
 0xa75   : > { %4075 = vmatpush.msra.mxu2 %v3996_v55  ;;  %4101 = vmatpush.msra.mxu0 %v4022_v49  ;;  %v4198_v55 = vld [vmem:[#allocation24 + $0xbe0] sm:$0xff]  ;;  %v4199_v49 = vld [vmem:[#allocation24 + $0xbe8] sm:$0xff] }
 0xa76   : > { %3898 = vmatmul.f32.gmra.mxu3 %v7541_v20  ;;  %3944 = vmatmul.f32.gmra.mxu0 %v7541_v20 }
 0xa77   : > { %4030 = vmatpush.msra.mxu1 %v3993_v56  ;;  %4056 = vmatpush.msrb.mxu3 %v4019_v36  ;;  %v3967_v56 = vld [vmem:[#allocation24 + $0x810] sm:$0xff]  ;;  %v3968_v36 = vld [vmem:[#allocation24 + $0x818] sm:$0xff] }
 0xa78   : > { %4076 = vmatpush.msra.mxu2 %v3994_v1  ;;  %4102 = vmatpush.msra.mxu0 %v4020_v7  ;;  %v4196_v1 = vld [vmem:[#allocation24 + $0xbd0] sm:$0xff]  ;;  %v4197_v7 = vld [vmem:[#allocation24 + $0xbd8] sm:$0xff] }
 0xa79   : > { %4031 = vmatpush.msra.mxu1 %v3991_v58  ;;  %4057 = vmatpush.msrb.mxu3 %v4017_v59  ;;  %v3965_v58 = vld [vmem:[#allocation24 + $0x800] sm:$0xff]  ;;  %v3966_v59 = vld [vmem:[#allocation24 + $0x808] sm:$0xff] }
 0xa7a   : > { %4077 = vmatpush.msra.mxu2 %v3992_v60  ;;  %4103 = vmatpush.msra.mxu0 %v4018_v4  ;;  %v4168_v60 = vld [vmem:[#allocation24 + $0xaf0] sm:$0xff]  ;;  %v4194_v4 = vld [vmem:[#allocation24 + $0xbc0] sm:$0xff] }
 0xa7b   : > { %4032 = vmatpush.msra.mxu1 %v3989_v43  ;;  %4058 = vmatpush.msrb.mxu3 %v4015_v9  ;;  %v4169_v43 = vld [vmem:[#allocation24 + $0xaf8] sm:$0xff]  ;;  %v4195_v9 = vld [vmem:[#allocation24 + $0xbc8] sm:$0xff] }
 0xa7c   : > { %4078 = vmatpush.msra.mxu2 %v3990_v12  ;;  %4104 = vmatpush.msra.mxu0 %v4016_v3  ;;  %v4166_v12 = vld [vmem:[#allocation24 + $0xae0] sm:$0xff]  ;;  %v4192_v3 = vld [vmem:[#allocation24 + $0xbb0] sm:$0xff] }
 0xa7d   : > { %3875 = vmatmul.f32.gmra.mxu1 %v7547_v46  ;;  %3921 = vmatmul.f32.gmra.mxu2 %v7547_v46 }
 0xa7e   : > { %4033 = vmatpush.msra.mxu1 %v3987_v13  ;;  %4059 = vmatpush.msrb.mxu3 %v4013_v16  ;;  %v4167_v13 = vld [vmem:[#allocation24 + $0xae8] sm:$0xff]  ;;  %v4193_v16 = vld [vmem:[#allocation24 + $0xbb8] sm:$0xff] }
 0xa7f   : > { %4079 = vmatpush.msra.mxu2 %v3988_v53  ;;  %4105 = vmatpush.msra.mxu0 %v4014_v21  ;;  %v4164_v53 = vld [vmem:[#allocation24 + $0xad0] sm:$0xff]  ;;  %v4190_v21 = vld [vmem:[#allocation24 + $0xba0] sm:$0xff] }
 0xa80   : > { %4034 = vmatpush.msra.mxu1 %v3985_v0  ;;  %4060 = vmatpush.msrb.mxu3 %v4011_v8  ;;  %v4165_v0 = vld [vmem:[#allocation24 + $0xad8] sm:$0xff]  ;;  %v4191_v8 = vld [vmem:[#allocation24 + $0xba8] sm:$0xff] }
 0xa81   : > { %4080 = vmatpush.msra.mxu2 %v3986_v61  ;;  %4106 = vmatpush.msra.mxu0 %v4012_v23  ;;  %v4162_v61 = vld [vmem:[#allocation24 + $0xac0] sm:$0xff]  ;;  %v4188_v23 = vld [vmem:[#allocation24 + $0xb90] sm:$0xff] }
 0xa82   : > { %4035 = vmatpush.msra.mxu1 %v3983_v24  ;;  %4061 = vmatpush.msrb.mxu3 %v4009_v25  ;;  %v4163_v24 = vld [vmem:[#allocation24 + $0xac8] sm:$0xff]  ;;  %v4189_v25 = vld [vmem:[#allocation24 + $0xb98] sm:$0xff] }
 0xa83   : > { %4081 = vmatpush.msra.mxu2 %v3984_v26  ;;  %4107 = vmatpush.msra.mxu0 %v4010_v30  ;;  %v4160_v26 = vld [vmem:[#allocation24 + $0xab0] sm:$0xff]  ;;  %v4186_v30 = vld [vmem:[#allocation24 + $0xb80] sm:$0xff] }
 0xa84   : > { %4036 = vmatpush.msra.mxu1 %v3981_v27  ;;  %4062 = vmatpush.msrb.mxu3 %v4007_v31  ;;  %v4161_v27 = vld [vmem:[#allocation24 + $0xab8] sm:$0xff]  ;;  %v4187_v31 = vld [vmem:[#allocation24 + $0xb88] sm:$0xff] }
 0xa85   : > { %4082 = vmatpush.msra.mxu2 %v3982_v63  ;;  %4108 = vmatpush.msra.mxu0 %v4008_v2  ;;  %v4158_v63 = vld [vmem:[#allocation24 + $0xaa0] sm:$0xff]  ;;  %v4184_v2 = vld [vmem:[#allocation24 + $0xb70] sm:$0xff] }
 0xa86   : > { %4037 = vmatpush.msra.mxu1 %v3979_v28  ;;  %4063 = vmatpush.msrb.mxu3 %v4005_v14  ;;  %v4159_v28 = vld [vmem:[#allocation24 + $0xaa8] sm:$0xff]  ;;  %v4185_v14 = vld [vmem:[#allocation24 + $0xb78] sm:$0xff] }
 0xa87   : > { %4083 = vmatpush.msra.mxu2 %v3980_v15  ;;  %4109 = vmatpush.msra.mxu0 %v4006_v19  ;;  %v4156_v15 = vld [vmem:[#allocation24 + $0xa90] sm:$0xff]  ;;  %v4182_v19 = vld [vmem:[#allocation24 + $0xb60] sm:$0xff] }
 0xa88   : > { %4038 = vmatpush.msra.mxu1 %v3977_v29  ;;  %4064 = vmatpush.msrb.mxu3 %v4003_v32  ;;  %v4157_v29 = vld [vmem:[#allocation24 + $0xa98] sm:$0xff]  ;;  %v4183_v32 = vld [vmem:[#allocation24 + $0xb68] sm:$0xff] }
 0xa89   : > { %4084 = vmatpush.msra.mxu2 %v3978_v33  ;;  %4110 = vmatpush.msra.mxu0 %v4004_v6 }
 0xa8a   : > { %4039 = vmatpush.msra.mxu1 %v3975_v41  ;;  %4065 = vmatpush.msrb.mxu3 %v4001_v10  ;;  %v4154_v41 = vld [vmem:[#allocation24 + $0xa80] sm:$0xff]  ;;  %v4180_v10 = vld [vmem:[#allocation24 + $0xb50] sm:$0xff] }
 0xa8b   : > { %4085 = vmatpush.msra.mxu2 %v3976_v11  ;;  %4111 = vmatpush.msra.mxu0 %v4002_v38  ;;  %v7585_v38 = vpop.permute.xlu2 %3424 }
 0xa8c   : > { %4040 = vmatpush.msra.mxu1 %v3973_v39  ;;  %4066 = vmatpush.msrb.mxu3 %v3999_v35  ;;  %v4155_v39 = vld [vmem:[#allocation24 + $0xa88] sm:$0xff]  ;;  %v4181_v35 = vld [vmem:[#allocation24 + $0xb58] sm:$0xff] }
 0xa8d   : > { %4086 = vmatpush.msra.mxu2 %v3974_v17  ;;  %4112 = vmatpush.msra.mxu0 %v4000_v45  ;;  %v4152_v17 = vld [vmem:[#allocation24 + $0xa70] sm:$0xff]  ;;  %v4178_v45 = vld [vmem:[#allocation24 + $0xb40] sm:$0xff] }
 0xa8e   : > { %4041 = vmatpush.msra.mxu1 %v3971_v47  ;;  %4067 = vmatpush.msrb.mxu3 %v3997_v50  ;;  %v4153_v47 = vld [vmem:[#allocation24 + $0xa78] sm:$0xff]  ;;  %v4179_v50 = vld [vmem:[#allocation24 + $0xb48] sm:$0xff] }
 0xa8f   : > { %4087 = vmatpush.msra.mxu2 %v3972_v5  ;;  %4113 = vmatpush.msra.mxu0 %v3998_v57  ;;  %v4150_v5 = vld [vmem:[#allocation24 + $0xa60] sm:$0xff]  ;;  %v4176_v57 = vld [vmem:[#allocation24 + $0xb30] sm:$0xff] }
 0xa90   : > { %4068 = vmatmul.f32.vlgmr.msrb.gmra.mxu3 %v7535_v18  ;;  %4114 = vmatmul.f32.vlgmr.msra.gmra.mxu0 %v7535_v18 }
 0xa91   : > { %4225 = vmatpush.msra.mxu3 %v4200_v51  ;;  %4271 = vmatpush.msrb.mxu0 %v4201_v62  ;;  %v4151_v51 = vld [vmem:[#allocation24 + $0xa68] sm:$0xff]  ;;  %v4177_v62 = vld [vmem:[#allocation24 + $0xb38] sm:$0xff] }
 0xa92   : > { %4042 = vmatpush.msra.mxu1 %v3969_v54  ;;  %4088 = vmatpush.msra.mxu2 %v3970_v52 }
 0xa93   : > { %4226 = vmatpush.msra.mxu3 %v4198_v55  ;;  %4272 = vmatpush.msrb.mxu0 %v4199_v49  ;;  %v4148_v55 = vld [vmem:[#allocation24 + $0xa50] sm:$0xff]  ;;  %v4174_v49 = vld [vmem:[#allocation24 + $0xb20] sm:$0xff] }
 0xa94   : > { %4043 = vmatpush.msra.mxu1 %v3967_v56  ;;  %4089 = vmatpush.msra.mxu2 %v3968_v36  ;;  %v4149_v36 = vld [vmem:[#allocation24 + $0xa58] sm:$0xff] }
 0xa95   : > { %4227 = vmatpush.msra.mxu3 %v4196_v1  ;;  %4273 = vmatpush.msrb.mxu0 %v4197_v7  ;;  %v4175_v1 = vld [vmem:[#allocation24 + $0xb28] sm:$0xff]  ;;  %v4146_v7 = vld [vmem:[#allocation24 + $0xa40] sm:$0xff] }
 0xa96   : > { %4044 = vmatpush.msra.mxu1 %v3965_v58  ;;  %4090 = vmatpush.msra.mxu2 %v3966_v59  ;;  %v4172_v58 = vld [vmem:[#allocation24 + $0xb10] sm:$0xff] }
 0xa97   : > { %4045 = vmatmul.f32.vlgmr.msra.gmra.mxu1 %v7539_v37  ;;  %4091 = vmatmul.f32.vlgmr.msra.gmra.mxu2 %v7539_v37 }
 0xa98   : > { %4202 = vmatpush.msrb.mxu1 %v4168_v60  ;;  %4228 = vmatpush.msra.mxu3 %v4194_v4  ;;  %v4147_v60 = vld [vmem:[#allocation24 + $0xa48] sm:$0xff]  ;;  %v4173_v4 = vld [vmem:[#allocation24 + $0xb18] sm:$0xff] }
 0xa99   : > { %4248 = vmatpush.msrb.mxu2 %v4169_v43  ;;  %4274 = vmatpush.msrb.mxu0 %v4195_v9  ;;  %v4144_v9 = vld [vmem:[#allocation24 + $0xa30] sm:$0xff] }
 0xa9a   : > { %4071 = vmatmul.f32.gmra.mxu3 %v7541_v20  ;;  %4117 = vmatmul.f32.gmra.mxu0 %v7541_v20 }
 0xa9b   : > { %4203 = vmatpush.msrb.mxu1 %v4166_v12  ;;  %4229 = vmatpush.msra.mxu3 %v4192_v3  ;;  %v4170_v12 = vld [vmem:[#allocation24 + $0xb00] sm:$0xff] }
 0xa9c   : > { %4249 = vmatpush.msrb.mxu2 %v4167_v13  ;;  %4275 = vmatpush.msrb.mxu0 %v4193_v16  ;;  %v7591_v13 = vpop.permute.xlu1 %3419  ;;  %v7593_v16 = vpop.permute.xlu2 %3438 }
 0xa9d   : > { %4204 = vmatpush.msrb.mxu1 %v4164_v53  ;;  %4230 = vmatpush.msra.mxu3 %v4190_v21  ;;  %v4145_v53 = vld [vmem:[#allocation24 + $0xa38] sm:$0xff]  ;;  %v4171_v21 = vld [vmem:[#allocation24 + $0xb08] sm:$0xff] }
 0xa9e   : > { %4250 = vmatpush.msrb.mxu2 %v4165_v0  ;;  %4276 = vmatpush.msrb.mxu0 %v4191_v8  ;;  %v3411_v54 = vpop.f32.mrf.mxu0  ;;  %v4373_v0 = vld [vmem:[#allocation24 + $0xdf0] sm:$0xff]  ;;  %v4374_v8 = vld [vmem:[#allocation24 + $0xdf8] sm:$0xff] }
 0xa9f   : > { %4205 = vmatpush.msrb.mxu1 %v4162_v61  ;;  %4231 = vmatpush.msra.mxu3 %v4188_v23  ;;  %v4142_v61 = vld [vmem:[#allocation24 + $0xa20] sm:$0xff]  ;;  %v4143_v23 = vld [vmem:[#allocation24 + $0xa28] sm:$0xff] }
 0xaa0   : > { %4251 = vmatpush.msrb.mxu2 %v4163_v24  ;;  %4277 = vmatpush.msrb.mxu0 %v4189_v25  ;;  %v4371_v24 = vld [vmem:[#allocation24 + $0xde0] sm:$0xff]  ;;  %v4372_v25 = vld [vmem:[#allocation24 + $0xde8] sm:$0xff] }
 0xaa1   : > { %4048 = vmatmul.f32.gmra.mxu1 %v7547_v46  ;;  %4094 = vmatmul.f32.gmra.mxu2 %v7547_v46 }
 0xaa2   : > { %4206 = vmatpush.msrb.mxu1 %v4160_v26  ;;  %4232 = vmatpush.msra.mxu3 %v4186_v30 }
 0xaa3   : > { %4252 = vmatpush.msrb.mxu2 %v4161_v27  ;;  %4278 = vmatpush.msrb.mxu0 %v4187_v31  ;;  %v4140_v27 = vld [vmem:[#allocation24 + $0xa10] sm:$0xff]  ;;  %v4141_v31 = vld [vmem:[#allocation24 + $0xa18] sm:$0xff] }
 0xaa4   : > { %4207 = vmatpush.msrb.mxu1 %v4158_v63  ;;  %4233 = vmatpush.msra.mxu3 %v4184_v2  ;;  %v3342_v33 = vpop.f32.mrf.mxu1  ;;  %v3365_v6 = vpop.f32.mrf.mxu3  ;;  %v4369_v2 = vld [vmem:[#allocation24 + $0xdd0] sm:$0xff] }
 0xaa5   : > { %4253 = vmatpush.msrb.mxu2 %v4159_v28  ;;  %4279 = vmatpush.msrb.mxu0 %v4185_v14  ;;  %v7583_v11 = vadd.f32 %v3365_v6, %v3342_v33  ;;  %v4370_v28 = vld [vmem:[#allocation24 + $0xdd8] sm:$0xff]  ;;  %v4138_v14 = vld [vmem:[#allocation24 + $0xa00] sm:$0xff]  ;;  %v3604_v33 = vpop.permute.xlu2 %3603  ;;  %v4341_v6 = vld [vmem:[#allocation24 + $0xcf0] sm:$0xff] }
 0xaa6   : > { %4208 = vmatpush.msrb.mxu1 %v4156_v15  ;;  %4234 = vmatpush.msra.mxu3 %v4182_v19  ;;  %v4139_v15 = vld [vmem:[#allocation24 + $0xa08] sm:$0xff] }
 0xaa7   : > { %4254 = vmatpush.msrb.mxu2 %v4157_v29  ;;  %4280 = vmatpush.msrb.mxu0 %v4183_v32  ;;  %v3414_v26 = vpop.f32.mrf.mxu0  ;;  %v3427_v19 = vmul.f32 %v7591_v13, %v7583_v11 }
 0xaa8   : > { %4209 = vmatpush.msrb.mxu1 %v4154_v41  ;;  %4235 = vmatpush.msra.mxu3 %v4180_v10  ;;  %v4367_v41 = vld [vmem:[#allocation24 + $0xdc0] sm:$0xff] }
 0xaa9   : > { %4255 = vmatpush.msrb.mxu2 %v4155_v39  ;;  %4281 = vmatpush.msrb.mxu0 %v4181_v35  ;;  %v3434_v39 = vpop.permute.xlu1 %3433  ;;  %v4342_v35 = vld [vmem:[#allocation24 + $0xcf8] sm:$0xff] }
 0xaaa   : > { %4210 = vmatpush.msrb.mxu1 %v4152_v17  ;;  %4236 = vmatpush.msra.mxu3 %v4178_v45  ;;  %v3388_v52 = vpop.f32.mrf.mxu2  ;;  %v4368_v17 = vld [vmem:[#allocation24 + $0xdc8] sm:$0xff]  ;;  %v3441_v11 = vadd.f32 %v3434_v39, %v3427_v19  ;;  %v4330_v19 = vld [vmem:[#allocation24 + $0xc98] sm:$0xff] }
 0xaab   : > { %4256 = vmatpush.msrb.mxu2 %v4153_v47  ;;  %4282 = vmatpush.msrb.mxu0 %v4179_v50  ;;  %v7587_v56 = vadd.f32 %v3411_v54, %v3388_v52  ;;  %v4339_v47 = vld [vmem:[#allocation24 + $0xce0] sm:$0xff]  ;;  %v4365_v50 = vld [vmem:[#allocation24 + $0xdb0] sm:$0xff] }
 0xaac   : > { %4211 = vmatpush.msrb.mxu1 %v4150_v5  ;;  %4237 = vmatpush.msra.mxu3 %v4176_v57  ;;  %v4340_v5 = vld [vmem:[#allocation24 + $0xce8] sm:$0xff]  ;;  %v4366_v57 = vld [vmem:[#allocation24 + $0xdb8] sm:$0xff]  ;;  %v4337_v54 = vld [vmem:[#allocation24 + $0xcd0] sm:$0xff] }
 0xaad   : > { %4257 = vmatpush.msrb.mxu2 %v4151_v51  ;;  %4283 = vmatpush.msrb.mxu0 %v4177_v62  ;;  %v3368_v59 = vpop.f32.mrf.mxu3  ;;  %v3428_v51 = vmul.f32 %v7591_v13, %v7587_v56  ;;  %v4363_v52 = vld [vmem:[#allocation24 + $0xda0] sm:$0xff]  ;;  %v4336_v56 = vld [vmem:[#allocation24 + $0xcc8] sm:$0xff] }
 0xaae   : > { %4212 = vmatpush.msrb.mxu1 %v4148_v55  ;;  %4238 = vmatpush.msra.mxu3 %v4174_v49  ;;  %v3345_v43 = vpop.f32.mrf.mxu1 }
 0xaaf   : > { %4258 = vmatpush.msrb.mxu2 %v4149_v36  ;;  %4284 = vmatpush.msrb.mxu0 %v4175_v1  ;;  %v7589_v3 = vadd.f32 %v3368_v59, %v3345_v43  ;;  %v4338_v36 = vld [vmem:[#allocation24 + $0xcd8] sm:$0xff]  ;;  %v4364_v1 = vld [vmem:[#allocation24 + $0xda8] sm:$0xff]  ;;  %v4361_v59 = vld [vmem:[#allocation24 + $0xd90] sm:$0xff] }
 0xab0   : > { %4213 = vmatpush.msrb.mxu1 %v4146_v7  ;;  %4239 = vmatpush.msra.mxu3 %v4172_v58  ;;  %v4335_v58 = vld [vmem:[#allocation24 + $0xcc0] sm:$0xff] }
 0xab1   : > { %4259 = vmatpush.msrb.mxu2 %v4147_v60  ;;  %4285 = vmatpush.msrb.mxu0 %v4173_v4  ;;  %v3596_v55 = vpop.f32.mrf.mxu0  ;;  %v4362_v60 = vld [vmem:[#allocation24 + $0xd98] sm:$0xff]  ;;  %v3442_v4 = vadd.f32 %v3434_v39, %v3428_v51  ;;  %v3429_v43 = vmul.f32 %v7585_v38, %v7589_v3  ;;  %v4328_v39 = vld [vmem:[#allocation24 + $0xc88] sm:$0xff] }
 0xab2   : > { %4214 = vmatpush.msrb.mxu1 %v4144_v9  ;;  %4240 = vmatpush.msra.mxu3 %v4170_v12 }
 0xab3   : > { %4260 = vmatpush.msrb.mxu2 %v4145_v53  ;;  %4286 = vmatpush.msrb.mxu0 %v4171_v21  ;;  %v3608_v53 = vpop.permute.xlu0 %3607  ;;  %v4333_v21 = vld [vmem:[#allocation24 + $0xcb0] sm:$0xff]  ;;  %v3443_v3 = vadd.f32 %v7593_v16, %v3429_v43  ;;  %v4346_v43 = vld [vmem:[#allocation24 + $0xd18] sm:$0xff] }
 0xab4   : > { %4241 = vmatmul.f32.vlgmr.msra.gmra.mxu3 %v7535_v18  ;;  %4287 = vmatmul.f32.vlgmr.msrb.gmra.mxu0 %v7535_v18  ;;  %v3391_v30 = vpop.f32.mrf.mxu2 }
 0xab5   : > { %4398 = vmatpush.msrb.mxu3 %v4373_v0  ;;  %4444 = vmatpush.msra.mxu0 %v4374_v8  ;;  %v7597_v63 = vadd.f32 %v3414_v26, %v3391_v30  ;;  %v4359_v0 = vld [vmem:[#allocation24 + $0xd80] sm:$0xff]  ;;  %v4357_v26 = vld [vmem:[#allocation24 + $0xd70] sm:$0xff] }
 0xab6   : > { %4215 = vmatpush.msrb.mxu1 %v4142_v61  ;;  %4261 = vmatpush.msrb.mxu2 %v4143_v23  ;;  %v4334_v23 = vld [vmem:[#allocation24 + $0xcb8] sm:$0xff] }
 0xab7   : > { %4399 = vmatpush.msrb.mxu3 %v4371_v24  ;;  %4445 = vmatpush.msra.mxu0 %v4372_v25  ;;  %v3550_v29 = vpop.f32.mrf.mxu3  ;;  %v4360_v24 = vld [vmem:[#allocation24 + $0xd88] sm:$0xff]  ;;  %v4331_v25 = vld [vmem:[#allocation24 + $0xca0] sm:$0xff] }
 0xab8   : > { %4216 = vmatpush.msrb.mxu1 %v4140_v27  ;;  %4262 = vmatpush.msrb.mxu2 %v4141_v31  ;;  %v3527_v32 = vpop.f32.mrf.mxu1  ;;  %v4332_v27 = vld [vmem:[#allocation24 + $0xca8] sm:$0xff]  ;;  %v4358_v31 = vld [vmem:[#allocation24 + $0xd78] sm:$0xff] }
 0xab9   : > { %4400 = vmatpush.msrb.mxu3 %v4369_v2  ;;  %4446 = vmatpush.msra.mxu0 %v4370_v28  ;;  %v3551_v10 = vadd.f32 %v3550_v29, %v3527_v32  ;;  %v4329_v2 = vld [vmem:[#allocation24 + $0xc90] sm:$0xff]  ;;  %v4355_v28 = vld [vmem:[#allocation24 + $0xd60] sm:$0xff]  ;;  %v4356_v29 = vld [vmem:[#allocation24 + $0xd68] sm:$0xff] }
 0xaba   : > { %4217 = vmatpush.msrb.mxu1 %v4138_v14  ;;  %4263 = vmatpush.msrb.mxu2 %v4139_v15  ;;  %v3430_v14 = vmul.f32 %v7585_v38, %v7597_v63  ;;  %v4325_v63 = vld [vmem:[#allocation24 + $0xc70] sm:$0xff] }
 0xabb   : > { %4218 = vmatmul.f32.vlgmr.msrb.gmra.mxu1 %v7539_v37  ;;  %4264 = vmatmul.f32.vlgmr.msrb.gmra.mxu2 %v7539_v37  ;;  %v3610_v45 = vmul.f32 %v3604_v33, %v3551_v10  ;;  %v3599_v32 = vpop.f32.mrf.mxu0 }
 0xabc   : > { %4375 = vmatpush.msra.mxu1 %v4341_v6  ;;  %4401 = vmatpush.msrb.mxu3 %v4367_v41  ;;  %v4327_v6 = vld [vmem:[#allocation24 + $0xc80] sm:$0xff]  ;;  %v4353_v41 = vld [vmem:[#allocation24 + $0xd50] sm:$0xff]  ;;  %v3444_v38 = vadd.f32 %v7593_v16, %v3430_v14  ;;  %v3777_v16 = vpop.permute.xlu2 %3776 }
 0xabd   : > { %4421 = vmatpush.msra.mxu2 %v4342_v35  ;;  %4447 = vmatpush.msra.mxu0 %v4368_v17  ;;  %v7605_v62 = vadd.f32 %v3610_v45, %v3441_v11  ;;  %v4354_v35 = vld [vmem:[#allocation24 + $0xd58] sm:$0xff]  ;;  %v4351_v17 = vld [vmem:[#allocation24 + $0xd40] sm:$0xff]  ;;  %v4313_v14 = vld [vmem:[#allocation24 + $0xc10] sm:$0xff] }
 0xabe   : > { %4244 = vmatmul.f32.gmra.mxu3 %v7541_v20  ;;  %4290 = vmatmul.f32.gmra.mxu0 %v7541_v20  ;;  %v3573_v49 = vpop.f32.mrf.mxu2  ;;  %v4326_v45 = vld [vmem:[#allocation24 + $0xc78] sm:$0xff] }
 0xabf   : > { %4376 = vmatpush.msra.mxu1 %v4339_v47  ;;  %4402 = vmatpush.msrb.mxu3 %v4365_v50  ;;  %v3597_v7 = vadd.f32 %v3596_v55, %v3573_v49  ;;  %v4352_v47 = vld [vmem:[#allocation24 + $0xd48] sm:$0xff]  ;;  %v4321_v49 = vld [vmem:[#allocation24 + $0xc50] sm:$0xff] }
 0xac0   : > { %4422 = vmatpush.msra.mxu2 %v4340_v5  ;;  %4448 = vmatpush.msra.mxu0 %v4366_v57  ;;  %v4323_v5 = vld [vmem:[#allocation24 + $0xc60] sm:$0xff]  ;;  %v4349_v57 = vld [vmem:[#allocation24 + $0xd30] sm:$0xff] }
 0xac1   : > { %4377 = vmatpush.msra.mxu1 %v4337_v54  ;;  %4403 = vmatpush.msrb.mxu3 %v4363_v52  ;;  %v3611_v9 = vmul.f32 %v3604_v33, %v3597_v7  ;;  %v3553_v12 = vpop.f32.mrf.mxu3  ;;  %v4324_v54 = vld [vmem:[#allocation24 + $0xc68] sm:$0xff]  ;;  %v4350_v52 = vld [vmem:[#allocation24 + $0xd38] sm:$0xff] }
 0xac2   : > { %4423 = vmatpush.msra.mxu2 %v4338_v36  ;;  %4449 = vmatpush.msra.mxu0 %v4364_v1  ;;  %v3530_v13 = vpop.f32.mrf.mxu1  ;;  %v4347_v36 = vld [vmem:[#allocation24 + $0xd20] sm:$0xff]  ;;  %v4322_v7 = vld [vmem:[#allocation24 + $0xc58] sm:$0xff] }
 0xac3   : > { %4378 = vmatpush.msra.mxu1 %v4335_v58  ;;  %4404 = vmatpush.msrb.mxu3 %v4361_v59  ;;  %v7611_v8 = vadd.f32 %v3611_v9, %v3442_v4  ;;  %v3554_v61 = vadd.f32 %v3553_v12, %v3530_v13  ;;  %v4348_v58 = vld [vmem:[#allocation24 + $0xd28] sm:$0xff]  ;;  %v4319_v59 = vld [vmem:[#allocation24 + $0xc40] sm:$0xff]  ;;  %v4317_v9 = vld [vmem:[#allocation24 + $0xc30] sm:$0xff] }
 0xac4   : > { %4424 = vmatpush.msra.mxu2 %v4336_v56  ;;  %4450 = vmatpush.msra.mxu0 %v4362_v60  ;;  %v4345_v56 = vld [vmem:[#allocation24 + $0xd10] sm:$0xff]  ;;  %v4320_v4 = vld [vmem:[#allocation24 + $0xc48] sm:$0xff]  ;;  %v4343_v12 = vld [vmem:[#allocation24 + $0xd00] sm:$0xff] }
 0xac5   : > { %4221 = vmatmul.f32.gmra.mxu1 %v7547_v46  ;;  %4267 = vmatmul.f32.gmra.mxu2 %v7547_v46  ;;  %v3612_v30 = vmul.f32 %v3608_v53, %v3554_v61 }
 0xac6   : > { %4379 = vmatpush.msra.mxu1 %v4333_v21  ;;  %4405 = vmatpush.msrb.mxu3 %v4359_v0  ;;  %v4344_v21 = vld [vmem:[#allocation24 + $0xd08] sm:$0xff] }
 0xac7   : > { %4425 = vmatpush.msra.mxu2 %v4334_v23  ;;  %4451 = vmatpush.msra.mxu0 %v4360_v24  ;;  %v7618_v15 = vadd.f32 %v3612_v30, %v3443_v3  ;;  %v3769_v0 = vpop.f32.mrf.mxu0  ;;  %v4546_v24 = vld [vmem:[#allocation24 + $0xff0] sm:$0xff]  ;;  %v4547_v3 = vld [vmem:[#allocation24 + $0xff8] sm:$0xff] }
 0xac8   : > { %4380 = vmatpush.msra.mxu1 %v4331_v25  ;;  %4406 = vmatpush.msrb.mxu3 %v4357_v26  ;;  %v3576_v33 = vpop.f32.mrf.mxu2  ;;  %v4315_v25 = vld [vmem:[#allocation24 + $0xc20] sm:$0xff]  ;;  %v4316_v26 = vld [vmem:[#allocation24 + $0xc28] sm:$0xff] }
 0xac9   : > { %4426 = vmatpush.msra.mxu2 %v4332_v27  ;;  %4452 = vmatpush.msra.mxu0 %v4358_v31  ;;  %v3600_v10 = vadd.f32 %v3599_v32, %v3576_v33  ;;  %v4544_v27 = vld [vmem:[#allocation24 + $0xfe0] sm:$0xff]  ;;  %v4545_v31 = vld [vmem:[#allocation24 + $0xfe8] sm:$0xff]  ;;  %v4542_v33 = vld [vmem:[#allocation24 + $0xfd0] sm:$0xff] }
 0xaca   : > { %4381 = vmatpush.msra.mxu1 %v4329_v2  ;;  %4407 = vmatpush.msrb.mxu3 %v4355_v28  ;;  %v3781_v28 = vpop.permute.xlu1 %3780 }
 0xacb   : > { %4427 = vmatpush.msra.mxu2 %v4330_v19  ;;  %4453 = vmatpush.msra.mxu0 %v4356_v29  ;;  %v3613_v11 = vmul.f32 %v3608_v53, %v3600_v10  ;;  %v4318_v53 = vld [vmem:[#allocation24 + $0xc38] sm:$0xff]  ;;  %v4312_v10 = vld [vmem:[#allocation24 + $0xc08] sm:$0xff] }
 0xacc   : > { %4382 = vmatpush.msra.mxu1 %v4327_v6  ;;  %4408 = vmatpush.msrb.mxu3 %v4353_v41  ;;  %v3723_v50 = vpop.f32.mrf.mxu3  ;;  %v4314_v19 = vld [vmem:[#allocation24 + $0xc18] sm:$0xff]  ;;  %v4311_v41 = vld [vmem:[#allocation24 + $0xc00] sm:$0xff] }
 0xacd   : > { %4428 = vmatpush.msra.mxu2 %v4328_v39  ;;  %4454 = vmatpush.msra.mxu0 %v4354_v35  ;;  %v7621_v51 = vadd.f32 %v3613_v11, %v3444_v38  ;;  %v4543_v6 = vld [vmem:[#allocation24 + $0xfd8] sm:$0xff]  ;;  %v4514_v35 = vld [vmem:[#allocation24 + $0xef0] sm:$0xff]  ;;  %v4540_v38 = vld [vmem:[#allocation24 + $0xfc0] sm:$0xff] }
 0xace   : > { %4383 = vmatpush.msra.mxu1 %v4325_v63  ;;  %4409 = vmatpush.msrb.mxu3 %v4351_v17  ;;  %v3700_v55 = vpop.f32.mrf.mxu1  ;;  %v4541_v17 = vld [vmem:[#allocation24 + $0xfc8] sm:$0xff] }
 0xacf   : > { %4429 = vmatpush.msra.mxu2 %v4326_v45  ;;  %4455 = vmatpush.msra.mxu0 %v4352_v47  ;;  %v3724_v1 = vadd.f32 %v3723_v50, %v3700_v55  ;;  %v4512_v50 = vld [vmem:[#allocation24 + $0xee0] sm:$0xff] }
 0xad0   : > { %4384 = vmatpush.msra.mxu1 %v4323_v5  ;;  %4410 = vmatpush.msrb.mxu3 %v4349_v57  ;;  %v4538_v5 = vld [vmem:[#allocation24 + $0xfb0] sm:$0xff]  ;;  %v4513_v57 = vld [vmem:[#allocation24 + $0xee8] sm:$0xff]  ;;  %v4536_v55 = vld [vmem:[#allocation24 + $0xfa0] sm:$0xff] }
 0xad1   : > { %4430 = vmatpush.msra.mxu2 %v4324_v54  ;;  %4456 = vmatpush.msra.mxu0 %v4350_v52  ;;  %v3783_v60 = vmul.f32 %v3777_v16, %v3724_v1  ;;  %v3772_v11 = vpop.f32.mrf.mxu0  ;;  %v4510_v52 = vld [vmem:[#allocation24 + $0xed0] sm:$0xff]  ;;  %v4508_v1 = vld [vmem:[#allocation24 + $0xec0] sm:$0xff] }
 0xad2   : > { %4385 = vmatpush.msra.mxu1 %v4321_v49  ;;  %4411 = vmatpush.msrb.mxu3 %v4347_v36  ;;  %v4537_v49 = vld [vmem:[#allocation24 + $0xfa8] sm:$0xff] }
 0xad3   : > { %4431 = vmatpush.msra.mxu2 %v4322_v7  ;;  %4457 = vmatpush.msra.mxu0 %v4348_v58  ;;  %v7624_v13 = vadd.f32 %v3783_v60, %v7605_v62  ;;  %v4534_v7 = vld [vmem:[#allocation24 + $0xf90] sm:$0xff]  ;;  %v4509_v58 = vld [vmem:[#allocation24 + $0xec8] sm:$0xff]  ;;  %v4532_v60 = vld [vmem:[#allocation24 + $0xf80] sm:$0xff] }
 0xad4   : > { %4386 = vmatpush.msra.mxu1 %v4319_v59  ;;  %4412 = vmatpush.msrb.mxu3 %v4345_v56  ;;  %v3746_v61 = vpop.f32.mrf.mxu2  ;;  %v4535_v59 = vld [vmem:[#allocation24 + $0xf98] sm:$0xff]  ;;  %v4506_v56 = vld [vmem:[#allocation24 + $0xeb0] sm:$0xff] }
 0xad5   : > { %4432 = vmatpush.msra.mxu2 %v4320_v4  ;;  %4458 = vmatpush.msra.mxu0 %v4346_v43  ;;  %v3770_v23 = vadd.f32 %v3769_v0, %v3746_v61  ;;  %v4507_v4 = vld [vmem:[#allocation24 + $0xeb8] sm:$0xff]  ;;  %v4533_v43 = vld [vmem:[#allocation24 + $0xf88] sm:$0xff]  ;;  %v4528_v0 = vld [vmem:[#allocation24 + $0xf60] sm:$0xff] }
 0xad6   : > { %4387 = vmatpush.msra.mxu1 %v4317_v9  ;;  %4413 = vmatpush.msrb.mxu3 %v4343_v12  ;;  %v4530_v9 = vld [vmem:[#allocation24 + $0xf70] sm:$0xff]  ;;  %v4505_v12 = vld [vmem:[#allocation24 + $0xea8] sm:$0xff]  ;;  %v4503_v61 = vld [vmem:[#allocation24 + $0xe98] sm:$0xff] }
 0xad7   : > { %4433 = vmatpush.msra.mxu2 %v4318_v53  ;;  %4459 = vmatpush.msra.mxu0 %v4344_v21  ;;  %v3784_v30 = vmul.f32 %v3777_v16, %v3770_v23  ;;  %v3726_v62 = vpop.f32.mrf.mxu3  ;;  %v4511_v16 = vld [vmem:[#allocation24 + $0xed8] sm:$0xff]  ;;  %v4502_v21 = vld [vmem:[#allocation24 + $0xe90] sm:$0xff]  ;;  %v4529_v23 = vld [vmem:[#allocation24 + $0xf68] sm:$0xff] }
 0xad8   : > { %4414 = vmatmul.f32.vlgmr.msrb.gmra.mxu3 %v7535_v18  ;;  %4460 = vmatmul.f32.vlgmr.msra.gmra.mxu0 %v7535_v18  ;;  %v3703_v2 = vpop.f32.mrf.mxu1  ;;  %v4531_v53 = vld [vmem:[#allocation24 + $0xf78] sm:$0xff] }
 0xad9   : > { %4571 = vmatpush.msra.mxu3 %v4546_v24  ;;  %4617 = vmatpush.msrb.mxu0 %v4547_v3  ;;  %v7629_v29 = vadd.f32 %v3784_v30, %v7611_v8  ;;  %v3727_v32 = vadd.f32 %v3726_v62, %v3703_v2  ;;  %v4515_v8 = vld [vmem:[#allocation24 + $0xef8] sm:$0xff]  ;;  %v4500_v24 = vld [vmem:[#allocation24 + $0xe80] sm:$0xff]  ;;  %v4526_v3 = vld [vmem:[#allocation24 + $0xf50] sm:$0xff] }
 0xada   : > { %4388 = vmatpush.msra.mxu1 %v4315_v25  ;;  %4434 = vmatpush.msra.mxu2 %v4316_v26  ;;  %v4501_v25 = vld [vmem:[#allocation24 + $0xe88] sm:$0xff]  ;;  %v4527_v26 = vld [vmem:[#allocation24 + $0xf58] sm:$0xff]  ;;  %v4498_v30 = vld [vmem:[#allocation24 + $0xe70] sm:$0xff] }
 0xadb   : > { %4572 = vmatpush.msra.mxu3 %v4544_v27  ;;  %4618 = vmatpush.msrb.mxu0 %v4545_v31  ;;  %v3785_v39 = vmul.f32 %v3781_v28, %v3727_v32  ;;  %v4524_v62 = vld [vmem:[#allocation24 + $0xf40] sm:$0xff]  ;;  %v4499_v31 = vld [vmem:[#allocation24 + $0xe78] sm:$0xff]  ;;  %v4525_v2 = vld [vmem:[#allocation24 + $0xf48] sm:$0xff] }
 0xadc   : > { %4389 = vmatpush.msra.mxu1 %v4313_v14  ;;  %4435 = vmatpush.msra.mxu2 %v4314_v19  ;;  %v3950_v14 = vpop.permute.xlu1 %3949  ;;  %v4496_v19 = vld [vmem:[#allocation24 + $0xe60] sm:$0xff]  ;;  %v4522_v32 = vld [vmem:[#allocation24 + $0xf30] sm:$0xff] }
 0xadd   : > { %4573 = vmatpush.msra.mxu3 %v4542_v33  ;;  %4619 = vmatpush.msrb.mxu0 %v4543_v6  ;;  %v7632_v63 = vadd.f32 %v3785_v39, %v7618_v15  ;;  %v4539_v15 = vld [vmem:[#allocation24 + $0xfb8] sm:$0xff]  ;;  %v4497_v6 = vld [vmem:[#allocation24 + $0xe68] sm:$0xff]  ;;  %v4520_v39 = vld [vmem:[#allocation24 + $0xf20] sm:$0xff] }
 0xade   : > { %4390 = vmatpush.msra.mxu1 %v4311_v41  ;;  %4436 = vmatpush.msra.mxu2 %v4312_v10  ;;  %v3749_v45 = vpop.f32.mrf.mxu2  ;;  %v4523_v41 = vld [vmem:[#allocation24 + $0xf38] sm:$0xff]  ;;  %v4494_v10 = vld [vmem:[#allocation24 + $0xe50] sm:$0xff] }
 0xadf   : > { %4391 = vmatmul.f32.vlgmr.msra.gmra.mxu1 %v7539_v37  ;;  %4437 = vmatmul.f32.vlgmr.msra.gmra.mxu2 %v7539_v37  ;;  %v3773_v47 = vadd.f32 %v3772_v11, %v3749_v45  ;;  %v4518_v11 = vld [vmem:[#allocation24 + $0xf10] sm:$0xff] }
 0xae0   : > { %4548 = vmatpush.msrb.mxu1 %v4514_v35  ;;  %4574 = vmatpush.msra.mxu3 %v4540_v38  ;;  %v4495_v38 = vld [vmem:[#allocation24 + $0xe58] sm:$0xff] }
 0xae1   : > { %4594 = vmatpush.msrb.mxu2 %v4515_v8  ;;  %4620 = vmatpush.msrb.mxu0 %v4541_v17  ;;  %v3786_v54 = vmul.f32 %v3781_v28, %v3773_v47  ;;  %v4521_v8 = vld [vmem:[#allocation24 + $0xf28] sm:$0xff]  ;;  %v4492_v17 = vld [vmem:[#allocation24 + $0xe40] sm:$0xff] }
 0xae2   : > { %4417 = vmatmul.f32.gmra.mxu3 %v7541_v20  ;;  %4463 = vmatmul.f32.gmra.mxu0 %v7541_v20  ;;  %v4493_v47 = vld [vmem:[#allocation24 + $0xe48] sm:$0xff] }
 0xae3   : > { %4549 = vmatpush.msrb.mxu1 %v4512_v50  ;;  %4575 = vmatpush.msra.mxu3 %v4538_v5  ;;  %v7639_v36 = vadd.f32 %v3786_v54, %v7621_v51  ;;  %v4504_v51 = vld [vmem:[#allocation24 + $0xea0] sm:$0xff]  ;;  %v4519_v50 = vld [vmem:[#allocation24 + $0xf18] sm:$0xff] }
 0xae4   : > { %4595 = vmatpush.msrb.mxu2 %v4513_v57  ;;  %4621 = vmatpush.msrb.mxu0 %v4539_v15  ;;  %v4490_v15 = vld [vmem:[#allocation24 + $0xe30] sm:$0xff]  ;;  %v4516_v54 = vld [vmem:[#allocation24 + $0xf00] sm:$0xff] }
 0xae5   : > { %4550 = vmatpush.msrb.mxu1 %v4510_v52  ;;  %4576 = vmatpush.msra.mxu3 %v4536_v55  ;;  %v4491_v55 = vld [vmem:[#allocation24 + $0xe38] sm:$0xff] }
 0xae6   : > { %4596 = vmatpush.msrb.mxu2 %v4511_v16  ;;  %4622 = vmatpush.msrb.mxu0 %v4537_v49  ;;  %v4517_v16 = vld [vmem:[#allocation24 + $0xf08] sm:$0xff] }
 0xae7   : > { %4551 = vmatpush.msrb.mxu1 %v4508_v1  ;;  %4577 = vmatpush.msra.mxu3 %v4534_v7  ;;  %v4719_v1 = vld [vmem:[#allocation24 + $0x11f0] sm:$0xff]  ;;  %v4720_v7 = vld [vmem:[#allocation24 + $0x11f8] sm:$0xff] }
 0xae8   : > { %4597 = vmatpush.msrb.mxu2 %v4509_v58  ;;  %4623 = vmatpush.msrb.mxu0 %v4535_v59  ;;  %v3954_v59 = vpop.permute.xlu0 %3953 }
 0xae9   : > { %4394 = vmatmul.f32.gmra.mxu1 %v7547_v46  ;;  %4440 = vmatmul.f32.gmra.mxu2 %v7547_v46  ;;  %v3942_v5 = vpop.f32.mrf.mxu0 }
 0xaea   : > { %4552 = vmatpush.msrb.mxu1 %v4506_v56  ;;  %4578 = vmatpush.msra.mxu3 %v4532_v60  ;;  %v4488_v56 = vld [vmem:[#allocation24 + $0xe20] sm:$0xff]  ;;  %v4489_v60 = vld [vmem:[#allocation24 + $0xe28] sm:$0xff] }
 0xaeb   : > { %4598 = vmatpush.msrb.mxu2 %v4507_v4  ;;  %4624 = vmatpush.msrb.mxu0 %v4533_v43 }
 0xaec   : > { %4553 = vmatpush.msrb.mxu1 %v4504_v51  ;;  %4579 = vmatpush.msra.mxu3 %v4530_v9  ;;  %v4717_v51 = vld [vmem:[#allocation24 + $0x11e0] sm:$0xff]  ;;  %v4718_v9 = vld [vmem:[#allocation24 + $0x11e8] sm:$0xff] }
 0xaed   : > { %4599 = vmatpush.msrb.mxu2 %v4505_v12  ;;  %4625 = vmatpush.msrb.mxu0 %v4531_v53  ;;  %v4486_v12 = vld [vmem:[#allocation24 + $0xe10] sm:$0xff]  ;;  %v4487_v53 = vld [vmem:[#allocation24 + $0xe18] sm:$0xff] }
 0xaee   : > { %4554 = vmatpush.msrb.mxu1 %v4502_v21  ;;  %4580 = vmatpush.msra.mxu3 %v4528_v0  ;;  %v4715_v0 = vld [vmem:[#allocation24 + $0x11d0] sm:$0xff] }
 0xaef   : > { %4600 = vmatpush.msrb.mxu2 %v4503_v61  ;;  %4626 = vmatpush.msrb.mxu0 %v4529_v23  ;;  %v3896_v27 = vpop.f32.mrf.mxu3  ;;  %v4716_v61 = vld [vmem:[#allocation24 + $0x11d8] sm:$0xff]  ;;  %v4485_v23 = vld [vmem:[#allocation24 + $0xe08] sm:$0xff] }
 0xaf0   : > { %4555 = vmatpush.msrb.mxu1 %v4500_v24  ;;  %4581 = vmatpush.msra.mxu3 %v4526_v3  ;;  %v3873_v28 = vpop.f32.mrf.mxu1 }
 0xaf1   : > { %4601 = vmatpush.msrb.mxu2 %v4501_v25  ;;  %4627 = vmatpush.msrb.mxu0 %v4527_v26  ;;  %v3897_v33 = vadd.f32 %v3896_v27, %v3873_v28  ;;  %v4687_v26 = vld [vmem:[#allocation24 + $0x10f0] sm:$0xff]  ;;  %v4688_v27 = vld [vmem:[#allocation24 + $0x10f8] sm:$0xff] }
 0xaf2   : > { %4556 = vmatpush.msrb.mxu1 %v4498_v30  ;;  %4582 = vmatpush.msra.mxu3 %v4524_v62  ;;  %v4713_v30 = vld [vmem:[#allocation24 + $0x11c0] sm:$0xff]  ;;  %v4711_v28 = vld [vmem:[#allocation24 + $0x11b0] sm:$0xff] }
 0xaf3   : > { %4602 = vmatpush.msrb.mxu2 %v4499_v31  ;;  %4628 = vmatpush.msrb.mxu0 %v4525_v2  ;;  %v3956_v35 = vmul.f32 %v3950_v14, %v3897_v33  ;;  %v3945_v3 = vpop.f32.mrf.mxu0  ;;  %v4714_v31 = vld [vmem:[#allocation24 + $0x11c8] sm:$0xff]  ;;  %v4683_v33 = vld [vmem:[#allocation24 + $0x10d0] sm:$0xff] }
 0xaf4   : > { %4557 = vmatpush.msrb.mxu1 %v4496_v19  ;;  %4583 = vmatpush.msra.mxu3 %v4522_v32  ;;  %v4712_v19 = vld [vmem:[#allocation24 + $0x11b8] sm:$0xff] }
 0xaf5   : > { %4603 = vmatpush.msrb.mxu2 %v4497_v6  ;;  %4629 = vmatpush.msrb.mxu0 %v4523_v41  ;;  %v7644_v45 = vadd.f32 %v3956_v35, %v7624_v13  ;;  %v4709_v6 = vld [vmem:[#allocation24 + $0x11a0] sm:$0xff]  ;;  %v4684_v41 = vld [vmem:[#allocation24 + $0x10d8] sm:$0xff]  ;;  %v4707_v35 = vld [vmem:[#allocation24 + $0x1190] sm:$0xff] }
 0xaf6   : > { %4558 = vmatpush.msrb.mxu1 %v4494_v10  ;;  %4584 = vmatpush.msra.mxu3 %v4520_v39  ;;  %v3919_v57 = vpop.f32.mrf.mxu2  ;;  %v4710_v10 = vld [vmem:[#allocation24 + $0x11a8] sm:$0xff]  ;;  %v4681_v39 = vld [vmem:[#allocation24 + $0x10c0] sm:$0xff] }
 0xaf7   : > { %4604 = vmatpush.msrb.mxu2 %v4495_v38  ;;  %4630 = vmatpush.msrb.mxu0 %v4521_v8  ;;  %v3943_v52 = vadd.f32 %v3942_v5, %v3919_v57  ;;  %v4682_v38 = vld [vmem:[#allocation24 + $0x10c8] sm:$0xff]  ;;  %v4708_v8 = vld [vmem:[#allocation24 + $0x1198] sm:$0xff]  ;;  %v4703_v5 = vld [vmem:[#allocation24 + $0x1170] sm:$0xff] }
 0xaf8   : > { %4559 = vmatpush.msrb.mxu1 %v4492_v17  ;;  %4585 = vmatpush.msra.mxu3 %v4518_v11  ;;  %v4705_v17 = vld [vmem:[#allocation24 + $0x1180] sm:$0xff]  ;;  %v4680_v11 = vld [vmem:[#allocation24 + $0x10b8] sm:$0xff]  ;;  %v4678_v57 = vld [vmem:[#allocation24 + $0x10a8] sm:$0xff] }
 0xaf9   : > { %4605 = vmatpush.msrb.mxu2 %v4493_v47  ;;  %4631 = vmatpush.msrb.mxu0 %v4519_v50  ;;  %v3957_v49 = vmul.f32 %v3950_v14, %v3943_v52  ;;  %v3899_v13 = vpop.f32.mrf.mxu3  ;;  %v4686_v14 = vld [vmem:[#allocation24 + $0x10e8] sm:$0xff]  ;;  %v4677_v50 = vld [vmem:[#allocation24 + $0x10a0] sm:$0xff] }
 0xafa   : > { %4560 = vmatpush.msrb.mxu1 %v4490_v15  ;;  %4586 = vmatpush.msra.mxu3 %v4516_v54  ;;  %v3876_v58 = vpop.f32.mrf.mxu1  ;;  %v4706_v47 = vld [vmem:[#allocation24 + $0x1188] sm:$0xff]  ;;  %v4704_v15 = vld [vmem:[#allocation24 + $0x1178] sm:$0xff]  ;;  %v4675_v54 = vld [vmem:[#allocation24 + $0x1090] sm:$0xff] }
 0xafb   : > { %4606 = vmatpush.msrb.mxu2 %v4491_v55  ;;  %4632 = vmatpush.msrb.mxu0 %v4517_v16  ;;  %v7647_v4 = vadd.f32 %v3957_v49, %v7629_v29  ;;  %v3900_v43 = vadd.f32 %v3899_v13, %v3876_v58  ;;  %v4484_v29 = vld [vmem:[#allocation24 + $0xe00] sm:$0xff]  ;;  %v4676_v55 = vld [vmem:[#allocation24 + $0x1098] sm:$0xff]  ;;  %v4702_v16 = vld [vmem:[#allocation24 + $0x1168] sm:$0xff] }
 0xafc   : > { %4587 = vmatmul.f32.vlgmr.msra.gmra.mxu3 %v7535_v18  ;;  %4633 = vmatmul.f32.vlgmr.msrb.gmra.mxu0 %v7535_v18  ;;  %v4701_v52 = vld [vmem:[#allocation24 + $0x1160] sm:$0xff]  ;;  %v4699_v13 = vld [vmem:[#allocation24 + $0x1150] sm:$0xff] }
 0xafd   : > { %4744 = vmatpush.msrb.mxu3 %v4719_v1  ;;  %4790 = vmatpush.msra.mxu0 %v4720_v7  ;;  %v3958_v21 = vmul.f32 %v3954_v59, %v3900_v43  ;;  %v4673_v49 = vld [vmem:[#allocation24 + $0x1080] sm:$0xff]  ;;  %v4674_v1 = vld [vmem:[#allocation24 + $0x1088] sm:$0xff]  ;;  %v4700_v7 = vld [vmem:[#allocation24 + $0x1158] sm:$0xff] }
 0xafe   : > { %4561 = vmatpush.msrb.mxu1 %v4488_v56  ;;  %4607 = vmatpush.msrb.mxu2 %v4489_v60  ;;  %v4671_v58 = vld [vmem:[#allocation24 + $0x1070] sm:$0xff]  ;;  %v4672_v60 = vld [vmem:[#allocation24 + $0x1078] sm:$0xff]  ;;  %v4698_v43 = vld [vmem:[#allocation24 + $0x1148] sm:$0xff] }
 0xaff   : > { %4745 = vmatpush.msrb.mxu3 %v4717_v51  ;;  %4791 = vmatpush.msra.mxu0 %v4718_v9  ;;  %v7652_v24 = vadd.f32 %v3958_v21, %v7632_v63  ;;  %v4685_v63 = vld [vmem:[#allocation24 + $0x10e0] sm:$0xff]  ;;  %v4123_v9 = vpop.permute.xlu1 %4122 }
 0xb00   : > { %4562 = vmatpush.msrb.mxu1 %v4486_v12  ;;  %4608 = vmatpush.msrb.mxu2 %v4487_v53  ;;  %v3922_v25 = vpop.f32.mrf.mxu2  ;;  %v4669_v12 = vld [vmem:[#allocation24 + $0x1060] sm:$0xff]  ;;  %v4695_v53 = vld [vmem:[#allocation24 + $0x1130] sm:$0xff] }
 0xb01   : > { %4746 = vmatpush.msrb.mxu3 %v4715_v0  ;;  %4792 = vmatpush.msra.mxu0 %v4716_v61  ;;  %v3946_v62 = vadd.f32 %v3945_v3, %v3922_v25  ;;  %v4670_v0 = vld [vmem:[#allocation24 + $0x1068] sm:$0xff]  ;;  %v4696_v61 = vld [vmem:[#allocation24 + $0x1138] sm:$0xff] }
 0xb02   : > { %4563 = vmatpush.msrb.mxu1 %v4484_v29  ;;  %4609 = vmatpush.msrb.mxu2 %v4485_v23  ;;  %v4667_v29 = vld [vmem:[#allocation24 + $0x1050] sm:$0xff]  ;;  %v4693_v23 = vld [vmem:[#allocation24 + $0x1120] sm:$0xff]  ;;  %v4999_v25 = vld [vmem:[#allocation19] sm:$0xff] }
 0xb03   : > { %4564 = vmatmul.f32.vlgmr.msrb.gmra.mxu1 %v7539_v37  ;;  %4610 = vmatmul.f32.vlgmr.msrb.gmra.mxu2 %v7539_v37  ;;  %v3959_v2 = vmul.f32 %v3954_v59, %v3946_v62  ;;  %v4697_v59 = vld [vmem:[#allocation24 + $0x1140] sm:$0xff]  ;;  %5001 = vst [vmem:[#allocation1] ss:$2 sm:$0xff] %v4999_v25 }
 0xb04   : > { %4721 = vmatpush.msra.mxu1 %v4687_v26  ;;  %4747 = vmatpush.msrb.mxu3 %v4713_v30  ;;  %v4668_v26 = vld [vmem:[#allocation24 + $0x1058] sm:$0xff]  ;;  %v4694_v30 = vld [vmem:[#allocation24 + $0x1128] sm:$0xff]  ;;  %v4665_v62 = vld [vmem:[#allocation24 + $0x1040] sm:$0xff] }
 0xb05   : > { %4767 = vmatpush.msra.mxu2 %v4688_v27  ;;  %4793 = vmatpush.msra.mxu0 %v4714_v31  ;;  %v7657_v32 = vadd.f32 %v3959_v2, %v7639_v36  ;;  %v4679_v36 = vld [vmem:[#allocation24 + $0x10b0] sm:$0xff]  ;;  %v4666_v2 = vld [vmem:[#allocation24 + $0x1048] sm:$0xff] }
 0xb06   : > { %4590 = vmatmul.f32.gmra.mxu3 %v7541_v20  ;;  %4636 = vmatmul.f32.gmra.mxu0 %v7541_v20  ;;  %v4691_v27 = vld [vmem:[#allocation24 + $0x1110] sm:$0xff] }
 0xb07   : > { %4722 = vmatpush.msra.mxu1 %v4685_v63  ;;  %4748 = vmatpush.msrb.mxu3 %v4711_v28  ;;  %v4692_v63 = vld [vmem:[#allocation24 + $0x1118] sm:$0xff] }
 0xb08   : > { %4768 = vmatpush.msra.mxu2 %v4686_v14  ;;  %4794 = vmatpush.msra.mxu0 %v4712_v19  ;;  %v4663_v19 = vld [vmem:[#allocation24 + $0x1030] sm:$0xff] }
 0xb09   : > { %4723 = vmatpush.msra.mxu1 %v4683_v33  ;;  %4749 = vmatpush.msrb.mxu3 %v4709_v6  ;;  %v4689_v33 = vld [vmem:[#allocation24 + $0x1100] sm:$0xff] }
 0xb0a   : > { %4769 = vmatpush.msra.mxu2 %v4684_v41  ;;  %4795 = vmatpush.msra.mxu0 %v4710_v10  ;;  %v4664_v41 = vld [vmem:[#allocation24 + $0x1038] sm:$0xff]  ;;  %v4690_v10 = vld [vmem:[#allocation24 + $0x1108] sm:$0xff] }
 0xb0b   : > { %4724 = vmatpush.msra.mxu1 %v4681_v39  ;;  %4750 = vmatpush.msrb.mxu3 %v4707_v35  ;;  %v4662_v35 = vld [vmem:[#allocation24 + $0x1028] sm:$0xff] }
 0xb0c   : > { %4770 = vmatpush.msra.mxu2 %v4682_v38  ;;  %4796 = vmatpush.msra.mxu0 %v4708_v8  ;;  %v4659_v8 = vld [vmem:[#allocation24 + $0x1010] sm:$0xff] }
 0xb0d   : > { %4567 = vmatmul.f32.gmra.mxu1 %v7547_v46  ;;  %4613 = vmatmul.f32.gmra.mxu2 %v7547_v46  ;;  %v4115_v28 = vpop.f32.mrf.mxu0 }
 0xb0e   : > { %4725 = vmatpush.msra.mxu1 %v4679_v36  ;;  %4751 = vmatpush.msrb.mxu3 %v4705_v17  ;;  %v4660_v36 = vld [vmem:[#allocation24 + $0x1018] sm:$0xff]  ;;  %v5862_v17 = vld [vmem:[#allocation16 + $0x78] sm:$0xff] }
 0xb0f   : > { %4771 = vmatpush.msra.mxu2 %v4680_v11  ;;  %4797 = vmatpush.msra.mxu0 %v4706_v47  ;;  %v4657_v11 = vld [vmem:[#allocation24 + $0x1000] sm:$0xff]  ;;  %v4658_v47 = vld [vmem:[#allocation24 + $0x1008] sm:$0xff] }
 0xb10   : > { %4726 = vmatpush.msra.mxu1 %v4677_v50  ;;  %4752 = vmatpush.msrb.mxu3 %v4703_v5  ;;  %v5863_v50 = vld [vmem:[#allocation16 + $0x68] sm:$0xff] }
 0xb11   : > { %4772 = vmatpush.msra.mxu2 %v4678_v57  ;;  %4798 = vmatpush.msra.mxu0 %v4704_v15  ;;  %v5864_v15 = vld [vmem:[#allocation16 + $0x58] sm:$0xff] }
 0xb12   : > { %4727 = vmatpush.msra.mxu1 %v4675_v54  ;;  %4753 = vmatpush.msrb.mxu3 %v4701_v52  ;;  %v5865_v52 = vld [vmem:[#allocation16 + $0x70] sm:$0xff] }
 0xb13   : > { %4773 = vmatpush.msra.mxu2 %v4676_v55  ;;  %4799 = vmatpush.msra.mxu0 %v4702_v16  ;;  %v4069_v56 = vpop.f32.mrf.mxu3  ;;  %v5866_v55 = vld [vmem:[#allocation16 + $0x48] sm:$0xff] }
 0xb14   : > { %4728 = vmatpush.msra.mxu1 %v4673_v49  ;;  %4754 = vmatpush.msrb.mxu3 %v4699_v13  ;;  %v4046_v51 = vpop.f32.mrf.mxu1  ;;  %v5867_v49 = vld [vmem:[#allocation16 + $0x60] sm:$0xff]  ;;  %v5868_v13 = vld [vmem:[#allocation16 + $0x38] sm:$0xff] }
 0xb15   : > { %4774 = vmatpush.msra.mxu2 %v4674_v1  ;;  %4800 = vmatpush.msra.mxu0 %v4700_v7  ;;  %v4070_v21 = vadd.f32 %v4069_v56, %v4046_v51  ;;  %v5869_v1 = vld [vmem:[#allocation16 + $0x50] sm:$0xff]  ;;  %v5871_v7 = vld [vmem:[#allocation16 + $0x40] sm:$0xff] }
 0xb16   : > { %4729 = vmatpush.msra.mxu1 %v4671_v58  ;;  %4755 = vmatpush.msrb.mxu3 %v4697_v59  ;;  %v5872_v58 = vld [vmem:[#allocation16 + $0x18] sm:$0xff]  ;;  %v5873_v59 = vld [vmem:[#allocation16 + $0x30] sm:$0xff]  ;;  %v5875_v56 = vld [vmem:[#allocation16 + $0x20] sm:$0xff] }
 0xb17   : > { %4775 = vmatpush.msra.mxu2 %v4672_v60  ;;  %4801 = vmatpush.msra.mxu0 %v4698_v43  ;;  %v4129_v3 = vmul.f32 %v4123_v9, %v4070_v21  ;;  %v4118_v5 = vpop.f32.mrf.mxu0  ;;  %v5876_v60 = vld [vmem:[#allocation16 + $0x10] sm:$0xff]  ;;  %v5877_v51 = vld [vmem:[#allocation16] sm:$0xff] }
 0xb18   : > { %4730 = vmatpush.msra.mxu1 %v4669_v12  ;;  %4756 = vmatpush.msrb.mxu3 %v4695_v53  ;;  %v5002_v43 = vld.sshfl [vmem:[#allocation1] sm:$0xff pattern:$0x75316420]  ;;  %v4296_v53 = vpop.permute.xlu0 %4295 }
 0xb19   : > { %4776 = vmatpush.msra.mxu2 %v4670_v0  ;;  %4802 = vmatpush.msra.mxu0 %v4696_v61  ;;  %v7664_v31 = vadd.f32 %v4129_v3, %v7644_v45  ;;  %v4661_v45 = vld [vmem:[#allocation24 + $0x1020] sm:$0xff] }
 0xb1a   : > { %4731 = vmatpush.msra.mxu1 %v4667_v29  ;;  %4757 = vmatpush.msrb.mxu3 %v4693_v23  ;;  %v4092_v14 = vpop.f32.mrf.mxu2 }
 0xb1b   : > { %4777 = vmatpush.msra.mxu2 %v4668_v26  ;;  %4803 = vmatpush.msra.mxu0 %v4694_v30  ;;  %v4116_v6 = vadd.f32 %v4115_v28, %v4092_v14 }
 0xb1c   : > { %4732 = vmatpush.msra.mxu1 %v4665_v62  ;;  %4758 = vmatpush.msrb.mxu3 %v4691_v27 }
 0xb1d   : > { %4778 = vmatpush.msra.mxu2 %v4666_v2  ;;  %4804 = vmatpush.msra.mxu0 %v4692_v63  ;;  %v4130_v39 = vmul.f32 %v4123_v9, %v4116_v6 }
 0xb1e   : > { %4733 = vmatpush.msra.mxu1 %v4663_v19  ;;  %4759 = vmatpush.msrb.mxu3 %v4689_v33 }
 0xb1f   : > { %4779 = vmatpush.msra.mxu2 %v4664_v41  ;;  %4805 = vmatpush.msra.mxu0 %v4690_v10  ;;  %v7667_v38 = vadd.f32 %v4130_v39, %v7647_v4  ;;  %v4473_v39 = vpop.permute.xlu1 %4472 }
 0xb20   : > { %4760 = vmatmul.f32.vlgmr.msrb.gmra.mxu3 %v7535_v18  ;;  %4806 = vmatmul.f32.vlgmr.msra.gmra.mxu0 %v7535_v18  ;;  %v7672_v18 = vpop.permute.xlu2 %4126 }
 0xb21   : > { %4734 = vmatpush.msra.mxu1 %v4661_v45  ;;  %4780 = vmatpush.msra.mxu2 %v4662_v35 }
 0xb22   : > { %4934 = vmatpush.msrb.mxu0 %v5862_v17 }
 0xb23   : > { %4735 = vmatpush.msra.mxu1 %v4659_v8  ;;  %4781 = vmatpush.msra.mxu2 %v4660_v36 }
 0xb24   : > { %4935 = vmatpush.msrb.mxu0 %v5863_v50  ;;  %v4095_v57 = vpop.f32.mrf.mxu2 }
 0xb25   : > { %4736 = vmatpush.msra.mxu1 %v4657_v11  ;;  %4782 = vmatpush.msra.mxu2 %v4658_v47  ;;  %v4119_v4 = vadd.f32 %v4118_v5, %v4095_v57 }
 0xb26   : > { %4936 = vmatpush.msrb.mxu0 %v5864_v15  ;;  %4737 = vmatmul.f32.vlgmr.msra.gmra.mxu1 %v7539_v37 }
 0xb27   : > { %4783 = vmatmul.f32.vlgmr.msra.gmra.mxu2 %v7539_v37  ;;  %v4132_v54 = vmul.f32 %v7672_v18, %v4119_v4  ;;  %v5870_v37 = vld [vmem:[#allocation16 + $0x28] sm:$0xff]  ;;  %v4646_v47 = vpop.permute.xlu1 %4645 }
 0xb28   : > { %4911 = vmatpush.msrb.mxu2 %v5865_v52  ;;  %4937 = vmatpush.msrb.mxu0 %v5866_v55  ;;  %v4300_v41 = vpop.permute.xlu2 %4299 }
 0xb29   : > { %4763 = vmatmul.f32.gmra.mxu3 %v7541_v20  ;;  %4809 = vmatmul.f32.gmra.mxu0 %v7541_v20  ;;  %v7679_v16 = vadd.f32 %v4132_v54, %v7657_v32  ;;  %v5003_v20 = vld.sshfl [vmem:[#allocation1 + $0x8] sm:$0xff pattern:$0x75316420]  ;;  %v5874_v32 = vld [vmem:[#allocation16 + $0x8] sm:$0xff] }
 0xb2a   : > { %4912 = vmatpush.msrb.mxu2 %v5867_v49  ;;  %4938 = vmatpush.msrb.mxu0 %v5868_v13 }
 0xb2c   : > { %4913 = vmatpush.msrb.mxu2 %v5869_v1  ;;  %4939 = vmatpush.msrb.mxu0 %v5870_v37 }
 0xb2e   : > { %4914 = vmatpush.msrb.mxu2 %v5871_v7  ;;  %4940 = vmatpush.msrb.mxu0 %v5872_v58 }
 0xb2f   : > { %4740 = vmatmul.f32.gmra.mxu1 %v7547_v46  ;;  %4786 = vmatmul.f32.gmra.mxu2 %v7547_v46 }
 0xb30   : > { %4915 = vmatpush.msrb.mxu2 %v5873_v59  ;;  %4941 = vmatpush.msrb.mxu0 %v5874_v32  ;;  %v4469_v36 = vpop.permute.xlu2 %4468 }
 0xb31   : > { %5505 = vmatmul.msk.f32.vlgmr.msrb.gmra.mxu0 %vm1788_vm1, %v7514_v34  ;;  %v4288_v46 = vpop.f32.mrf.mxu0 }
 0xb32   : > { %4916 = vmatpush.msrb.mxu2 %v5875_v56  ;;  %5514 = vmatpush.msk.msra.mxu0 %vm2142_vm5, %v5003_v20 }
 0xb34   : > { %4917 = vmatpush.msrb.mxu2 %v5876_v60 }
 0xb36   : > { %4918 = vmatpush.msrb.mxu2 %v5877_v51  ;;  %v4815_v51 = vpop.permute.xlu1 %4814 }
 0xb37   : > { %5503 = vmatmul.msk.f32.vlgmr.msrb.gmra.mxu2 %vm1788_vm1, %v7514_v34  ;;  %v4049_v34 = vpop.f32.mrf.mxu1 }
 0xb38   : > { %5511 = vmatpush.msk.msra.mxu2 %vm2142_vm5, %v5002_v43  ;;  %v4642_v59 = vpop.permute.xlu2 %4641 }
 0xb39   : > { %5506 = vmatmul.msk.f32.gmra.mxu0 %vm1788_vm1, %v7520_v40 }
 0xb3b   : > { %v4291_v23 = vpop.f32.mrf.mxu0 }
 0xb3e   : > { %v4265_v9 = vpop.f32.mrf.mxu2 }
 0xb3f   : > { %5504 = vmatmul.msk.f32.gmra.mxu2 %vm1788_vm1, %v7520_v40  ;;  %v4289_v12 = vadd.f32 %v4288_v46, %v4265_v9  ;;  %v4072_v40 = vpop.f32.mrf.mxu3  ;;  %v4219_v61 = vpop.f32.mrf.mxu1 }
 0xb40   : > { %v4073_v8 = vadd.f32 %v4072_v40, %v4049_v34 }
 0xb41   : > { %5515 = vmatmul.msk.f32.vlgmr.msra.gmra.mxu0 %vm2135_vm6, %v7326_v44  ;;  %v4303_v21 = vmul.f32 %v4296_v53, %v4289_v12 }
 0xb42   : > { %v4131_v4 = vmul.f32 %v7672_v18, %v4073_v8 }
 0xb43   : > { %v7696_v0 = vadd.f32 %v4303_v21, %v7667_v38 }
 0xb44   : > { %v4135_v37 = vadd.f32 %v4131_v4, %v7652_v24 }
 0xb47   : > { %5512 = vmatmul.msk.f32.vlgmr.msra.gmra.mxu2 %vm2135_vm6, %v7326_v44  ;;  %v4242_v29 = vpop.f32.mrf.mxu3  ;;  %v4222_v3 = vpop.f32.mrf.mxu1 }
 0xb48   : > { %v4268_v30 = vpop.f32.mrf.mxu2  ;;  %v4243_v17 = vadd.f32 %v4242_v29, %v4219_v61 }
 0xb49   : > { %5516 = vmatmul.msk.f32.gmra.mxu0 %vm2135_vm6, %v7330_v48  ;;  %v4292_v7 = vadd.f32 %v4291_v23, %v4268_v30 }
 0xb4a   : > { %v4302_v52 = vmul.f32 %v4296_v53, %v4243_v17  ;;  %v4819_v53 = vpop.permute.xlu0 %4818 }
 0xb4b   : > { %v4305_v24 = vmul.f32 %v4300_v41, %v4292_v7 }
 0xb4c   : > { %v4306_v56 = vadd.f32 %v4302_v52, %v7664_v31  ;;  %v4952_v52 = vld [vmem:[#allocation18 + $0x18] sm:$0xff] }
 0xb4f   : > { %5513 = vmatmul.msk.f32.gmra.mxu2 %vm2135_vm6, %v7330_v48  ;;  %v4245_v25 = vpop.f32.mrf.mxu3 }
 0xb50   : > { %v4246_v11 = vadd.f32 %v4245_v25, %v4222_v3 }
 0xb52   : > { %v4304_v55 = vmul.f32 %v4300_v41, %v4246_v11  ;;  %v4951_v11 = vld [vmem:[#allocation18 + $0x10] sm:$0xff] }
 0xb54   : > { %v4308_v60 = vadd.f32 %v4304_v55, %v4135_v37  ;;  %v4834_v55 = vld [vmem:[#allocation33 + $0x8] sm:$0xff] }
 0xb55   : > { %v4461_v26 = vpop.f32.mrf.mxu0 }
 0xb5b   : > { %v4415_v27 = vpop.f32.mrf.mxu3 }
 0xb5c   : > { %v4392_v62 = vpop.f32.mrf.mxu1 }
 0xb5d   : > { %v4416_v15 = vadd.f32 %v4415_v27, %v4392_v62 }
 0xb5f   : > { %v4464_v2 = vpop.f32.mrf.mxu0  ;;  %v4475_v58 = vmul.f32 %v4469_v36, %v4416_v15 }
 0xb61   : > { %v4479_v21 = vadd.f32 %v4475_v58, %v4306_v56 }
 0xb62   : > { %v4438_v63 = vpop.f32.mrf.mxu2 }
 0xb63   : > { %v4462_v18 = vadd.f32 %v4461_v26, %v4438_v63 }
 0xb65   : > { %v4418_v28 = vpop.f32.mrf.mxu3  ;;  %v4476_v25 = vmul.f32 %v4469_v36, %v4462_v18 }
 0xb66   : > { %v4395_v44 = vpop.f32.mrf.mxu1 }
 0xb67   : > { %v4419_v54 = vadd.f32 %v4418_v28, %v4395_v44  ;;  %v4309_v44 = vadd.f32 %v4305_v24, %v7679_v16  ;;  %v4833_v16 = vld [vmem:[#allocation33] sm:$0xff] }
 0xb69   : > { %v4477_v20 = vmul.f32 %v4473_v39, %v4419_v54 }
 0xb6b   : > { %v4481_v34 = vadd.f32 %v4477_v20, %v4308_v60 }
 0xb6c   : > { %v4441_v19 = vpop.f32.mrf.mxu2 }
 0xb6d   : > { %v4465_v43 = vadd.f32 %v4464_v2, %v4441_v19 }
 0xb6f   : > { %v4478_v26 = vmul.f32 %v4473_v39, %v4465_v43 }
 0xb71   : > { %v4482_v41 = vadd.f32 %v4478_v26, %v4309_v44 }
 0xb79   : > { %v4634_v14 = vpop.f32.mrf.mxu0 }
 0xb7f   : > { %v4588_v6 = vpop.f32.mrf.mxu3 }
 0xb80   : > { %v4565_v33 = vpop.f32.mrf.mxu1 }
 0xb81   : > { %v4589_v13 = vadd.f32 %v4588_v6, %v4565_v33 }
 0xb83   : > { %v4637_v48 = vpop.f32.mrf.mxu0  ;;  %v4648_v9 = vmul.f32 %v4642_v59, %v4589_v13  ;;  %v4950_v13 = vld [vmem:[#allocation18 + $0x8] sm:$0xff] }
 0xb85   : > { %v4652_v62 = vadd.f32 %v4648_v9, %v4479_v21 }
 0xb86   : > { %v4611_v10 = vpop.f32.mrf.mxu2 }
 0xb87   : > { %v4635_v29 = vadd.f32 %v4634_v14, %v4611_v10  ;;  %v4480_v14 = vadd.f32 %v4476_v25, %v7696_v0 }
 0xb89   : > { %v4591_v35 = vpop.f32.mrf.mxu3  ;;  %v4649_v28 = vmul.f32 %v4642_v59, %v4635_v29 }
 0xb8a   : > { %v4568_v45 = vpop.f32.mrf.mxu1 }
 0xb8b   : > { %v4592_v1 = vadd.f32 %v4591_v35, %v4568_v45  ;;  %v4653_v35 = vadd.f32 %v4649_v28, %v4480_v14 }
 0xb8d   : > { %v4650_v12 = vmul.f32 %v4646_v47, %v4592_v1 }
 0xb8f   : > { %v4654_v27 = vadd.f32 %v4650_v12, %v4481_v34 }
 0xb90   : > { %v4614_v50 = vpop.f32.mrf.mxu2 }
 0xb91   : > { %v4638_v23 = vadd.f32 %v4637_v48, %v4614_v50  ;;  %v4835_v50 = vld [vmem:[%s6837_s8] sm:$0xff] }
 0xb92   : > { %4839 = vperm.xlu2 %5859, %v4835_v50  }
 0xb93   : > { %v4651_v19 = vmul.f32 %v4646_v47, %v4638_v23  ;;  %v4836_v47 = vld [vmem:[%s6837_s8 + $0x8] sm:$0xff] }
 0xb94   : > { %4844 = vperm.xlu1 %5860, %v4836_v47  }
 0xb9d   : > { %v4807_v38 = vpop.f32.mrf.mxu0 }
 0xba3   : > { %v4738_v5 = vpop.f32.mrf.mxu1  ;;  %v4761_v57 = vpop.f32.mrf.mxu3 }
 0xba4   : > { %v4762_v32 = vadd.f32 %v4761_v57, %v4738_v5  ;;  %v4949_v57 = vld [vmem:[#allocation18] sm:$0xff] }
 0xba6   : > { %v4810_v49 = vpop.f32.mrf.mxu0  ;;  %v4821_v3 = vmul.f32 %v4815_v51, %v4762_v32 }
 0xba8   : > { %v4825_v33 = vadd.f32 %v4821_v3, %v4652_v62 }
 0xbaa   : > { %v4784_v46 = vpop.f32.mrf.mxu2  ;;  %v4829_v36 = vmax.f32 %v4825_v33, 0.0 }
 0xbab   : > { %v4808_v2 = vadd.f32 %v4807_v38, %v4784_v46  ;;  %v4655_v38 = vadd.f32 %v4651_v19, %v4482_v41 }
 0xbac   : > { %v4741_v40 = vpop.f32.mrf.mxu1  ;;  %v4764_v61 = vpop.f32.mrf.mxu3 }
 0xbad   : > { %v4765_v31 = vadd.f32 %v4764_v61, %v4741_v40  ;;  %v4822_v10 = vmul.f32 %v4815_v51, %v4808_v2 }
 0xbae   : > { %v4943_v30 = vpop.f32.mrf.mxu0 }
 0xbaf   : > { %5059 = vst [vmem:[%s7709_s1 + $0x28] sm:$0xff] %v4943_v30  ;;  %v4823_v63 = vmul.f32 %v4819_v53, %v4765_v31  ;;  %v4826_v0 = vadd.f32 %v4822_v10, %v4653_v35 }
 0xbb1   : > { %v4827_v6 = vadd.f32 %v4823_v63, %v4654_v27  ;;  %v4830_v54 = vmax.f32 %v4826_v0, 0.0 }
 0xbb2   : > { %v4787_v48 = vpop.f32.mrf.mxu2 }
 0xbb3   : > { %v4831_v39 = vmax.f32 %v4827_v6, 0.0  ;;  %v4811_v45 = vadd.f32 %v4810_v49, %v4787_v48 }
 0xbb5   : > { %v4824_v8 = vmul.f32 %v4819_v53, %v4811_v45  ;;  %4867 = vmatpush.msrb.mxu1 %v4831_v39 }
 0xbb6   : > { %v4946_v17 = vpop.f32.mrf.mxu0 }
 0xbb7   : > { %v4828_v5 = vadd.f32 %v4824_v8, %v4655_v38  ;;  %5061 = vst [vmem:[%s7709_s1 + $0x38] sm:$0xff] %v4946_v17  ;;  %4868 = vmatpush.msrb.mxu1 %v4829_v36 }
 0xbb8   : > { %5499 = vmatmul.msk.f32.vlgmr.msrb.gmra.mxu1 %vm1741_vm0, %v4833_v16 }
 0xbb9   : > { %v4832_v4 = vmax.f32 %v4828_v5, 0.0  ;;  %4967 = vmatpush.msra.mxu1 %v4951_v11 }
 0xbba   : > { %v4920_v15 = vpop.f32.mrf.mxu2 }
 0xbbb   : > { %5058 = vst [vmem:[%s7709_s1 + $0x20] sm:$0xff] %v4920_v15  ;;  %4890 = vmatpush.msra.mxu3 %v4832_v4  ;;  %4968 = vmatpush.msra.mxu1 %v4949_v57 }
 0xbbd   : > { %4891 = vmatpush.msra.mxu3 %v4830_v54 }
 0xbbe   : > { %5501 = vmatmul.msk.f32.vlgmr.msra.gmra.mxu3 %vm1741_vm0, %v4833_v16  ;;  %v5048_v49 = vpop.f32.mrf.mxu0 }
 0xbbf   : > { %5067 = vst [vmem:[%s7709_s1 + $0x68] sm:$0xff] %v5048_v49  ;;  %4990 = vmatpush.msrb.mxu3 %v4952_v52 }
 0xbc0   : > { %5500 = vmatmul.msk.f32.gmra.mxu1 %vm1741_vm0, %v4834_v55 }
 0xbc1   : > { %4991 = vmatpush.msrb.mxu3 %v4950_v13 }
 0xbc2   : > { %v4923_v1 = vpop.f32.mrf.mxu2 }
 0xbc3   : > { %5060 = vst [vmem:[%s7709_s1 + $0x30] sm:$0xff] %v4923_v1 }
 0xbc6   : > { %5502 = vmatmul.msk.f32.gmra.mxu3 %vm1741_vm0, %v4834_v55  ;;  %v5051_v37 = vpop.f32.mrf.mxu0 }
 0xbc7   : > { %5069 = vst [vmem:[%s7709_s1 + $0x78] sm:$0xff] %v5051_v37 }
 0xbc8   : > { %5507 = vmatmul.msk.f32.vlgmr.msra.gmra.mxu1 %vm1741_vm0, %v7431_v22 }
 0xbca   : > { %v5025_v7 = vpop.f32.mrf.mxu2 }
 0xbcb   : > { %5066 = vst [vmem:[%s7709_s1 + $0x60] sm:$0xff] %v5025_v7 }
 0xbce   : > { %5509 = vmatmul.msk.f32.vlgmr.msrb.gmra.mxu3 %vm1741_vm0, %v7431_v22 }
 0xbd0   : > { %5508 = vmatmul.msk.f32.gmra.mxu1 %vm1741_vm0, %v7437_v42 }
 0xbd2   : > { %v5028_v58 = vpop.f32.mrf.mxu2 }
 0xbd3   : > { %5068 = vst [vmem:[%s7709_s1 + $0x70] sm:$0xff] %v5028_v58 }
 0xbd6   : > { %5510 = vmatmul.msk.f32.gmra.mxu3 %vm1741_vm0, %v7437_v42 }
 0xbec   : > { %v4840_v20 = vpop.permute.xlu2 %4839 }
 0xc06   : > { %v4845_v60 = vpop.permute.xlu1 %4844 }
 0xc35   : > { %v4870_v59 = vpop.f32.mrf.mxu1 }
 0xc36   : > { %v4871_v32 = vadd.f32 %v4870_v59, %v4840_v20 }
 0xc38   : > { %v4899_v56 = vmax.f32 %v4871_v32, 0.0 }
 0xc3a   : > { %5054 = vst [vmem:[%s7709_s1] sm:$0xff] %v4899_v56 }
 0xc3d   : > { %v4873_v22 = vpop.f32.mrf.mxu1 }
 0xc3e   : > { %v4874_v18 = vadd.f32 %v4873_v22, %v4845_v60 }
 0xc40   : > { %v4901_v43 = vmax.f32 %v4874_v18, 0.0 }
 0xc41   : > { %v4893_v51 = vpop.f32.mrf.mxu3 }
 0xc42   : > { %v4894_v46 = vadd.f32 %v4893_v51, %v4840_v20  ;;  %5056 = vst [vmem:[%s7709_s1 + $0x10] sm:$0xff] %v4901_v43 }
 0xc44   : > { %v4900_v9 = vmax.f32 %v4894_v46, 0.0 }
 0xc45   : > { %v4970_v12 = vpop.f32.mrf.mxu1 }
 0xc46   : > { %5062 = vst [vmem:[%s7709_s1 + $0x40] sm:$0xff] %v4970_v12 }
 0xc47   : > { %5055 = vst [vmem:[%s7709_s1 + $0x8] sm:$0xff] %v4900_v9 }
 0xc49   : > { %v4896_v42 = vpop.f32.mrf.mxu3 }
 0xc4a   : > { %v4897_v53 = vadd.f32 %v4896_v42, %v4845_v60 }
 0xc4c   : > { %v4902_v24 = vmax.f32 %v4897_v53, 0.0 }
 0xc4d   : > { %v4973_v21 = vpop.f32.mrf.mxu1 }
 0xc4e   : > { %5064 = vst [vmem:[%s7709_s1 + $0x50] sm:$0xff] %v4973_v21 }
 0xc4f   : > { %5057 = vst [vmem:[%s7709_s1 + $0x18] sm:$0xff] %v4902_v24 }
 0xc51   : > { %v4993_v34 = vpop.f32.mrf.mxu3 }
 0xc52   : > { %5063 = vst [vmem:[%s7709_s1 + $0x48] sm:$0xff] %v4993_v34 }
 0xc59   : > { %v4996_v40 = vpop.f32.mrf.mxu3 }
 0xc5a   : > { %5065 = vst [vmem:[%s7709_s1 + $0x58] sm:$0xff] %v4996_v40 }
 0xc5b PF: > { %s7865_s0 = sld [smem:[#allocation75_spill]] }
 0xc61   : > { %s102_s28 = sadd.s32 1, %s7865_s0  }
 0xc62   : > { %p99_p3 = scmp.ge.s32.totalorder %s102_s28, 4  }
 0xc64   :  { %101 = sbr.rel (!%p99_p3) target bundleno = 83 (0x53), region = 361 }
 0xc69   :  { %5091 = vsyncpa [#allocation3], 1 }
 0xc6a   :  { %5093 = vsyncpa [#allocation3 + $0x1], 1 }
 0xc6b   :  { %5094 = vsyncpa [#allocation5], 1 }
 0xc6c   :  { %5095 = vsyncpa [#allocation8], 1 }
 0xc6d   :  { %5096 = vsyncpa [#allocation11], 1 }
 0xc6e   :  { %5097 = vsyncpa [#allocation14], 1 }
 0xc6f   :  { %5098 = vsyncpa [#allocation17], 1 }
 0xc70   :  { %5099 = vsyncpa [#allocation20], 1 }
 0xc71   :  { %5100 = vsyncpa [#allocation23], 1 }
 0xc72   :  { %5101 = vsyncpa [#allocation26], 1 }
 0xc73   :  { %5102 = vsyncpa [#allocation29], 1 }
 0xc74   :  { %5103 = vsyncpa [#allocation32], 1 }

</bundles_post_ra>
